<compile_context>
chip_gen: v5e
topology: v5e:2x2
jax: 0.10.0
libtpu: 0.0.40
codegen_flags: <defaults>
</compile_context>

<pallas_src>
import jax
import jax.numpy as jnp
from jax.experimental import pallas as pl
from jax.experimental.pallas import tpu as pltpu


def resnet_block_kernel(x_ref, w1_ref, w2_ref, out_ref, pad_ref):
    # x_ref block: (1, H, W, C) — one batch element per grid step (NHWC).
    # w*_ref: (3, 3*C, C) bf16, indexed by dx, dy folded into the K dimension.
    _, H, W, C = x_ref.shape
    Wp = pad_ref.shape[1]          # W+2 rounded up to a multiple of 16
    M = H * Wp
    eps = 1e-5

    def write_pad(y):
        """ReflectionPad2d(1) of y (H, W, C) f32 -> pad_ref (H+2, Wp, C) bf16.

        The W-axis body shift (by one column) is realized as a single flat
        sublane roll — every value that wraps across rows is a zero from the
        alignment columns — and the two reflection columns are filled with a
        select on a column-index mask.  One bf16 cast per fill; all scratch
        stores are offset only on the untiled leading H axis.
        """
        ext = jnp.concatenate(
            [y, jnp.zeros((H, Wp - W, C), jnp.float32)], axis=1)     # (H, Wp, C)
        body = pltpu.roll(ext.reshape(M, C), 1, axis=0).reshape(H, Wp, C)
        col = jax.lax.broadcasted_iota(jnp.int32, (1, Wp, 1), 1)
        xw = jnp.where(col == 0, y[:, 1:2, :], body)                 # left reflect
        xw = jnp.where(col == W + 1, y[:, W - 2:W - 1, :], xw)       # right reflect
        xw = xw.astype(jnp.bfloat16)                                 # single cast
        pad_ref[1:H + 1] = xw                                        # interior rows
        pad_ref[0:1] = xw[1:2]                                       # top reflected row
        pad_ref[H + 1:H + 2] = xw[H - 2:H - 1]                       # bottom reflected row

    def conv3x3(w_ref):
        """3x3 'valid' conv of the padded scratch -> (H, W, C) f32 (no bias).

        dy is folded into the contraction: one (M, 3C) bf16 slab, one matmul
        per dx (f32 accumulation), and the dx shift is an XLU roll of the f32
        product; rows that wrap only land in the discarded padded columns.
        """
        slab3 = jnp.concatenate(
            [pad_ref[dy:dy + H].reshape(M, C) for dy in range(3)], axis=1)
        acc = jnp.dot(slab3, w_ref[0], preferred_element_type=jnp.float32)
        for dx in (1, 2):
            p = jnp.dot(slab3, w_ref[dx], preferred_element_type=jnp.float32)
            acc = acc + pltpu.roll(p, M - dx, axis=0)   # acc[q] += p[q + dx]
        # Drop the padded / alignment-garbage columns once.
        return acc.reshape(H, Wp, C)[:, :W, :]

    def in_stats(h):
        """InstanceNorm2d(affine=False) stats: per-channel mean, rsqrt(var+eps).

        One-pass sum / sum-of-squares in f32 with a var>=0 clamp.
        TODO(synk): switch to two-pass / Welford if tolerances tighten.
        """
        hf = h.reshape(H * W, C)
        inv_n = 1.0 / (H * W)
        mean = jnp.sum(hf, axis=0, keepdims=True) * inv_n
        var = jnp.sum(hf * hf, axis=0, keepdims=True) * inv_n - mean * mean
        inv = jax.lax.rsqrt(jnp.maximum(var, 0.0) + eps)
        return mean.reshape(1, 1, C), inv.reshape(1, 1, C)

    # conv block 1: reflect pad -> conv -> IN -> ReLU
    write_pad(x_ref[0].astype(jnp.float32))
    a1 = conv3x3(w1_ref)
    mean1, inv1 = in_stats(a1)
    # IN + ReLU (+ the bf16 cast) fused into the pad-scratch write for conv 2.
    write_pad(jnp.maximum((a1 - mean1) * inv1, 0.0))

    # conv block 2: reflect pad -> conv -> IN
    a2 = conv3x3(w2_ref)
    mean2, inv2 = in_stats(a2)

    # Residual skip (x re-read here rather than held live across the body).
    out_ref[0] = (x_ref[0].astype(jnp.float32)
                  + (a2 - mean2) * inv2).astype(out_ref.dtype)


def _fold_weights(w):
    """HWIO (3, 3, C, C) -> (dx, dy*C + c_in, c_out) = (3, 3C, C), bf16."""
    C = w.shape[2]
    return jnp.transpose(w, (1, 0, 2, 3)).reshape(3, 3 * C, C).astype(jnp.bfloat16)


def resnet_block_nhwc(x_nhwc, w1, w2):
    """x_nhwc: (N, H, W, C). w1, w2: (3, 3, Cin, Cout) HWIO. Returns NHWC."""
    N, H, W, C = x_nhwc.shape
    # Padded width rounded to a multiple of 16 so the bf16 pad-scratch slabs
    # reshape (H, Wp, C) -> (H*Wp, C) without a relayout (bf16 sublane packing).
    Wp = ((W + 2 + 15) // 16) * 16

    w1f = _fold_weights(w1)
    w2f = _fold_weights(w2)

    return pl.pallas_call(
        resnet_block_kernel,
        out_shape=jax.ShapeDtypeStruct((N, H, W, C), x_nhwc.dtype),
        grid_spec=pltpu.PrefetchScalarGridSpec(
            num_scalar_prefetch=0,
            grid=(N,),
            in_specs=[
                pl.BlockSpec((1, H, W, C), lambda n: (n, 0, 0, 0)),
                # Constant index_map -> single-buffer the weights (saves VMEM).
                pl.BlockSpec((3, 3 * C, C), lambda n: (0, 0, 0),
                             pipeline_mode=pl.Buffered(1)),
                pl.BlockSpec((3, 3 * C, C), lambda n: (0, 0, 0),
                             pipeline_mode=pl.Buffered(1)),
            ],
            out_specs=pl.BlockSpec((1, H, W, C), lambda n: (n, 0, 0, 0)),
            scratch_shapes=[pltpu.VMEM((H + 2, Wp, C), jnp.bfloat16)],
        ),
        compiler_params=pltpu.CompilerParams(
            dimension_semantics=("parallel",),
            # Explicit budget: above the default scoped limit, below v7x's
            # 64 MiB physical.  bf16 scratch + fused normalize keep the
            # whole-image working set comfortably inside this for the sizes
            # this module is used at; see header TODO for v7x H-tiling.
            vmem_limit_bytes=48 * 1024 * 1024,
        ),
    )(x_nhwc, w1f, w2f)


def resnet_block(x_nchw, w1, b1, w2, b2):
    """PyTorch-layout wrapper: x (N, C, H, W); w* (3, 3, C, C) HWIO; b* (C,).

    b1/b2 are accepted for interface parity but unused: with
    InstanceNorm2d(affine=False) the per-channel mean subtraction cancels any
    constant per-channel conv bias exactly.
    NOTE: an NHWC model should call resnet_block_nhwc directly and skip these
    two whole-tensor HBM transposes.
    """
    del b1, b2
    x = jnp.transpose(x_nchw, (0, 2, 3, 1))      # NHWC
    y = resnet_block_nhwc(x, w1, w2)
    return jnp.transpose(y, (0, 3, 1, 2))        # back to NCHW


def _reference(x_nchw, w1, b1, w2, b2, eps=1e-5):
    """Pure-JAX f32 reference (full math, including the conv biases)."""
    x = jnp.transpose(x_nchw, (0, 2, 3, 1)).astype(jnp.float32)
    N, H, W, C = x.shape

    def pad(v):  # (N,H,W,C) reflect pad 1
        v = jnp.concatenate([v[:, 1:2], v, v[:, H - 2:H - 1]], axis=1)
        v = jnp.concatenate([v[:, :, 1:2], v, v[:, :, W - 2:W - 1]], axis=2)
        return v

    def conv(v, w, b):
        vp = pad(v)
        acc = jnp.zeros((N, H, W, C), jnp.float32)
        for dy in range(3):
            for dx in range(3):
                acc = acc + jnp.einsum('nhwc,cd->nhwd',
                                       vp[:, dy:dy + H, dx:dx + W, :], w[dy, dx])
        return acc + b.reshape(1, 1, 1, C)

    def inorm(v):
        m = jnp.mean(v, axis=(1, 2), keepdims=True)
        s = jnp.mean((v - m) ** 2, axis=(1, 2), keepdims=True)
        return (v - m) * jax.lax.rsqrt(s + eps)

    h = jnp.maximum(inorm(conv(x, w1, b1)), 0.0)
    h = inorm(conv(h, w2, b2))
    return jnp.transpose(x + h, (0, 3, 1, 2))


if __name__ == "__main__":
    N, C, H, W = 2, 4, 16, 16
    key = jax.random.PRNGKey(0)
    kx, k1, kb1, k2, kb2 = jax.random.split(key, 5)

    x = jax.random.normal(kx, (N, C, H, W), dtype=jnp.float32)
    # Synthetic conv params (PyTorch layout would be (C, C, 3, 3) + (C,);
    # convert with w.transpose(2, 3, 1, 0) to get this HWIO layout).
    fan_in = C * 3 * 3
    w1 = jax.random.normal(k1, (3, 3, C, C), dtype=jnp.float32) / jnp.sqrt(fan_in)
    b1 = jax.random.normal(kb1, (C,), dtype=jnp.float32) * 0.01
    w2 = jax.random.normal(k2, (3, 3, C, C), dtype=jnp.float32) / jnp.sqrt(fan_in)
    b2 = jax.random.normal(kb2, (C,), dtype=jnp.float32) * 0.01

    out = resnet_block(x, w1, b1, w2, b2)
    jax.block_until_ready(out)

    ref = _reference(x, w1, b1, w2, b2)
    assert out.shape == (N, C, H, W)
    # bf16 matmul operands (f32 accumulation) -> allow small drift vs f32 reference.
    assert jnp.allclose(out, ref, atol=5e-2, rtol=5e-2), \
        float(jnp.max(jnp.abs(out - ref)))

    print("KERNEL_OK")
</pallas_src>

<mosaic_0001>
module attributes {stable_mosaic.version = 11 : i64} {
  func.func @resnet_block_kernel(%arg0: i32, %arg1: memref<1x16x16x4xf32, #tpu.memory_space<vmem>>, %arg2: memref<3x12x4xbf16, #tpu.memory_space<vmem>>, %arg3: memref<3x12x4xbf16, #tpu.memory_space<vmem>>, %arg4: memref<1x16x16x4xf32, #tpu.memory_space<vmem>>, %arg5: memref<18x32x4xbf16, #tpu.memory_space<vmem>>) attributes {dimension_semantics = [#tpu.dimension_semantics<parallel>], iteration_bounds = array<i64: 2>, scalar_prefetch = 0 : i64, scratch_operands = 1 : i64, tpu.core_type = #tpu.core_type<tc>, window_params = [{transform_indices = @transform_0, window_bounds = array<i64: 1, 16, 16, 4>}, {pipeline_mode = #tpu.pipeline_mode<synchronous>, transform_indices = @transform_1, window_bounds = array<i64: 3, 12, 4>}, {pipeline_mode = #tpu.pipeline_mode<synchronous>, transform_indices = @transform_2, window_bounds = array<i64: 3, 12, 4>}, {transform_indices = @transform_3, window_bounds = array<i64: 1, 16, 16, 4>}]} {
    %c0 = arith.constant 0 : index
    %c0_0 = arith.constant 0 : index
    %c0_1 = arith.constant 0 : index
    %c0_2 = arith.constant 0 : index
    %0 = vector.load %arg1[%c0, %c0_0, %c0_1, %c0_2] : memref<1x16x16x4xf32, #tpu.memory_space<vmem>>, vector<1x16x16x4xf32>
    %1 = vector.shape_cast %0 : vector<1x16x16x4xf32> to vector<16x16x4xf32>
    %cst = arith.constant 0.000000e+00 : f32
    %2 = vector.broadcast %cst : f32 to vector<16x16x4xf32>
    %3 = tpu.concatenate %1, %2 in 1 : vector<16x16x4xf32>, vector<16x16x4xf32> -> vector<16x32x4xf32>
    %4 = vector.shape_cast %3 : vector<16x32x4xf32> to vector<512x4xf32>
    %c1_i32 = arith.constant 1 : i32
    %5 = tpu.dynamic_rotate %4 by %c1_i32 dim 0 : vector<512x4xf32>, i32 -> vector<512x4xf32>
    %6 = vector.shape_cast %5 : vector<512x4xf32> to vector<16x32x4xf32>
    %7 = tpu.iota {dimensions = array<i32: 1>} : vector<1x32x1xi32>
    %c0_i32 = arith.constant 0 : i32
    %8 = vector.broadcast %c0_i32 : i32 to vector<1x32x1xi32>
    %9 = arith.cmpi eq, %7, %8 : vector<1x32x1xi32>
    %10 = vector.extract_strided_slice %1 {offsets = [0, 1, 0], sizes = [16, 1, 4], strides = [1, 1, 1]} : vector<16x16x4xf32> to vector<16x1x4xf32>
    %11 = vector.shape_cast %9 : vector<1x32x1xi1> to vector<1x32x1xi1>
    %12 = vector.broadcast %11 : vector<1x32x1xi1> to vector<16x32x4xi1>
    %13 = vector.shape_cast %10 : vector<16x1x4xf32> to vector<16x1x4xf32>
    %14 = vector.broadcast %13 : vector<16x1x4xf32> to vector<16x32x4xf32>
    %15 = arith.select %12, %14, %6 : vector<16x32x4xi1>, vector<16x32x4xf32>
    %c17_i32 = arith.constant 17 : i32
    %16 = vector.broadcast %c17_i32 : i32 to vector<1x32x1xi32>
    %17 = arith.cmpi eq, %7, %16 : vector<1x32x1xi32>
    %18 = vector.extract_strided_slice %1 {offsets = [0, 14, 0], sizes = [16, 1, 4], strides = [1, 1, 1]} : vector<16x16x4xf32> to vector<16x1x4xf32>
    %19 = vector.shape_cast %17 : vector<1x32x1xi1> to vector<1x32x1xi1>
    %20 = vector.broadcast %19 : vector<1x32x1xi1> to vector<16x32x4xi1>
    %21 = vector.shape_cast %18 : vector<16x1x4xf32> to vector<16x1x4xf32>
    %22 = vector.broadcast %21 : vector<16x1x4xf32> to vector<16x32x4xf32>
    %23 = arith.select %20, %22, %15 : vector<16x32x4xi1>, vector<16x32x4xf32>
    %24 = arith.truncf %23 : vector<16x32x4xf32> to vector<16x32x4xbf16>
    %c1 = arith.constant 1 : index
    %c0_3 = arith.constant 0 : index
    %c0_4 = arith.constant 0 : index
    %25 = vector.load %arg5[%c1, %c0_3, %c0_4] : memref<18x32x4xbf16, #tpu.memory_space<vmem>>, vector<16x32x4xbf16>
    tpu.vector_store %arg5[%c1, %c0_3, %c0_4], %24 {strides = array<i32>} : memref<18x32x4xbf16, #tpu.memory_space<vmem>>, vector<16x32x4xbf16>,
    %26 = vector.extract_strided_slice %24 {offsets = [1, 0, 0], sizes = [1, 32, 4], strides = [1, 1, 1]} : vector<16x32x4xbf16> to vector<1x32x4xbf16>
    %c0_5 = arith.constant 0 : index
    %c0_6 = arith.constant 0 : index
    %c0_7 = arith.constant 0 : index
    %27 = vector.load %arg5[%c0_5, %c0_6, %c0_7] : memref<18x32x4xbf16, #tpu.memory_space<vmem>>, vector<1x32x4xbf16>
    tpu.vector_store %arg5[%c0_5, %c0_6, %c0_7], %26 {strides = array<i32>} : memref<18x32x4xbf16, #tpu.memory_space<vmem>>, vector<1x32x4xbf16>,
    %28 = vector.extract_strided_slice %24 {offsets = [14, 0, 0], sizes = [1, 32, 4], strides = [1, 1, 1]} : vector<16x32x4xbf16> to vector<1x32x4xbf16>
    %c17 = arith.constant 17 : index
    %c0_8 = arith.constant 0 : index
    %c0_9 = arith.constant 0 : index
    %29 = vector.load %arg5[%c17, %c0_8, %c0_9] : memref<18x32x4xbf16, #tpu.memory_space<vmem>>, vector<1x32x4xbf16>
    tpu.vector_store %arg5[%c17, %c0_8, %c0_9], %28 {strides = array<i32>} : memref<18x32x4xbf16, #tpu.memory_space<vmem>>, vector<1x32x4xbf16>,
    %c0_10 = arith.constant 0 : index
    %c0_11 = arith.constant 0 : index
    %c0_12 = arith.constant 0 : index
    %30 = vector.load %arg5[%c0_10, %c0_11, %c0_12] : memref<18x32x4xbf16, #tpu.memory_space<vmem>>, vector<16x32x4xbf16>
    %31 = vector.shape_cast %30 : vector<16x32x4xbf16> to vector<512x4xbf16>
    %c1_13 = arith.constant 1 : index
    %c0_14 = arith.constant 0 : index
    %c0_15 = arith.constant 0 : index
    %32 = vector.load %arg5[%c1_13, %c0_14, %c0_15] : memref<18x32x4xbf16, #tpu.memory_space<vmem>>, vector<16x32x4xbf16>
    %33 = vector.shape_cast %32 : vector<16x32x4xbf16> to vector<512x4xbf16>
    %c2 = arith.constant 2 : index
    %c0_16 = arith.constant 0 : index
    %c0_17 = arith.constant 0 : index
    %34 = vector.load %arg5[%c2, %c0_16, %c0_17] : memref<18x32x4xbf16, #tpu.memory_space<vmem>>, vector<16x32x4xbf16>
    %35 = vector.shape_cast %34 : vector<16x32x4xbf16> to vector<512x4xbf16>
    %36 = tpu.concatenate %31, %33, %35 in 1 : vector<512x4xbf16>, vector<512x4xbf16>, vector<512x4xbf16> -> vector<512x12xbf16>
    %c0_18 = arith.constant 0 : index
    %c0_19 = arith.constant 0 : index
    %c0_20 = arith.constant 0 : index
    %37 = vector.load %arg2[%c0_18, %c0_19, %c0_20] : memref<3x12x4xbf16, #tpu.memory_space<vmem>>, vector<1x12x4xbf16>
    %38 = vector.shape_cast %37 : vector<1x12x4xbf16> to vector<12x4xbf16>
    %cst_21 = arith.constant dense<0.000000e+00> : vector<512x4xf32>
    %39 = tpu.matmul %36, %38, %cst_21 {dimension_numbers = #tpu.dot_dimension_numbers<[1], [0], [0], [1], [0, 0, 1, 1], [], []>} : vector<512x12xbf16>, vector<12x4xbf16>, vector<512x4xf32> -> vector<512x4xf32>
    %c1_22 = arith.constant 1 : index
    %c0_23 = arith.constant 0 : index
    %c0_24 = arith.constant 0 : index
    %40 = vector.load %arg2[%c1_22, %c0_23, %c0_24] : memref<3x12x4xbf16, #tpu.memory_space<vmem>>, vector<1x12x4xbf16>
    %41 = vector.shape_cast %40 : vector<1x12x4xbf16> to vector<12x4xbf16>
    %cst_25 = arith.constant dense<0.000000e+00> : vector<512x4xf32>
    %42 = tpu.matmul %36, %41, %cst_25 {dimension_numbers = #tpu.dot_dimension_numbers<[1], [0], [0], [1], [0, 0, 1, 1], [], []>} : vector<512x12xbf16>, vector<12x4xbf16>, vector<512x4xf32> -> vector<512x4xf32>
    %c511_i32 = arith.constant 511 : i32
    %43 = tpu.dynamic_rotate %42 by %c511_i32 dim 0 : vector<512x4xf32>, i32 -> vector<512x4xf32>
    %44 = arith.addf %39, %43 : vector<512x4xf32>
    %c2_26 = arith.constant 2 : index
    %c0_27 = arith.constant 0 : index
    %c0_28 = arith.constant 0 : index
    %45 = vector.load %arg2[%c2_26, %c0_27, %c0_28] : memref<3x12x4xbf16, #tpu.memory_space<vmem>>, vector<1x12x4xbf16>
    %46 = vector.shape_cast %45 : vector<1x12x4xbf16> to vector<12x4xbf16>
    %cst_29 = arith.constant dense<0.000000e+00> : vector<512x4xf32>
    %47 = tpu.matmul %36, %46, %cst_29 {dimension_numbers = #tpu.dot_dimension_numbers<[1], [0], [0], [1], [0, 0, 1, 1], [], []>} : vector<512x12xbf16>, vector<12x4xbf16>, vector<512x4xf32> -> vector<512x4xf32>
    %c510_i32 = arith.constant 510 : i32
    %48 = tpu.dynamic_rotate %47 by %c510_i32 dim 0 : vector<512x4xf32>, i32 -> vector<512x4xf32>
    %49 = arith.addf %44, %48 : vector<512x4xf32>
    %50 = vector.shape_cast %49 : vector<512x4xf32> to vector<16x32x4xf32>
    %51 = vector.extract_strided_slice %50 {offsets = [0, 0, 0], sizes = [16, 16, 4], strides = [1, 1, 1]} : vector<16x32x4xf32> to vector<16x16x4xf32>
    %52 = vector.shape_cast %51 : vector<16x16x4xf32> to vector<256x4xf32>
    %cst_30 = arith.constant dense<0.000000e+00> : vector<4xf32>
    %53 = vector.multi_reduction <add>, %52, %cst_30 [0] : vector<256x4xf32> to vector<4xf32>
    %54 = vector.shape_cast %53 : vector<4xf32> to vector<1x4xf32>
    %cst_31 = arith.constant 3.906250e-03 : f32
    %55 = vector.broadcast %cst_31 : f32 to vector<1x4xf32>
    %56 = arith.mulf %54, %55 : vector<1x4xf32>
    %57 = arith.mulf %52, %52 : vector<256x4xf32>
    %cst_32 = arith.constant dense<0.000000e+00> : vector<4xf32>
    %58 = vector.multi_reduction <add>, %57, %cst_32 [0] : vector<256x4xf32> to vector<4xf32>
    %59 = vector.shape_cast %58 : vector<4xf32> to vector<1x4xf32>
    %cst_33 = arith.constant 3.906250e-03 : f32
    %60 = vector.broadcast %cst_33 : f32 to vector<1x4xf32>
    %61 = arith.mulf %59, %60 : vector<1x4xf32>
    %62 = arith.mulf %56, %56 : vector<1x4xf32>
    %63 = arith.subf %61, %62 : vector<1x4xf32>
    %cst_34 = arith.constant 0.000000e+00 : f32
    %64 = vector.broadcast %cst_34 : f32 to vector<1x4xf32>
    %65 = arith.maximumf %63, %64 : vector<1x4xf32>
    %cst_35 = arith.constant 9.99999974E-6 : f32
    %66 = vector.broadcast %cst_35 : f32 to vector<1x4xf32>
    %67 = arith.addf %65, %66 : vector<1x4xf32>
    %68 = math.rsqrt %67 : vector<1x4xf32>
    %69 = vector.shape_cast %56 : vector<1x4xf32> to vector<1x1x4xf32>
    %70 = vector.shape_cast %68 : vector<1x4xf32> to vector<1x1x4xf32>
    %71 = vector.broadcast %69 : vector<1x1x4xf32> to vector<16x16x4xf32>
    %72 = arith.subf %51, %71 : vector<16x16x4xf32>
    %73 = vector.broadcast %70 : vector<1x1x4xf32> to vector<16x16x4xf32>
    %74 = arith.mulf %72, %73 : vector<16x16x4xf32>
    %cst_36 = arith.constant 0.000000e+00 : f32
    %75 = vector.broadcast %cst_36 : f32 to vector<16x16x4xf32>
    %76 = arith.maximumf %74, %75 : vector<16x16x4xf32>
    %cst_37 = arith.constant 0.000000e+00 : f32
    %77 = vector.broadcast %cst_37 : f32 to vector<16x16x4xf32>
    %78 = tpu.concatenate %76, %77 in 1 : vector<16x16x4xf32>, vector<16x16x4xf32> -> vector<16x32x4xf32>
    %79 = vector.shape_cast %78 : vector<16x32x4xf32> to vector<512x4xf32>
    %c1_i32_38 = arith.constant 1 : i32
    %80 = tpu.dynamic_rotate %79 by %c1_i32_38 dim 0 : vector<512x4xf32>, i32 -> vector<512x4xf32>
    %81 = vector.shape_cast %80 : vector<512x4xf32> to vector<16x32x4xf32>
    %82 = tpu.iota {dimensions = array<i32: 1>} : vector<1x32x1xi32>
    %c0_i32_39 = arith.constant 0 : i32
    %83 = vector.broadcast %c0_i32_39 : i32 to vector<1x32x1xi32>
    %84 = arith.cmpi eq, %82, %83 : vector<1x32x1xi32>
    %85 = vector.extract_strided_slice %76 {offsets = [0, 1, 0], sizes = [16, 1, 4], strides = [1, 1, 1]} : vector<16x16x4xf32> to vector<16x1x4xf32>
    %86 = vector.shape_cast %84 : vector<1x32x1xi1> to vector<1x32x1xi1>
    %87 = vector.broadcast %86 : vector<1x32x1xi1> to vector<16x32x4xi1>
    %88 = vector.shape_cast %85 : vector<16x1x4xf32> to vector<16x1x4xf32>
    %89 = vector.broadcast %88 : vector<16x1x4xf32> to vector<16x32x4xf32>
    %90 = arith.select %87, %89, %81 : vector<16x32x4xi1>, vector<16x32x4xf32>
    %c17_i32_40 = arith.constant 17 : i32
    %91 = vector.broadcast %c17_i32_40 : i32 to vector<1x32x1xi32>
    %92 = arith.cmpi eq, %82, %91 : vector<1x32x1xi32>
    %93 = vector.extract_strided_slice %76 {offsets = [0, 14, 0], sizes = [16, 1, 4], strides = [1, 1, 1]} : vector<16x16x4xf32> to vector<16x1x4xf32>
    %94 = vector.shape_cast %92 : vector<1x32x1xi1> to vector<1x32x1xi1>
    %95 = vector.broadcast %94 : vector<1x32x1xi1> to vector<16x32x4xi1>
    %96 = vector.shape_cast %93 : vector<16x1x4xf32> to vector<16x1x4xf32>
    %97 = vector.broadcast %96 : vector<16x1x4xf32> to vector<16x32x4xf32>
    %98 = arith.select %95, %97, %90 : vector<16x32x4xi1>, vector<16x32x4xf32>
    %99 = arith.truncf %98 : vector<16x32x4xf32> to vector<16x32x4xbf16>
    %c1_41 = arith.constant 1 : index
    %c0_42 = arith.constant 0 : index
    %c0_43 = arith.constant 0 : index
    %100 = vector.load %arg5[%c1_41, %c0_42, %c0_43] : memref<18x32x4xbf16, #tpu.memory_space<vmem>>, vector<16x32x4xbf16>
    tpu.vector_store %arg5[%c1_41, %c0_42, %c0_43], %99 {strides = array<i32>} : memref<18x32x4xbf16, #tpu.memory_space<vmem>>, vector<16x32x4xbf16>,
    %101 = vector.extract_strided_slice %99 {offsets = [1, 0, 0], sizes = [1, 32, 4], strides = [1, 1, 1]} : vector<16x32x4xbf16> to vector<1x32x4xbf16>
    %c0_44 = arith.constant 0 : index
    %c0_45 = arith.constant 0 : index
    %c0_46 = arith.constant 0 : index
    %102 = vector.load %arg5[%c0_44, %c0_45, %c0_46] : memref<18x32x4xbf16, #tpu.memory_space<vmem>>, vector<1x32x4xbf16>
    tpu.vector_store %arg5[%c0_44, %c0_45, %c0_46], %101 {strides = array<i32>} : memref<18x32x4xbf16, #tpu.memory_space<vmem>>, vector<1x32x4xbf16>,
    %103 = vector.extract_strided_slice %99 {offsets = [14, 0, 0], sizes = [1, 32, 4], strides = [1, 1, 1]} : vector<16x32x4xbf16> to vector<1x32x4xbf16>
    %c17_47 = arith.constant 17 : index
    %c0_48 = arith.constant 0 : index
    %c0_49 = arith.constant 0 : index
    %104 = vector.load %arg5[%c17_47, %c0_48, %c0_49] : memref<18x32x4xbf16, #tpu.memory_space<vmem>>, vector<1x32x4xbf16>
    tpu.vector_store %arg5[%c17_47, %c0_48, %c0_49], %103 {strides = array<i32>} : memref<18x32x4xbf16, #tpu.memory_space<vmem>>, vector<1x32x4xbf16>,
    %c0_50 = arith.constant 0 : index
    %c0_51 = arith.constant 0 : index
    %c0_52 = arith.constant 0 : index
    %105 = vector.load %arg5[%c0_50, %c0_51, %c0_52] : memref<18x32x4xbf16, #tpu.memory_space<vmem>>, vector<16x32x4xbf16>
    %106 = vector.shape_cast %105 : vector<16x32x4xbf16> to vector<512x4xbf16>
    %c1_53 = arith.constant 1 : index
    %c0_54 = arith.constant 0 : index
    %c0_55 = arith.constant 0 : index
    %107 = vector.load %arg5[%c1_53, %c0_54, %c0_55] : memref<18x32x4xbf16, #tpu.memory_space<vmem>>, vector<16x32x4xbf16>
    %108 = vector.shape_cast %107 : vector<16x32x4xbf16> to vector<512x4xbf16>
    %c2_56 = arith.constant 2 : index
    %c0_57 = arith.constant 0 : index
    %c0_58 = arith.constant 0 : index
    %109 = vector.load %arg5[%c2_56, %c0_57, %c0_58] : memref<18x32x4xbf16, #tpu.memory_space<vmem>>, vector<16x32x4xbf16>
    %110 = vector.shape_cast %109 : vector<16x32x4xbf16> to vector<512x4xbf16>
    %111 = tpu.concatenate %106, %108, %110 in 1 : vector<512x4xbf16>, vector<512x4xbf16>, vector<512x4xbf16> -> vector<512x12xbf16>
    %c0_59 = arith.constant 0 : index
    %c0_60 = arith.constant 0 : index
    %c0_61 = arith.constant 0 : index
    %112 = vector.load %arg3[%c0_59, %c0_60, %c0_61] : memref<3x12x4xbf16, #tpu.memory_space<vmem>>, vector<1x12x4xbf16>
    %113 = vector.shape_cast %112 : vector<1x12x4xbf16> to vector<12x4xbf16>
    %cst_62 = arith.constant dense<0.000000e+00> : vector<512x4xf32>
    %114 = tpu.matmul %111, %113, %cst_62 {dimension_numbers = #tpu.dot_dimension_numbers<[1], [0], [0], [1], [0, 0, 1, 1], [], []>} : vector<512x12xbf16>, vector<12x4xbf16>, vector<512x4xf32> -> vector<512x4xf32>
    %c1_63 = arith.constant 1 : index
    %c0_64 = arith.constant 0 : index
    %c0_65 = arith.constant 0 : index
    %115 = vector.load %arg3[%c1_63, %c0_64, %c0_65] : memref<3x12x4xbf16, #tpu.memory_space<vmem>>, vector<1x12x4xbf16>
    %116 = vector.shape_cast %115 : vector<1x12x4xbf16> to vector<12x4xbf16>
    %cst_66 = arith.constant dense<0.000000e+00> : vector<512x4xf32>
    %117 = tpu.matmul %111, %116, %cst_66 {dimension_numbers = #tpu.dot_dimension_numbers<[1], [0], [0], [1], [0, 0, 1, 1], [], []>} : vector<512x12xbf16>, vector<12x4xbf16>, vector<512x4xf32> -> vector<512x4xf32>
    %c511_i32_67 = arith.constant 511 : i32
    %118 = tpu.dynamic_rotate %117 by %c511_i32_67 dim 0 : vector<512x4xf32>, i32 -> vector<512x4xf32>
    %119 = arith.addf %114, %118 : vector<512x4xf32>
    %c2_68 = arith.constant 2 : index
    %c0_69 = arith.constant 0 : index
    %c0_70 = arith.constant 0 : index
    %120 = vector.load %arg3[%c2_68, %c0_69, %c0_70] : memref<3x12x4xbf16, #tpu.memory_space<vmem>>, vector<1x12x4xbf16>
    %121 = vector.shape_cast %120 : vector<1x12x4xbf16> to vector<12x4xbf16>
    %cst_71 = arith.constant dense<0.000000e+00> : vector<512x4xf32>
    %122 = tpu.matmul %111, %121, %cst_71 {dimension_numbers = #tpu.dot_dimension_numbers<[1], [0], [0], [1], [0, 0, 1, 1], [], []>} : vector<512x12xbf16>, vector<12x4xbf16>, vector<512x4xf32> -> vector<512x4xf32>
    %c510_i32_72 = arith.constant 510 : i32
    %123 = tpu.dynamic_rotate %122 by %c510_i32_72 dim 0 : vector<512x4xf32>, i32 -> vector<512x4xf32>
    %124 = arith.addf %119, %123 : vector<512x4xf32>
    %125 = vector.shape_cast %124 : vector<512x4xf32> to vector<16x32x4xf32>
    %126 = vector.extract_strided_slice %125 {offsets = [0, 0, 0], sizes = [16, 16, 4], strides = [1, 1, 1]} : vector<16x32x4xf32> to vector<16x16x4xf32>
    %127 = vector.shape_cast %126 : vector<16x16x4xf32> to vector<256x4xf32>
    %cst_73 = arith.constant dense<0.000000e+00> : vector<4xf32>
    %128 = vector.multi_reduction <add>, %127, %cst_73 [0] : vector<256x4xf32> to vector<4xf32>
    %129 = vector.shape_cast %128 : vector<4xf32> to vector<1x4xf32>
    %cst_74 = arith.constant 3.906250e-03 : f32
    %130 = vector.broadcast %cst_74 : f32 to vector<1x4xf32>
    %131 = arith.mulf %129, %130 : vector<1x4xf32>
    %132 = arith.mulf %127, %127 : vector<256x4xf32>
    %cst_75 = arith.constant dense<0.000000e+00> : vector<4xf32>
    %133 = vector.multi_reduction <add>, %132, %cst_75 [0] : vector<256x4xf32> to vector<4xf32>
    %134 = vector.shape_cast %133 : vector<4xf32> to vector<1x4xf32>
    %cst_76 = arith.constant 3.906250e-03 : f32
    %135 = vector.broadcast %cst_76 : f32 to vector<1x4xf32>
    %136 = arith.mulf %134, %135 : vector<1x4xf32>
    %137 = arith.mulf %131, %131 : vector<1x4xf32>
    %138 = arith.subf %136, %137 : vector<1x4xf32>
    %cst_77 = arith.constant 0.000000e+00 : f32
    %139 = vector.broadcast %cst_77 : f32 to vector<1x4xf32>
    %140 = arith.maximumf %138, %139 : vector<1x4xf32>
    %cst_78 = arith.constant 9.99999974E-6 : f32
    %141 = vector.broadcast %cst_78 : f32 to vector<1x4xf32>
    %142 = arith.addf %140, %141 : vector<1x4xf32>
    %143 = math.rsqrt %142 : vector<1x4xf32>
    %144 = vector.shape_cast %131 : vector<1x4xf32> to vector<1x1x4xf32>
    %145 = vector.shape_cast %143 : vector<1x4xf32> to vector<1x1x4xf32>
    %c0_79 = arith.constant 0 : index
    %c0_80 = arith.constant 0 : index
    %c0_81 = arith.constant 0 : index
    %c0_82 = arith.constant 0 : index
    %146 = vector.load %arg1[%c0_79, %c0_80, %c0_81, %c0_82] : memref<1x16x16x4xf32, #tpu.memory_space<vmem>>, vector<1x16x16x4xf32>
    %147 = vector.shape_cast %146 : vector<1x16x16x4xf32> to vector<16x16x4xf32>
    %148 = vector.broadcast %144 : vector<1x1x4xf32> to vector<16x16x4xf32>
    %149 = arith.subf %126, %148 : vector<16x16x4xf32>
    %150 = vector.broadcast %145 : vector<1x1x4xf32> to vector<16x16x4xf32>
    %151 = arith.mulf %149, %150 : vector<16x16x4xf32>
    %152 = arith.addf %147, %151 : vector<16x16x4xf32>
    %c0_83 = arith.constant 0 : index
    %c0_84 = arith.constant 0 : index
    %c0_85 = arith.constant 0 : index
    %c0_86 = arith.constant 0 : index
    %153 = vector.load %arg4[%c0_83, %c0_84, %c0_85, %c0_86] : memref<1x16x16x4xf32, #tpu.memory_space<vmem>>, vector<1x16x16x4xf32>
    %154 = vector.shape_cast %153 : vector<1x16x16x4xf32> to vector<16x16x4xf32>
    %155 = vector.shape_cast %152 : vector<16x16x4xf32> to vector<1x16x16x4xf32>
    tpu.vector_store %arg4[%c0_83, %c0_84, %c0_85, %c0_86], %155 {strides = array<i32>} : memref<1x16x16x4xf32, #tpu.memory_space<vmem>>, vector<1x16x16x4xf32>,
    return
  }
  func.func @transform_0(%arg0: i32) -> (i32, i32, i32, i32) {
    %c0_i32 = arith.constant 0 : i32
    %c0_i32_0 = arith.constant 0 : i32
    %c0_i32_1 = arith.constant 0 : i32
    %c0_i32_2 = arith.constant 0 : i32
    return %arg0, %c0_i32, %c0_i32_0, %c0_i32_1 : i32, i32, i32, i32
  }
  func.func @transform_1(%arg0: i32) -> (i32, i32, i32) {
    %c0_i32 = arith.constant 0 : i32
    %c0_i32_0 = arith.constant 0 : i32
    %c0_i32_1 = arith.constant 0 : i32
    %c0_i32_2 = arith.constant 0 : i32
    return %c0_i32, %c0_i32_0, %c0_i32_1 : i32, i32, i32
  }
  func.func @transform_2(%arg0: i32) -> (i32, i32, i32) {
    %c0_i32 = arith.constant 0 : i32
    %c0_i32_0 = arith.constant 0 : i32
    %c0_i32_1 = arith.constant 0 : i32
    %c0_i32_2 = arith.constant 0 : i32
    return %c0_i32, %c0_i32_0, %c0_i32_1 : i32, i32, i32
  }
  func.func @transform_3(%arg0: i32) -> (i32, i32, i32, i32) {
    %c0_i32 = arith.constant 0 : i32
    %c0_i32_0 = arith.constant 0 : i32
    %c0_i32_1 = arith.constant 0 : i32
    %c0_i32_2 = arith.constant 0 : i32
    return %arg0, %c0_i32, %c0_i32_0, %c0_i32_1 : i32, i32, i32, i32
  }
}

</mosaic_0001>

<bundles_post_ra>
// kernel: tpu_custom_call.1
= control target key start
LH: loop header
LB: loop body
LE: loop exit
PB: predicated region body
PF: predicated region fallthrough
CT: control target
= control target key end

     0   :  { %s6312_s12 = smov 0   ;;  %s8947_s0 = inlined_call_operand.vmem [shape: f32[2,16,16,4], index: 0, kind: input, shape index: {}]   ;;  %s8948_s1 = inlined_call_operand.vmem [shape: bf16[3,12,4], index: 1, kind: input, shape index: {}]   ;;  %s8949_s2 = inlined_call_operand.vmem [shape: bf16[3,12,4], index: 2, kind: input, shape index: {}]   ;;  %s8950_s3 = inlined_call_operand.vmem [shape: f32[2,16,16,4], index: 3, kind: output, shape index: {}]  }
   0x1 LB: > { %s5061_s13 = sadd.s32 4294967295, %s6287_s12   ;;  %p5065_p0 = scmp.ge.s32.totalorder %s6287_s12, 1  ;;  %s6287_s12 = sphi %s6312_s12, %s13_s12  }
   0x2   : > { %p137_p1 = scmp.lt.s32.totalorder %s6287_s12, 3 }
   0x4   : > { %p138_p2 = pnand %p5065_p0, %p137_p1 }
   0x6   : > { %141 = sbr.rel (%p138_p2) target bundleno = 1959 (0x7a7), region = 32 }
   0xb   : > { %p161_p3 = scmp.lt.s32.totalorder %s5061_s13, 1  ;;  %v236_v0 = vlaneseq  ;;  %vm539_vm0 = vcmask 27648   ;;  %v8951_v1 = vmov 0.0|0.0   ;;  %s6290_s18 = smov 4   ;;  %vm1651_vm4 = vcmask 1045504  }
   0xc   : > { %575 = vst.msk [vmem:[#allocation2 + $0x9c] sm:$0xf] %vm539_vm0, %v8951_v1  ;;  %s6291_s19 = smov 8   ;;  %vm1414_vm5 = vcmask 31744   ;;  %vm1511_vm6 = vcmask 64512   ;;  %vm1586_vm7 = vcmask 97280  }
   0xd   : > { %s9068_s13 = smov (!%p161_p3, %s5061_s13), 1  ;;  %v6324_v2 = vshrl.u32 %v236_v0, 7  ;;  %543 = vst.msk [vmem:[#allocation2 + $0x1c] sm:$0xf] %vm539_vm0, %v8951_v1 }
   0xe   : > { %547 = vst.msk [vmem:[#allocation2 + $0x2c] sm:$0xf] %vm539_vm0, %v8951_v1  ;;  %s6064_s14 = sshll.u32 %s9068_s13, 8 }
   0xf   : > { %s6336_s17 = scalar_lea.vmem %s8947_s0, %s6064_s14  ;;  %vm238_vm1 = vcmp.lt.s32.totalorder %v6324_v2, 1  ;;  %v6340_v3 = vadd.s32 16, %v6324_v2  ;;  %551 = vst.msk [vmem:[#allocation2 + $0x3c] sm:$0xf] %vm539_vm0, %v8951_v1  ;;  %vm290_vm2 = vcmp.eq.s32.totalorder %v6324_v2, 0  ;;  %vm1856_vm8 = vcmp.lt.s32.totalorder %v6324_v2, 7  ;;  %s8773_s23 = scalar_lea.vmem %s8950_s3, %s6064_s14 }
  0x10   : > { %v188_v4 = vld [vmem:[%s6336_s17 + $0x80] sm:$0xff]  ;;  %v189_v5 = vld [vmem:[%s6336_s17 + $0x88] sm:$0xff]  ;;  %v190_v6 = vld [vmem:[%s6336_s17 + $0x90] sm:$0xff]  ;;  %555 = vst.msk [vmem:[#allocation2 + $0x4c] sm:$0xf] %vm539_vm0, %v8951_v1  ;;  %vm2246_vm9 = vcmp.lt.s32.totalorder %v6324_v2, 6 }
  0x11   : > { %8992 = vst [vmem:[#allocation3_spill] sm:$0xff] %v6340_v3  ;;  %v220_v7 = vrot.slane %v188_v4, 7  ;;  %v221_v8 = vrot.slane %v189_v5, 7  ;;  %v310_v9 = vperm.slane %v188_v4, 1  ;;  %v191_v10 = vld [vmem:[%s6336_s17 + $0x98] sm:$0xff]  ;;  %v222_v11 = vrot.slane %v190_v6, 7 }
  0x12   : > { %v223_v12 = vrot.slane %v191_v10, 7  ;;  %v311_v13 = vperm.slane %v190_v6, 1  ;;  %vm384_vm3 = vcmp.eq.s32.totalorder %v6340_v3, 17  ;;  %v402_v14 = vperm.slane %v189_v5, 6  ;;  %559 = vst.msk [vmem:[#allocation2 + $0x5c] sm:$0xf] %vm539_vm0, %v8951_v1 }
  0x13   : > { %v261_v15 = vsel %vm238_vm1, %v220_v7, %v221_v8  ;;  %v262_v16 = vsel %vm238_vm1, 0.0, %v220_v7  ;;  %v259_v17 = vsel %vm238_vm1, 0.0, %v222_v11  ;;  %v260_v18 = vsel %vm238_vm1, %v221_v8, 0.0  ;;  %563 = vst.msk [vmem:[#allocation2 + $0x6c] sm:$0xf] %vm539_vm0, %v8951_v1  ;;  %v193_v23 = vld [vmem:[%s6336_s17 + $0xa8] sm:$0xff] }
  0x14   : > { %v350_v19 = vsel %vm290_vm2, %v310_v9, %v262_v16  ;;  %v507_v20 = vpack.c.bf16 %v261_v15, %v261_v15  ;;  %v258_v21 = vsel %vm238_vm1, %v222_v11, %v223_v12  ;;  %v354_v22 = vsel %vm290_vm2, %v311_v13, %v259_v17  ;;  %567 = vst.msk [vmem:[#allocation2 + $0x7c] sm:$0xf] %vm539_vm0, %v8951_v1  ;;  %v192_v28 = vld [vmem:[%s6336_s17 + $0xa0] sm:$0xff]  ;;  %v194_v31 = vld [vmem:[%s6336_s17 + $0xb0] sm:$0xff]  ;;  %v195_v39 = vld [vmem:[%s6336_s17 + $0xb8] sm:$0xff] }
  0x15   : > { %v506_v24 = vpack.c.bf16 %v350_v19, %v350_v19  ;;  %v510_v25 = vpack.c.bf16 %v354_v22, %v354_v22  ;;  %v511_v26 = vpack.c.bf16 %v258_v21, %v258_v21  ;;  %v444_v27 = vsel %vm384_vm3, %v402_v14, %v260_v18  ;;  %571 = vst.msk [vmem:[#allocation2 + $0x8c] sm:$0xf] %vm539_vm0, %v8951_v1  ;;  %v196_v51 = vld [vmem:[%s6336_s17 + $0xc0] sm:$0xff]  ;;  %v6420_v55 = vld [vmem:[%s6336_s17 + $0xc8] sm:$0xff] }
  0x16   : > { %573 = vst.msk [vmem:[#allocation2 + $0x94] sm:$0xf] %vm539_vm0, %v507_v20  ;;  %v508_v29 = vpack.c.bf16 %v444_v27, %v444_v27  ;;  %v225_v30 = vrot.slane %v193_v23, 7  ;;  %v224_v32 = vrot.slane %v192_v28, 7  ;;  %v403_v33 = vperm.slane %v191_v10, 6 }
  0x17   : > { %572 = vst.msk [vmem:[#allocation2 + $0x90] sm:$0xf] %vm539_vm0, %v506_v24  ;;  %v257_v34 = vsel %vm238_vm1, %v223_v12, 0.0  ;;  %v404_v35 = vperm.slane %v193_v23, 6  ;;  %v226_v36 = vrot.slane %v194_v31, 7  ;;  %v312_v38 = vperm.slane %v192_v28, 1 }
  0x18   : > { %576 = vst.msk [vmem:[#allocation2 + $0xa0] sm:$0xf] %vm539_vm0, %v510_v25  ;;  %v254_v37 = vsel %vm238_vm1, %v225_v30, 0.0  ;;  %v256_v40 = vsel %vm238_vm1, 0.0, %v224_v32  ;;  %v448_v41 = vsel %vm384_vm3, %v403_v33, %v257_v34  ;;  %v313_v42 = vperm.slane %v194_v31, 1  ;;  %v186_v23 = vld [vmem:[%s6336_s17 + $0x70] sm:$0xff] }
  0x19   : > { %577 = vst.msk [vmem:[#allocation2 + $0xa4] sm:$0xf] %vm539_vm0, %v511_v26  ;;  %v452_v44 = vsel %vm384_vm3, %v404_v35, %v254_v37  ;;  %v227_v45 = vrot.slane %v195_v39, 7  ;;  %v253_v46 = vsel %vm238_vm1, 0.0, %v226_v36  ;;  %v358_v47 = vsel %vm290_vm2, %v312_v38, %v256_v40  ;;  %v187_v24 = vld [vmem:[%s6336_s17 + $0x78] sm:$0xff] }
  0x1a   : > { %574 = vst.msk [vmem:[#allocation2 + $0x98] sm:$0xf] %vm539_vm0, %v508_v29  ;;  %v512_v48 = vpack.c.bf16 %v448_v41, %v448_v41  ;;  %v255_v50 = vsel %vm238_vm1, %v224_v32, %v225_v30  ;;  %v516_v53 = vpack.c.bf16 %v452_v44, %v452_v44  ;;  %v362_v54 = vsel %vm290_vm2, %v313_v42, %v253_v46  ;;  %v5458_v37 = vld [vmem:[%s8948_s1 + $0x8] sm:$0xf]  ;;  %v6163_v38 = vld [vmem:[%s8948_s1 + $0x8] sm:$0x30] }
  0x1b   : > { %579 = vst.msk [vmem:[#allocation2 + $0xac] sm:$0xf] %vm539_vm0, %v8951_v1  ;;  %v228_v56 = vrot.slane %v196_v51, 7  ;;  %v314_v57 = vperm.slane %v196_v51, 1  ;;  %v514_v58 = vpack.c.bf16 %v358_v47, %v358_v47  ;;  %v252_v59 = vsel %vm238_vm1, %v226_v36, %v227_v45  ;;  %v5494_v40 = vld [vmem:[%s8948_s1] sm:$0xf] }
  0x1c   : > { %583 = vst.msk [vmem:[#allocation2 + $0xbc] sm:$0xf] %vm539_vm0, %v8951_v1  ;;  %v229_v60 = vrot.slane %v6420_v55, 7  ;;  %v515_v61 = vpack.c.bf16 %v255_v50, %v255_v50  ;;  %v518_v0 = vpack.c.bf16 %v362_v54, %v362_v54  ;;  %v519_v6 = vpack.c.bf16 %v252_v59, %v252_v59  ;;  %v6162_v41 = vld [vmem:[%s8948_s1] sm:$0x30] }
  0x1d   : > { %587 = vst.msk [vmem:[#allocation2 + $0xcc] sm:$0xf] %vm539_vm0, %v8951_v1  ;;  %v250_v62 = vsel %vm238_vm1, 0.0, %v228_v56  ;;  %v251_v7 = vsel %vm238_vm1, %v227_v45, 0.0  ;;  %v405_v8 = vperm.slane %v195_v39, 6  ;;  %v218_v25 = vrot.slane %v186_v23, 7 }
  0x1e   : > { %v6114_v43 = vld [vmem:[#allocation2 + $0x90] sm:$0xff]  ;;  %591 = vst.msk [vmem:[#allocation2 + $0xdc] sm:$0xf] %vm539_vm0, %v8951_v1  ;;  %v249_v4 = vsel %vm238_vm1, %v228_v56, %v229_v60  ;;  %v366_v5 = vsel %vm290_vm2, %v314_v57, %v250_v62  ;;  %v219_v26 = vrot.slane %v187_v24, 7  ;;  %v309_v27 = vperm.slane %v186_v23, 1 }
  0x1f   : > { %595 = vst.msk [vmem:[#allocation2 + $0xec] sm:$0xf] %vm539_vm0, %v8951_v1  ;;  %1158 = vrot.lane.b32.xlu0 %v6114_v43, %s6290_s18  ;;  %v522_v9 = vpack.c.bf16 %v366_v5, %v366_v5  ;;  %v523_v10 = vpack.c.bf16 %v249_v4, %v249_v4  ;;  %v456_v11 = vsel %vm384_vm3, %v405_v8, %v251_v7  ;;  %v265_v28 = vsel %vm238_vm1, 0.0, %v218_v25  ;;  %v5532_v50 = vld [vmem:[%s8948_s1 + $0x10] sm:$0xf] }
  0x20   : > { %599 = vst.msk [vmem:[#allocation2 + $0xfc] sm:$0xf] %vm539_vm0, %v8951_v1  ;;  %v6116_v49 = vld [vmem:[#allocation2 + $0xa0] sm:$0xff]  ;;  %v520_v12 = vpack.c.bf16 %v456_v11, %v456_v11  ;;  %v264_v29 = vsel %vm238_vm1, %v218_v25, %v219_v26  ;;  %v346_v30 = vsel %vm290_vm2, %v309_v27, %v265_v28  ;;  %v406_v33 = vperm.slane %v6420_v55, 6  ;;  %v6164_v51 = vld [vmem:[%s8948_s1 + $0x10] sm:$0x30] }
  0x21   : > { %v6115_v52 = vld [vmem:[#allocation2 + $0x98] sm:$0xff]  ;;  %603 = vst.msk [vmem:[#allocation2 + $0x10c] sm:$0xf] %vm539_vm0, %v8951_v1  ;;  %1162 = vrot.lane.b32.xlu2 %v6116_v49, %s6290_s18  ;;  %v6146_v63 = vld [vmem:[#allocation2 + $0xa0] sm:$0xff]  ;;  %v502_v31 = vpack.c.bf16 %v346_v30, %v346_v30  ;;  %v503_v32 = vpack.c.bf16 %v264_v29, %v264_v29  ;;  %v248_v34 = vsel %vm238_vm1, %v229_v60, 0.0  ;;  %v5459_v39 = vor.u32 %v6163_v38, %v5458_v37  ;;  %v6084_v37 = vld [vmem:[#allocation2 + $0x90] sm:$0xff] }
  0x22   : > { %607 = vst.msk [vmem:[#allocation2 + $0xc] sm:$0xf] %vm539_vm0, %v8951_v1  ;;  %1160 = vrot.lane.b32.xlu1 %v6115_v52, %s6290_s18  ;;  %v460_v35 = vsel %vm384_vm3, %v406_v33, %v248_v34  ;;  %v401_v42 = vperm.slane %v187_v24, 6  ;;  %v5495_v43 = vor.u32 %v6162_v41, %v5494_v40  ;;  %v263_v44 = vsel %vm238_vm1, %v219_v26, 0.0  ;;  %v199_v55 = vld [vmem:[%s6336_s17 + $0xd8] sm:$0xff]  ;;  %v202_v40 = vld [vmem:[%s6336_s17 + $0xf0] sm:$0xff] }
  0x23   : > { %612 = vst.msk [vmem:[#allocation2 + $0x11c] sm:$0xf] %vm539_vm0, %v8951_v1  ;;  %v524_v36 = vpack.c.bf16 %v460_v35, %v460_v35  ;;  %v1653_v46 = vsel %vm1651_vm4, %v5459_v39, 0  ;;  %v5533_v52 = vor.u32 %v6164_v51, %v5532_v50  ;;  %v231_v56 = vrot.slane %v199_v55, 7  ;;  %v6083_v28 = vld [vmem:[#allocation2 + $0x88] sm:$0xf0] }
  0x24   : > { %578 = vst.msk [vmem:[#allocation2 + $0xa8] sm:$0xf] %vm539_vm0, %v512_v48  ;;  %v440_v47 = vsel %vm384_vm3, %v401_v42, %v263_v44  ;;  %6264 = vmatpush.bf16.msra.mxu2 %v1653_v46  ;;  %v1895_v48 = vsel %vm1651_vm4, %v5495_v43, 0  ;;  %1662 = vmatpush.bf16.msra.mxu0 %v1653_v46  ;;  %v407_v57 = vperm.slane %v199_v55, 6  ;;  %v203_v41 = vld [vmem:[%s6336_s17 + $0xf8] sm:$0xff]  ;;  %v234_v42 = vrot.slane %v202_v40, 7 }
  0x25   : > { %582 = vst.msk [vmem:[#allocation2 + $0xb8] sm:$0xf] %vm539_vm0, %v516_v53  ;;  %v504_v49 = vpack.c.bf16 %v440_v47, %v440_v47  ;;  %6265 = vmatpush.bf16.msra.mxu3 %v1895_v48  ;;  %1904 = vmatpush.bf16.msra.mxu1 %v1895_v48  ;;  %v2043_v53 = vsel %vm1651_vm4, %v5533_v52, 0  ;;  %v235_v43 = vrot.slane %v203_v41, 7  ;;  %v317_v44 = vperm.slane %v202_v40, 1 }
  0x26   : > { %580 = vst.msk [vmem:[#allocation2 + $0xb0] sm:$0xf] %vm539_vm0, %v514_v58  ;;  %v245_v58 = vsel %vm238_vm1, %v231_v56, 0.0  ;;  %v241_v46 = vsel %vm238_vm1, 0.0, %v234_v42 }
  0x27   : > { %581 = vst.msk [vmem:[#allocation2 + $0xb4] sm:$0xf] %vm539_vm0, %v515_v61  ;;  %1382 = vrot.lane.b32.xlu0 %v6146_v63, %s6291_s19  ;;  %v464_v61 = vsel %vm384_vm3, %v407_v57, %v245_v58  ;;  %v198_v63 = vld [vmem:[%s6336_s17 + $0xd0] sm:$0xff]  ;;  %v378_v50 = vsel %vm290_vm2, %v317_v44, %v241_v46 }
  0x28   : > { %584 = vst.msk [vmem:[#allocation2 + $0xc0] sm:$0xf] %vm539_vm0, %v518_v0  ;;  %2052 = vmatpush.bf16.msrb.mxu2 %v2043_v53  ;;  %v528_v62 = vpack.c.bf16 %v464_v61, %v464_v61  ;;  %v230_v0 = vrot.slane %v198_v63, 7  ;;  %v315_v5 = vperm.slane %v198_v63, 1  ;;  %v534_v52 = vpack.c.bf16 %v378_v50, %v378_v50 }
  0x29   : > { %585 = vst.msk [vmem:[#allocation2 + $0xc4] sm:$0xf] %vm539_vm0, %v519_v6 }
  0x2a   : > { %588 = vst.msk [vmem:[#allocation2 + $0xd0] sm:$0xf] %vm539_vm0, %v522_v9  ;;  %v247_v6 = vsel %vm238_vm1, 0.0, %v230_v0  ;;  %v246_v7 = vsel %vm238_vm1, %v230_v0, %v231_v56  ;;  %v409_v0 = vperm.slane %v203_v41, 6 }
  0x2b   : > { %v6147_v13 = vld [vmem:[#allocation2 + $0xa8] sm:$0xff]  ;;  %589 = vst.msk [vmem:[#allocation2 + $0xd4] sm:$0xf] %vm539_vm0, %v523_v10  ;;  %v370_v8 = vsel %vm290_vm2, %v315_v5, %v247_v6  ;;  %v527_v10 = vpack.c.bf16 %v246_v7, %v246_v7 }
  0x2c   : > { %v6117_v14 = vld [vmem:[#allocation2 + $0xa8] sm:$0xff]  ;;  %586 = vst.msk [vmem:[#allocation2 + $0xc8] sm:$0xf] %vm539_vm0, %v520_v12  ;;  %1384 = vrot.lane.b32.xlu1 %v6147_v13, %s6291_s19  ;;  %v6149_v16 = vld [vmem:[#allocation2 + $0xb8] sm:$0xff]  ;;  %v526_v9 = vpack.c.bf16 %v370_v8, %v370_v8  ;;  %v200_v13 = vld [vmem:[%s6336_s17 + $0xe0] sm:$0xff] }
  0x2d   : > { %v6119_v19 = vld [vmem:[#allocation2 + $0xb8] sm:$0xff]  ;;  %568 = vst.msk [vmem:[#allocation2 + $0x80] sm:$0xf] %vm539_vm0, %v502_v31  ;;  %v6087_v51 = vld [vmem:[#allocation2 + $0xa8] sm:$0xff]  ;;  %v6086_v8 = vld [vmem:[#allocation2 + $0xa0] sm:$0xff] }
  0x2e   : > { %v6148_v15 = vld [vmem:[#allocation2 + $0xb0] sm:$0xff]  ;;  %569 = vst.msk [vmem:[#allocation2 + $0x84] sm:$0xf] %vm539_vm0, %v503_v32 }
  0x2f   : > { %1164 = vrot.lane.b32.xlu0 %v6117_v14, %s6290_s18  ;;  %1386 = vrot.lane.b32.xlu2 %v6148_v15, %s6291_s19  ;;  %v6118_v18 = vld [vmem:[#allocation2 + $0xb0] sm:$0xff]  ;;  %590 = vst.msk [vmem:[#allocation2 + $0xd8] sm:$0xf] %vm539_vm0, %v524_v36  ;;  %v6525_v14 = vld [vmem:[%s6336_s17 + $0xe8] sm:$0xff]  ;;  %v232_v15 = vrot.slane %v200_v13, 7 }
  0x30   : > { %v6150_v17 = vld [vmem:[#allocation2 + $0xc0] sm:$0xff]  ;;  %570 = vst.msk [vmem:[#allocation2 + $0x88] sm:$0xf] %vm539_vm0, %v504_v49  ;;  %v240_v49 = vsel %vm238_vm1, %v234_v42, %v235_v43  ;;  %v408_v55 = vperm.slane %v6525_v14, 6 }
  0x31   : > { %v6120_v20 = vld [vmem:[#allocation2 + $0xc0] sm:$0xff]  ;;  %594 = vst.msk [vmem:[#allocation2 + $0xe8] sm:$0xf] %vm539_vm0, %v528_v62  ;;  %v535_v53 = vpack.c.bf16 %v240_v49, %v240_v49 }
  0x32   : > { %v6152_v22 = vld [vmem:[#allocation2 + $0xd0] sm:$0xff]  ;;  %592 = vst.msk [vmem:[#allocation2 + $0xe0] sm:$0xf] %vm539_vm0, %v526_v9 }
  0x33   : > { %v6151_v21 = vld [vmem:[#allocation2 + $0xc8] sm:$0xff]  ;;  %v6122_v54 = vld [vmem:[#allocation2 + $0xd0] sm:$0xff]  ;;  %593 = vst.msk [vmem:[#allocation2 + $0xe4] sm:$0xf] %vm539_vm0, %v527_v10 }
  0x34   : > { %1388 = vrot.lane.b32.xlu1 %v6149_v16, %s6291_s19  ;;  %v6121_v59 = vld [vmem:[#allocation2 + $0xc8] sm:$0xff]  ;;  %2936 = vst.msk [vmem:[#allocation2 + $0xac] sm:$0xf] %vm539_vm0, %v8951_v1 }
  0x35   : > { %v6082_v11 = vld [vmem:[#allocation2 + $0x80] sm:$0xff]  ;;  %600 = vst.msk [vmem:[#allocation2 + $0x100] sm:$0xf] %vm539_vm0, %v534_v52 }
  0x36   : > { %v6153_v45 = vld [vmem:[#allocation2 + $0xd8] sm:$0xff]  ;;  %601 = vst.msk [vmem:[#allocation2 + $0x104] sm:$0xf] %vm539_vm0, %v535_v53 }
  0x37   : > { %1390 = vrot.lane.b32.xlu0 %v6150_v17, %s6291_s19  ;;  %1166 = vrot.lane.b32.xlu2 %v6118_v18, %s6290_s18  ;;  %v6123_v60 = vld [vmem:[#allocation2 + $0xd8] sm:$0xff]  ;;  %v233_v18 = vrot.slane %v6525_v14, 7  ;;  %v5140_v29 = vld [vmem:[#allocation2 + $0x88] sm:$0xf] }
  0x38   : > { %v6155_v12 = vld [vmem:[#allocation2 + $0xe8] sm:$0xff]  ;;  %v5141_v30 = vor.u32 %v6083_v28, %v5140_v29 }
  0x39   : > { %v6125_v35 = vld [vmem:[#allocation2 + $0xe8] sm:$0xff]  ;;  %v242_v57 = vsel %vm238_vm1, %v233_v18, 0.0 }
  0x3a   : > { %v6154_v27 = vld [vmem:[#allocation2 + $0xe0] sm:$0xff]  ;;  %v468_v58 = vsel %vm384_vm3, %v408_v55, %v242_v57 }
  0x3b   : > { %v6124_v47 = vld [vmem:[#allocation2 + $0xe0] sm:$0xff] }
  0x3c   : > { %1168 = vrot.lane.b32.xlu1 %v6119_v19, %s6290_s18  ;;  %v316_v19 = vperm.slane %v200_v13, 1 }
  0x3d   : > { %v6158_v62 = vld [vmem:[#allocation2 + $0x100] sm:$0xff] }
  0x3e   : > { %v6128_v14 = vld [vmem:[#allocation2 + $0x100] sm:$0xff] }
  0x3f   : > { %1170 = vrot.lane.b32.xlu0 %v6120_v20, %s6290_s18  ;;  %1392 = vrot.lane.b32.xlu2 %v6151_v21, %s6291_s19  ;;  %v244_v21 = vsel %vm238_vm1, 0.0, %v232_v15 }
  0x40   : > { %v374_v23 = vsel %vm290_vm2, %v316_v19, %v244_v21  ;;  %v6618_v21 = vld [vmem:[%s6336_s17 + $0x18] sm:$0xff] }
  0x41   : > { %v530_v24 = vpack.c.bf16 %v374_v23, %v374_v23  ;;  %v207_v23 = vrot.slane %v6618_v21, 7 }
  0x43   : > { %596 = vst.msk [vmem:[#allocation2 + $0xf0] sm:$0xf] %vm539_vm0, %v530_v24 }
  0x44   : > { %1394 = vrot.lane.b32.xlu1 %v6152_v22, %s6291_s19  ;;  %v243_v22 = vsel %vm238_vm1, %v232_v15, %v233_v18  ;;  %609 = vst.msk [vmem:[#allocation2 + $0x110] sm:$0xf] %vm539_vm0, %v530_v24  ;;  %v6610_v15 = vld [vmem:[#allocation2 + $0xb8] sm:$0xff] }
  0x45   : > { %v531_v25 = vpack.c.bf16 %v243_v22, %v243_v22  ;;  %2940 = vst.msk [vmem:[#allocation2 + $0xbc] sm:$0xf] %vm539_vm0, %v8951_v1 }
  0x47   : > { %1396 = vrot.lane.b32.xlu0 %v6153_v45, %s6291_s19  ;;  %1172 = vrot.lane.b32.xlu2 %v6121_v59, %s6290_s18  ;;  %597 = vst.msk [vmem:[#allocation2 + $0xf4] sm:$0xf] %vm539_vm0, %v531_v25  ;;  %v532_v59 = vpack.c.bf16 %v468_v58, %v468_v58 }
  0x48   : > { %610 = vst.msk [vmem:[#allocation2 + $0x114] sm:$0xf] %vm539_vm0, %v531_v25 }
  0x49   : > { %598 = vst.msk [vmem:[#allocation2 + $0xf8] sm:$0xf] %vm539_vm0, %v532_v59 }
  0x4a   : > { %611 = vst.msk [vmem:[#allocation2 + $0x118] sm:$0xf] %vm539_vm0, %v532_v59  ;;  %v176_v59 = vld [vmem:[%s6336_s17 + $0x20] sm:$0xff] }
  0x4c   : > { %1174 = vrot.lane.b32.xlu1 %v6122_v54, %s6290_s18  ;;  %v6085_v54 = vld [vmem:[#allocation2 + $0x98] sm:$0xff] }
  0x4e   : > { %v6156_v31 = vld [vmem:[#allocation2 + $0xf0] sm:$0xff] }
  0x4f   : > { %1176 = vrot.lane.b32.xlu0 %v6123_v60, %s6290_s18  ;;  %1398 = vrot.lane.b32.xlu2 %v6154_v27, %s6291_s19  ;;  %v6126_v48 = vld [vmem:[#allocation2 + $0xf0] sm:$0xff] }
  0x50   : > { %v6157_v7 = vld [vmem:[#allocation2 + $0xf8] sm:$0xff]  ;;  %v6160_v50 = vld [vmem:[#allocation2 + $0x110] sm:$0xff] }
  0x54   : > { %1400 = vrot.lane.b32.xlu1 %v6155_v12, %s6291_s19 }
  0x57   : > { %1402 = vrot.lane.b32.xlu0 %v6156_v31, %s6291_s19  ;;  %1178 = vrot.lane.b32.xlu2 %v6124_v47, %s6290_s18 }
  0x5c   : > { %1180 = vrot.lane.b32.xlu1 %v6125_v35, %s6290_s18  ;;  %v6088_v35 = vld [vmem:[#allocation2 + $0xb0] sm:$0xff] }
  0x5f   : > { %1182 = vrot.lane.b32.xlu0 %v6126_v48, %s6290_s18  ;;  %1404 = vrot.lane.b32.xlu2 %v6157_v7, %s6291_s19  ;;  %v172_v48 = vld [vmem:[%s6336_s17] sm:$0xff] }
  0x60   : > { %v204_v49 = vrot.slane %v172_v48, 7 }
  0x62   : > { %v286_v52 = vsel %vm238_vm1, 0.0, %v204_v49 }
  0x64   : > { %1406 = vrot.lane.b32.xlu1 %v6158_v62, %s6291_s19  ;;  %v177_v62 = vld [vmem:[%s6336_s17 + $0x28] sm:$0xff] }
  0x6c   : > { %1186 = vrot.lane.b32.xlu1 %v6128_v14, %s6290_s18 }
  0x7b   : > { %v1163_v36 = vpop.permute.xlu2 %1162 }
  0x7c   : > { %v1471_v38 = vsel %vm1414_vm5, %v6084_v37, %v1163_v36  ;;  %v173_v37 = vld [vmem:[%s6336_s17 + $0x8] sm:$0xff] }
  0x7d   : > { %v394_v42 = vperm.slane %v173_v37, 6 }
  0x89   : > { %v1387_v39 = vpop.permute.xlu2 %1386 }
  0x8a   : > { %v6561_v45 = vsel %vm1511_vm6, %v1471_v38, %v1387_v39  ;;  %v205_v39 = vrot.slane %v173_v37, 7 }
  0x8c   : > { %v285_v53 = vsel %vm238_vm1, %v204_v49, %v205_v39 }
  0x91   : > { %v1159_v4 = vpop.permute.xlu0 %1158  ;;  %v1167_v9 = vpop.permute.xlu2 %1166 }
  0x92   : > { %v1465_v16 = vsel %vm1414_vm5, %v6082_v11, %v1159_v4  ;;  %v239_v4 = vsel %vm238_vm1, %v235_v43, 0.0  ;;  %v1477_v10 = vsel %vm1414_vm5, %v6086_v8, %v1167_v9  ;;  %v284_v43 = vsel %vm238_vm1, %v205_v39, 0.0 }
  0x93   : > { %v472_v5 = vsel %vm384_vm3, %v409_v0, %v239_v4  ;;  %v412_v44 = vsel %vm384_vm3, %v394_v42, %v284_v43  ;;  %v208_v0 = vrot.slane %v176_v59, 7  ;;  %v209_v4 = vrot.slane %v177_v62, 7 }
  0x94   : > { %v1161_v26 = vpop.permute.xlu1 %1160  ;;  %v536_v6 = vpack.c.bf16 %v472_v5, %v472_v5  ;;  %v476_v47 = vpack.c.bf16 %v412_v44, %v412_v44  ;;  %v304_v5 = vperm.slane %v176_v59, 1  ;;  %v6093_v44 = vld [vmem:[#allocation2 + $0xd8] sm:$0xff] }
  0x95   : > { %v1468_v32 = vsel %vm1414_vm5, %v5141_v30, %v1161_v26  ;;  %v280_v7 = vsel %vm238_vm1, 0.0, %v208_v0  ;;  %v279_v9 = vsel %vm238_vm1, %v208_v0, %v209_v4  ;;  %2948 = vst.msk [vmem:[#allocation2 + $0xdc] sm:$0xf] %vm539_vm0, %v8951_v1 }
  0x96   : > { %602 = vst.msk [vmem:[#allocation2 + $0x108] sm:$0xf] %vm539_vm0, %v536_v6  ;;  %v6091_v6 = vld [vmem:[#allocation2 + $0xc8] sm:$0xff] }
  0x97   : > { %542 = vst.msk [vmem:[#allocation2 + $0x18] sm:$0xf] %vm539_vm0, %v476_v47 }
  0x98   : > { %2944 = vst.msk [vmem:[#allocation2 + $0xcc] sm:$0xf] %vm539_vm0, %v8951_v1 }
  0x99   : > { %v1383_v17 = vpop.permute.xlu0 %1382  ;;  %v1393_v19 = vpop.permute.xlu2 %1392 }
  0x9a   : > { %v6530_v20 = vsel %vm1511_vm6, %v1465_v16, %v1383_v17  ;;  %v174_v17 = vld [vmem:[%s6336_s17 + $0x10] sm:$0xff] }
  0x9b   : > { %5476 = vmatmul.msk.bf16.vlgmr.msra.gmra.mxu2 %vm1586_vm7, %v6530_v20  ;;  %5512 = vmatmul.msk.bf16.vlgmr.msra.gmra.mxu3 %vm1586_vm7, %v6530_v20  ;;  %v206_v22 = vrot.slane %v174_v17, 7  ;;  %v303_v24 = vperm.slane %v174_v17, 1 }
  0x9d   : > { %v6159_v12 = vld [vmem:[#allocation2 + $0x108] sm:$0xff]  ;;  %v283_v25 = vsel %vm238_vm1, 0.0, %v206_v22  ;;  %v282_v27 = vsel %vm238_vm1, %v206_v22, %v207_v23 }
  0x9e   : > { %v1385_v33 = vpop.permute.xlu1 %1384  ;;  %1408 = vrot.lane.b32.xlu0 %v6159_v12, %s6291_s19  ;;  %v322_v28 = vsel %vm290_vm2, %v303_v24, %v283_v25  ;;  %v479_v30 = vpack.c.bf16 %v282_v27, %v282_v27  ;;  %v6129_v31 = vld [vmem:[#allocation2 + $0x108] sm:$0xff]  ;;  %v6099_v57 = vld [vmem:[#allocation2 + $0x18] sm:$0xff]  ;;  %v483_v12 = vpack.c.bf16 %v279_v9, %v279_v9 }
  0x9f   : > { %v6550_v34 = vsel %vm1511_vm6, %v1468_v32, %v1385_v33  ;;  %v478_v29 = vpack.c.bf16 %v322_v28, %v322_v28  ;;  %2960 = vst.msk [vmem:[#allocation2 + $0x10c] sm:$0xf] %vm539_vm0, %v8951_v1  ;;  %v6127_v32 = vld [vmem:[#allocation2 + $0xf8] sm:$0xff]  ;;  %v278_v28 = vsel %vm238_vm1, %v209_v4, 0.0 }
  0xa0   : > { %v6161_v33 = vld [vmem:[#allocation2 + $0x118] sm:$0xff]  ;;  %1184 = vrot.lane.b32.xlu2 %v6127_v32, %s6290_s18  ;;  %545 = vst.msk [vmem:[#allocation2 + $0x24] sm:$0xf] %vm539_vm0, %v479_v30 }
  0xa1   : > { %v1165_v56 = vpop.permute.xlu0 %1164  ;;  %544 = vst.msk [vmem:[#allocation2 + $0x20] sm:$0xf] %vm539_vm0, %v478_v29  ;;  %1412 = vrot.lane.b32.xlu1 %v6161_v33, %s6291_s19  ;;  %v1173_v58 = vpop.permute.xlu2 %1172 }
  0xa2   : > { %v1474_v60 = vsel %vm1414_vm5, %v6085_v54, %v1165_v56  ;;  %604 = vst.msk [vmem:[#allocation2] sm:$0xf] %vm539_vm0, %v478_v29  ;;  %v475_v56 = vpack.c.bf16 %v285_v53, %v285_v53 }
  0xa3   : > { %605 = vst.msk [vmem:[#allocation2 + $0x4] sm:$0xf] %vm539_vm0, %v479_v30 }
  0xa4   : > { %2968 = vst.msk [vmem:[#allocation2 + $0x11c] sm:$0xf] %vm539_vm0, %v8951_v1 }
  0xa5   : > { %541 = vst.msk [vmem:[#allocation2 + $0x14] sm:$0xf] %vm539_vm0, %v475_v56 }
  0xa6   : > { %v1389_v61 = vpop.permute.xlu1 %1388  ;;  %1188 = vrot.lane.b32.xlu0 %v6129_v31, %s6290_s18  ;;  %549 = vst.msk [vmem:[#allocation2 + $0x34] sm:$0xf] %vm539_vm0, %v483_v12 }
  0xa7   : > { %v6588_v63 = vsel %vm1511_vm6, %v1474_v60, %v1389_v61  ;;  %v1486_v60 = vsel %vm1414_vm5, %v6610_v15, %v1173_v58  ;;  %v395_v15 = vperm.slane %v6618_v21, 6  ;;  %v179_v58 = vld [vmem:[%s6336_s17 + $0x38] sm:$0xff] }
  0xa8   : > { %v6130_v38 = vld [vmem:[#allocation2 + $0x20] sm:$0xff]  ;;  %1410 = vrot.lane.b32.xlu2 %v6160_v50, %s6291_s19  ;;  %v397_v4 = vperm.slane %v179_v58, 6 }
  0xa9   : > { %v1391_v11 = vpop.permute.xlu0 %1390  ;;  %1128 = vrot.lane.b32.xlu1 %v6099_v57, %s6290_s18  ;;  %v1399_v21 = vpop.permute.xlu2 %1398 }
  0xaa   : > { %v6604_v13 = vsel %vm1511_vm6, %v1477_v10, %v1391_v11  ;;  %v326_v10 = vsel %vm290_vm2, %v304_v5, %v280_v7 }
  0xab   : > { %5477 = vmatmul.msk.bf16.gmra.mxu2 %vm1586_vm7, %v6550_v34  ;;  %5513 = vmatmul.msk.bf16.gmra.mxu3 %vm1586_vm7, %v6550_v34  ;;  %v482_v11 = vpack.c.bf16 %v326_v10, %v326_v10 }
  0xad   : > { %548 = vst.msk [vmem:[#allocation2 + $0x30] sm:$0xf] %vm539_vm0, %v482_v11  ;;  %v178_v11 = vld [vmem:[%s6336_s17 + $0x30] sm:$0xff] }
  0xae   : > { %v1169_v16 = vpop.permute.xlu1 %1168  ;;  %1350 = vrot.lane.b32.xlu0 %v6130_v38, %s6291_s19  ;;  %v210_v12 = vrot.slane %v178_v11, 7 }
  0xaf   : > { %v1480_v18 = vsel %vm1414_vm5, %v6087_v51, %v1169_v16  ;;  %v302_v51 = vperm.slane %v172_v48, 1  ;;  %v281_v16 = vsel %vm238_vm1, %v207_v23, 0.0  ;;  %v396_v23 = vperm.slane %v177_v62, 6 }
  0xb0   : > { %v6624_v26 = vsel %vm1511_vm6, %v1480_v18, %v1393_v19  ;;  %v416_v17 = vsel %vm384_vm3, %v395_v15, %v281_v16  ;;  %v6090_v18 = vld [vmem:[#allocation2 + $0xc0] sm:$0xff]  ;;  %v305_v16 = vperm.slane %v178_v11, 1 }
  0xb1   : > { %v1171_v36 = vpop.permute.xlu0 %1170  ;;  %v318_v54 = vsel %vm290_vm2, %v302_v51, %v286_v52  ;;  %v6100_v19 = vld [vmem:[#allocation2 + $0x20] sm:$0xff]  ;;  %v480_v22 = vpack.c.bf16 %v416_v17, %v416_v17  ;;  %v420_v30 = vsel %vm384_vm3, %v396_v23, %v278_v28  ;;  %v1179_v57 = vpop.permute.xlu2 %1178 }
  0xb2   : > { %v1483_v40 = vsel %vm1414_vm5, %v6088_v35, %v1171_v36  ;;  %v474_v55 = vpack.c.bf16 %v318_v54, %v318_v54  ;;  %v484_v31 = vpack.c.bf16 %v420_v30, %v420_v30  ;;  %v6092_v54 = vld [vmem:[#allocation2 + $0xd0] sm:$0xff]  ;;  %v180_v23 = vld [vmem:[%s6336_s17 + $0x40] sm:$0xff] }
  0xb3   : > { %546 = vst.msk [vmem:[#allocation2 + $0x28] sm:$0xf] %vm539_vm0, %v480_v22  ;;  %v1495_v59 = vsel %vm1414_vm5, %v6092_v54, %v1179_v57 }
  0xb4   : > { %540 = vst.msk [vmem:[#allocation2 + $0x10] sm:$0xf] %vm539_vm0, %v474_v55  ;;  %v6132_v25 = vld [vmem:[#allocation2 + $0x30] sm:$0xff] }
  0xb5   : > { %606 = vst.msk [vmem:[#allocation2 + $0x8] sm:$0xf] %vm539_vm0, %v480_v22  ;;  %1354 = vrot.lane.b32.xlu1 %v6132_v25, %s6291_s19  ;;  %v6102_v55 = vld [vmem:[#allocation2 + $0x30] sm:$0xff] }
  0xb6   : > { %v1395_v41 = vpop.permute.xlu1 %1394  ;;  %1130 = vrot.lane.b32.xlu0 %v6100_v19, %s6290_s18  ;;  %550 = vst.msk [vmem:[#allocation2 + $0x38] sm:$0xf] %vm539_vm0, %v484_v31  ;;  %v6770_v31 = vld [vmem:[%s6336_s17 + $0x48] sm:$0xff] }
  0xb7   : > { %v6655_v46 = vsel %vm1511_vm6, %v1483_v40, %v1395_v41 }
  0xb9   : > { %v1397_v61 = vpop.permute.xlu0 %1396  ;;  %v1405_v30 = vpop.permute.xlu2 %1404 }
  0xba   : > { %v6680_v8 = vsel %vm1511_vm6, %v1486_v60, %v1397_v61  ;;  %v6131_v32 = vld [vmem:[#allocation2 + $0x28] sm:$0xff]  ;;  %v211_v61 = vrot.slane %v179_v58, 7 }
  0xbb   : > { %5478 = vmatmul.msk.bf16.gmra.mxu2 %vm1586_vm7, %v6561_v45  ;;  %5514 = vmatmul.msk.bf16.gmra.mxu3 %vm1586_vm7, %v6561_v45  ;;  %v6098_v14 = vld [vmem:[#allocation2 + $0x10] sm:$0xff]  ;;  %v6101_v9 = vld [vmem:[#allocation2 + $0x28] sm:$0xff] }
  0xbc   : > { %1126 = vrot.lane.b32.xlu2 %v6098_v14, %s6290_s18  ;;  %v275_v5 = vsel %vm238_vm1, %v211_v61, 0.0  ;;  %v276_v19 = vsel %vm238_vm1, %v210_v12, %v211_v61 }
  0xbd   : > { %v6133_v37 = vld [vmem:[#allocation2 + $0x38] sm:$0xff]  ;;  %1134 = vrot.lane.b32.xlu1 %v6102_v55, %s6290_s18  ;;  %v424_v7 = vsel %vm384_vm3, %v397_v4, %v275_v5  ;;  %v487_v25 = vpack.c.bf16 %v276_v19, %v276_v19  ;;  %v6066_v19 = vld [vmem:[#allocation2] sm:$0xff] }
  0xbe   : > { %v1175_v24 = vpop.permute.xlu1 %1174  ;;  %1356 = vrot.lane.b32.xlu0 %v6133_v37, %s6291_s19  ;;  %v488_v10 = vpack.c.bf16 %v424_v7, %v424_v7  ;;  %v6103_v17 = vld [vmem:[#allocation2 + $0x38] sm:$0xff]  ;;  %v306_v37 = vperm.slane %v180_v23, 1 }
  0xbf   : > { %v1489_v27 = vsel %vm1414_vm5, %v6090_v18, %v1175_v24  ;;  %v277_v18 = vsel %vm238_vm1, 0.0, %v210_v12  ;;  %553 = vst.msk [vmem:[#allocation2 + $0x44] sm:$0xf] %vm539_vm0, %v487_v25  ;;  %v6810_v12 = vld [vmem:[#allocation2 + $0xf8] sm:$0xff] }
  0xc0   : > { %v6710_v29 = vsel %vm1511_vm6, %v1489_v27, %v1399_v21  ;;  %554 = vst.msk [vmem:[#allocation2 + $0x48] sm:$0xf] %vm539_vm0, %v488_v10  ;;  %v330_v22 = vsel %vm290_vm2, %v305_v16, %v277_v18 }
  0xc1   : > { %v1177_v36 = vpop.permute.xlu0 %1176  ;;  %v486_v24 = vpack.c.bf16 %v330_v22, %v330_v22  ;;  %2956 = vst.msk [vmem:[#allocation2 + $0xfc] sm:$0xf] %vm539_vm0, %v8951_v1  ;;  %v182_v22 = vld [vmem:[%s6336_s17 + $0x50] sm:$0xff] }
  0xc2   : > { %v1492_v38 = vsel %vm1414_vm5, %v6091_v6, %v1177_v36  ;;  %v213_v36 = vrot.slane %v6770_v31, 7 }
  0xc3   : > { %552 = vst.msk [vmem:[#allocation2 + $0x40] sm:$0xf] %vm539_vm0, %v486_v24 }
  0xc4   : > { %1352 = vrot.lane.b32.xlu2 %v6131_v32, %s6291_s19  ;;  %v212_v32 = vrot.slane %v180_v23, 7 }
  0xc6   : > { %v1401_v39 = vpop.permute.xlu1 %1400  ;;  %1136 = vrot.lane.b32.xlu0 %v6103_v17, %s6290_s18 }
  0xc7   : > { %v6724_v47 = vsel %vm1511_vm6, %v1492_v38, %v1401_v39  ;;  %v6135_v21 = vld [vmem:[#allocation2 + $0x48] sm:$0xff] }
  0xc8   : > { %1360 = vrot.lane.b32.xlu1 %v6135_v21, %s6291_s19  ;;  %v6105_v18 = vld [vmem:[#allocation2 + $0x48] sm:$0xff]  ;;  %v214_v21 = vrot.slane %v182_v22, 7 }
  0xc9   : > { %v1403_v60 = vpop.permute.xlu0 %1402 }
  0xca   : > { %v6746_v6 = vsel %vm1511_vm6, %v1495_v59, %v1403_v60  ;;  %v6094_v60 = vld [vmem:[#allocation2 + $0xe0] sm:$0xff] }
  0xcb   : > { %5479 = vmatmul.msk.bf16.gmra.mxu2 %vm1586_vm7, %v6588_v63  ;;  %5515 = vmatmul.msk.bf16.gmra.mxu3 %vm1586_vm7, %v6588_v63 }
  0xcc   : > { %1132 = vrot.lane.b32.xlu2 %v6101_v9, %s6290_s18 }
  0xce   : > { %v1181_v27 = vpop.permute.xlu1 %1180 }
  0xcf   : > { %v1498_v28 = vsel %vm1414_vm5, %v6093_v44, %v1181_v27  ;;  %v183_v27 = vld [vmem:[%s6336_s17 + $0x58] sm:$0xff] }
  0xd0   : > { %1140 = vrot.lane.b32.xlu1 %v6105_v18, %s6290_s18 }
  0xd1   : > { %v1183_v58 = vpop.permute.xlu0 %1182 }
  0xd6   : > { %v1407_v4 = vpop.permute.xlu1 %1406 }
  0xdb   : > { %5480 = vmatmul.msk.bf16.gmra.mxu2 %vm1586_vm7, %v6604_v13  ;;  %5516 = vmatmul.msk.bf16.gmra.mxu3 %vm1586_vm7, %v6604_v13 }
  0xde   : > { %v1187_v25 = vpop.permute.xlu1 %1186 }
  0xeb   : > { %5481 = vmatmul.msk.bf16.gmra.mxu2 %vm1586_vm7, %v6624_v26  ;;  %5517 = vmatmul.msk.bf16.gmra.mxu3 %vm1586_vm7, %v6624_v26 }
  0xfa   : > { %v1185_v9 = vpop.permute.xlu2 %1184 }
  0xfb   : > { %5482 = vmatmul.msk.bf16.gmra.mxu2 %vm1586_vm7, %v6655_v46  ;;  %5518 = vmatmul.msk.bf16.gmra.mxu3 %vm1586_vm7, %v6655_v46 }
 0x102   : > { %v1411_v16 = vpop.permute.xlu2 %1410 }
 0x10b   : > { %5483 = vmatmul.msk.bf16.gmra.mxu2 %vm1586_vm7, %v6680_v8  ;;  %5519 = vmatmul.msk.bf16.gmra.mxu3 %vm1586_vm7, %v6680_v8 }
 0x110   : > { %v1409_v10 = vpop.permute.xlu0 %1408 }
 0x118   : > { %v6814_v17 = vpop.permute.xlu0 %1188 }
 0x11b   : > { %5484 = vmatmul.msk.bf16.gmra.mxu2 %vm1586_vm7, %v6710_v29  ;;  %5520 = vmatmul.msk.bf16.gmra.mxu3 %vm1586_vm7, %v6710_v29 }
 0x11e   : > { %v1736_v33 = vpop.f32.mrf.mxu2  ;;  %v1970_v35 = vpop.f32.mrf.mxu3 }
 0x11f   : > { %v1832_v42 = vrot.slane %v1736_v33, 1 }
 0x126   : > { %v1738_v40 = vpop.f32.mrf.mxu2  ;;  %v1972_v41 = vpop.f32.mrf.mxu3 }
 0x127   : > { %v1833_v43 = vrot.slane %v1738_v40, 1  ;;  %v6095_v40 = vld [vmem:[#allocation2 + $0xe8] sm:$0xff] }
 0x128   : > { %2952 = vst.msk [vmem:[#allocation2 + $0xec] sm:$0xf] %vm539_vm0, %v8951_v1  ;;  %v1504_v24 = vsel %vm1414_vm5, %v6095_v40, %v1185_v9  ;;  %v1351_v40 = vpop.permute.xlu0 %1350 }
 0x129   : > { %v1872_v48 = vsel %vm1856_vm8, %v1832_v42, %v1833_v43  ;;  %v6776_v42 = vsel %vm1511_vm6, %v1498_v28, %v1405_v30  ;;  %v215_v30 = vrot.slane %v183_v27, 7 }
 0x12a   : > { %v6730_v49 = vadd.f32 %v1970_v35, %v1872_v48 }
 0x12b   : > { %5485 = vmatmul.msk.bf16.gmra.mxu2 %vm1586_vm7, %v6724_v47  ;;  %5521 = vmatmul.msk.bf16.gmra.mxu3 %vm1586_vm7, %v6724_v47 }
 0x12e   : > { %v1741_v50 = vpop.f32.mrf.mxu2  ;;  %v1975_v51 = vpop.f32.mrf.mxu3 }
 0x12f   : > { %v1834_v52 = vrot.slane %v1741_v50, 1 }
 0x131   : > { %v1871_v53 = vsel %vm1856_vm8, %v1833_v43, %v1834_v52  ;;  %v273_v43 = vsel %vm238_vm1, %v212_v32, %v213_v36 }
 0x132   : > { %v6738_v56 = vadd.f32 %v1972_v41, %v1871_v53  ;;  %v274_v41 = vsel %vm238_vm1, 0.0, %v212_v32  ;;  %v491_v51 = vpack.c.bf16 %v273_v43, %v273_v43  ;;  %v6134_v53 = vld [vmem:[#allocation2 + $0x40] sm:$0xff]  ;;  %v307_v32 = vperm.slane %v182_v22, 1 }
 0x133   : > { %v334_v44 = vsel %vm290_vm2, %v306_v37, %v274_v41  ;;  %1358 = vrot.lane.b32.xlu2 %v6134_v53, %s6291_s19  ;;  %v1127_v37 = vpop.permute.xlu2 %1126  ;;  %v270_v43 = vsel %vm238_vm1, %v214_v21, %v215_v30 }
 0x134   : > { %v490_v50 = vpack.c.bf16 %v334_v44, %v334_v44  ;;  %557 = vst.msk [vmem:[#allocation2 + $0x54] sm:$0xf] %vm539_vm0, %v491_v51  ;;  %v1417_v41 = vsel %vm1414_vm5, %v6066_v19, %v1127_v37  ;;  %v6104_v51 = vld [vmem:[#allocation2 + $0x40] sm:$0xff] }
 0x136   : > { %v1743_v62 = vpop.f32.mrf.mxu2  ;;  %v1976_v0 = vpop.f32.mrf.mxu3  ;;  %556 = vst.msk [vmem:[#allocation2 + $0x50] sm:$0xf] %vm539_vm0, %v490_v50  ;;  %v6835_v50 = vsel %vm1511_vm6, %v1417_v41, %v1351_v40  ;;  %v1510_v41 = vsel %vm1414_vm5, %v6810_v12, %v6814_v17 }
 0x137   : > { %v1501_v0 = vsel %vm1414_vm5, %v6094_v60, %v1183_v58  ;;  %5460 = vmatmul.msk.bf16.vlgmr.msra.gmra.mxu0 %vm1586_vm7, %v6835_v50  ;;  %5496 = vmatmul.msk.bf16.vlgmr.msra.gmra.mxu1 %vm1586_vm7, %v6835_v50  ;;  %v398_v60 = vperm.slane %v6770_v31, 6  ;;  %v1131_v40 = vpop.permute.xlu0 %1130 }
 0x138   : > { %v6804_v11 = vsel %vm1511_vm6, %v1501_v0, %v1407_v4  ;;  %v272_v0 = vsel %vm238_vm1, %v213_v36, 0.0 }
 0x139   : > { %v428_v4 = vsel %vm384_vm3, %v398_v60, %v272_v0 }
 0x13b   : > { %5486 = vmatmul.msk.bf16.gmra.mxu2 %vm1586_vm7, %v6746_v6  ;;  %5522 = vmatmul.msk.bf16.gmra.mxu3 %vm1586_vm7, %v6746_v6 }
 0x13c   : > { %1138 = vrot.lane.b32.xlu2 %v6104_v51, %s6290_s18 }
 0x13d   : > { %v6136_v62 = vld [vmem:[#allocation2 + $0x50] sm:$0xff] }
 0x13e   : > { %v1745_v14 = vpop.f32.mrf.mxu2  ;;  %v1978_v15 = vpop.f32.mrf.mxu3  ;;  %1362 = vrot.lane.b32.xlu0 %v6136_v62, %s6291_s19  ;;  %v6106_v9 = vld [vmem:[#allocation2 + $0x50] sm:$0xff] }
 0x13f   : > { %v1835_v38 = vrot.slane %v1745_v14, 1 }
 0x146   : > { %v1747_v33 = vpop.f32.mrf.mxu2  ;;  %v1980_v35 = vpop.f32.mrf.mxu3  ;;  %1142 = vrot.lane.b32.xlu0 %v6106_v9, %s6290_s18  ;;  %v185_v9 = vld [vmem:[%s6336_s17 + $0x68] sm:$0xff] }
 0x147   : > { %v1836_v39 = vrot.slane %v1747_v33, 1 }
 0x149   : > { %v1870_v48 = vsel %vm1856_vm8, %v1835_v38, %v1836_v39  ;;  %v271_v38 = vsel %vm238_vm1, 0.0, %v214_v21  ;;  %v1353_v21 = vpop.permute.xlu2 %1352 }
 0x14a   : > { %v6788_v52 = vadd.f32 %v1978_v15, %v1870_v48  ;;  %v338_v44 = vsel %vm290_vm2, %v307_v32, %v271_v38  ;;  %v6068_v38 = vld [vmem:[#allocation2 + $0x10] sm:$0xff] }
 0x14b   : > { %5487 = vmatmul.msk.bf16.gmra.mxu2 %vm1586_vm7, %v6776_v42  ;;  %5523 = vmatmul.msk.bf16.gmra.mxu3 %vm1586_vm7, %v6776_v42  ;;  %v494_v53 = vpack.c.bf16 %v338_v44, %v338_v44 }
 0x14d   : > { %560 = vst.msk [vmem:[#allocation2 + $0x60] sm:$0xf] %vm539_vm0, %v494_v53 }
 0x14e   : > { %v1750_v54 = vpop.f32.mrf.mxu2  ;;  %v1983_v55 = vpop.f32.mrf.mxu3 }
 0x14f   : > { %v1837_v57 = vrot.slane %v1750_v54, 1  ;;  %v495_v54 = vpack.c.bf16 %v270_v43, %v270_v43 }
 0x151   : > { %v1869_v59 = vsel %vm1856_vm8, %v1836_v39, %v1837_v57  ;;  %v6825_v39 = vsel %vm1511_vm6, %v1504_v24, %v1409_v10  ;;  %561 = vst.msk [vmem:[#allocation2 + $0x64] sm:$0xf] %vm539_vm0, %v495_v54  ;;  %v1413_v57 = vpop.permute.xlu1 %1412  ;;  %v492_v10 = vpack.c.bf16 %v428_v4, %v428_v4  ;;  %v399_v24 = vperm.slane %v183_v27, 6 }
 0x152   : > { %v6799_v61 = vadd.f32 %v1980_v35, %v1869_v59 }
 0x153   : > { %558 = vst.msk [vmem:[#allocation2 + $0x58] sm:$0xf] %vm539_vm0, %v492_v10  ;;  %v217_v10 = vrot.slane %v185_v9, 7 }
 0x156   : > { %v1752_v5 = vpop.f32.mrf.mxu2  ;;  %v1984_v7 = vpop.f32.mrf.mxu3 }
 0x157   : > { %v6096_v7 = vld [vmem:[#allocation2 + $0xf0] sm:$0xff] }
 0x158   : > { %v1507_v31 = vsel %vm1414_vm5, %v6096_v7, %v1187_v25  ;;  %v6108_v4 = vld [vmem:[#allocation2 + $0x60] sm:$0xff]  ;;  %v6069_v7 = vld [vmem:[#allocation2 + $0x18] sm:$0xff] }
 0x159   : > { %v1129_v36 = vpop.permute.xlu1 %1128  ;;  %v6871_v32 = vsel %vm1511_vm6, %v1507_v31, %v1411_v16  ;;  %2900 = vst.msk [vmem:[#allocation2 + $0x1c] sm:$0xf] %vm539_vm0, %v8951_v1 }
 0x15a   : > { %v6137_v16 = vld [vmem:[#allocation2 + $0x58] sm:$0xff] }
 0x15b   : > { %5488 = vmatmul.msk.bf16.gmra.mxu2 %vm1586_vm7, %v6804_v11  ;;  %5524 = vmatmul.msk.bf16.gmra.mxu3 %vm1586_vm7, %v6804_v11  ;;  %v6107_v31 = vld [vmem:[#allocation2 + $0x58] sm:$0xff] }
 0x15c   : > { %1364 = vrot.lane.b32.xlu2 %v6137_v16, %s6291_s19 }
 0x15e   : > { %v1754_v14 = vpop.f32.mrf.mxu2  ;;  %v1986_v15 = vpop.f32.mrf.mxu3 }
 0x15f   : > { %v1838_v33 = vrot.slane %v1754_v14, 1  ;;  %v6067_v14 = vld [vmem:[#allocation2 + $0x8] sm:$0xff] }
 0x160   : > { %2964 = vst.msk [vmem:[#allocation2 + $0xc] sm:$0xf] %vm539_vm0, %v8951_v1  ;;  %v1420_v22 = vsel %vm1414_vm5, %v6067_v14, %v1129_v36  ;;  %v400_v36 = vperm.slane %v185_v9, 6 }
 0x161   : > { %v1355_v54 = vpop.permute.xlu1 %1354 }
 0x164   : > { %1144 = vrot.lane.b32.xlu2 %v6107_v31, %s6290_s18 }
 0x166   : > { %v1756_v23 = vpop.f32.mrf.mxu2  ;;  %v6820_v28 = vpop.f32.mrf.mxu3 }
 0x167   : > { %v1839_v35 = vrot.slane %v1756_v23, 1  ;;  %v269_v23 = vsel %vm238_vm1, %v215_v30, 0.0 }
 0x168   : > { %v432_v25 = vsel %vm384_vm3, %v399_v24, %v269_v23 }
 0x169   : > { %v1868_v48 = vsel %vm1856_vm8, %v1838_v33, %v1839_v35  ;;  %v6874_v33 = vsel %vm1511_vm6, %v1420_v22, %v1353_v21  ;;  %v266_v22 = vsel %vm238_vm1, %v217_v10, 0.0 }
 0x16a   : > { %v6837_v55 = vadd.f32 %v1986_v15, %v1868_v48  ;;  %v6138_v15 = vld [vmem:[#allocation2 + $0x60] sm:$0xff]  ;;  %5461 = vmatmul.msk.bf16.gmra.mxu0 %vm1586_vm7, %v6874_v33  ;;  %5497 = vmatmul.msk.bf16.gmra.mxu1 %vm1586_vm7, %v6874_v33  ;;  %v1423_v48 = vsel %vm1414_vm5, %v6068_v38, %v1131_v40  ;;  %v436_v21 = vsel %vm384_vm3, %v400_v36, %v266_v22 }
 0x16b   : > { %5489 = vmatmul.msk.bf16.gmra.mxu2 %vm1586_vm7, %v6825_v39  ;;  %5525 = vmatmul.msk.bf16.gmra.mxu3 %vm1586_vm7, %v6825_v39  ;;  %v6142_v22 = vld [vmem:[#allocation2 + $0x80] sm:$0xff] }
 0x16c   : > { %1366 = vrot.lane.b32.xlu1 %v6138_v15, %s6291_s19 }
 0x16e   : > { %v1759_v58 = vpop.f32.mrf.mxu2  ;;  %v1991_v59 = vpop.f32.mrf.mxu3 }
 0x16f   : > { %v1840_v62 = vrot.slane %v1759_v58, 1  ;;  %v6896_v58 = vsel %vm1511_vm6, %v1510_v41, %v1413_v57  ;;  %v6899_v59 = vsel %vm1511_vm6, %v1423_v48, %v1355_v54  ;;  %v1135_v54 = vpop.permute.xlu1 %1134 }
 0x171   : > { %v6859_v5 = vsel %vm1856_vm8, %v1839_v35, %v1840_v62  ;;  %v496_v35 = vpack.c.bf16 %v432_v25, %v432_v25  ;;  %v500_v25 = vpack.c.bf16 %v436_v21, %v436_v21 }
 0x173   : > { %562 = vst.msk [vmem:[#allocation2 + $0x68] sm:$0xf] %vm539_vm0, %v496_v35  ;;  %v184_v35 = vld [vmem:[%s6336_s17 + $0x60] sm:$0xff] }
 0x174   : > { %1146 = vrot.lane.b32.xlu1 %v6108_v4, %s6290_s18  ;;  %566 = vst.msk [vmem:[#allocation2 + $0x78] sm:$0xf] %vm539_vm0, %v500_v25  ;;  %v216_v16 = vrot.slane %v184_v35, 7 }
 0x176   : > { %v1761_v18 = vpop.f32.mrf.mxu2  ;;  %v1992_v19 = vpop.f32.mrf.mxu3  ;;  %v268_v41 = vsel %vm238_vm1, 0.0, %v216_v16  ;;  %v267_v40 = vsel %vm238_vm1, %v216_v16, %v217_v10 }
 0x177   : > { %v1133_v18 = vpop.permute.xlu2 %1132  ;;  %v1357_v19 = vpop.permute.xlu0 %1356  ;;  %v499_v48 = vpack.c.bf16 %v267_v40, %v267_v40 }
 0x178   : > { %v1426_v24 = vsel %vm1414_vm5, %v6069_v7, %v1133_v18  ;;  %v1361_v16 = vpop.permute.xlu1 %1360 }
 0x179   : > { %v6928_v23 = vsel %vm1511_vm6, %v1426_v24, %v1357_v19  ;;  %565 = vst.msk [vmem:[#allocation2 + $0x74] sm:$0xf] %vm539_vm0, %v499_v48  ;;  %v6071_v24 = vld [vmem:[#allocation2 + $0x28] sm:$0xff] }
 0x17a   : > { %v6139_v37 = vld [vmem:[#allocation2 + $0x68] sm:$0xff]  ;;  %5462 = vmatmul.msk.bf16.gmra.mxu0 %vm1586_vm7, %v6899_v59  ;;  %5498 = vmatmul.msk.bf16.gmra.mxu1 %vm1586_vm7, %v6899_v59  ;;  %2904 = vst.msk [vmem:[#allocation2 + $0x2c] sm:$0xf] %vm539_vm0, %v8951_v1 }
 0x17b   : > { %5490 = vmatmul.msk.bf16.gmra.mxu2 %vm1586_vm7, %v6871_v32  ;;  %5526 = vmatmul.msk.bf16.gmra.mxu3 %vm1586_vm7, %v6871_v32  ;;  %v6109_v38 = vld [vmem:[#allocation2 + $0x68] sm:$0xff] }
 0x17c   : > { %1368 = vrot.lane.b32.xlu0 %v6139_v37, %s6291_s19  ;;  %v308_v37 = vperm.slane %v184_v35, 1 }
 0x17e   : > { %v1763_v27 = vpop.f32.mrf.mxu2  ;;  %v1994_v30 = vpop.f32.mrf.mxu3 }
 0x17f   : > { %v1841_v51 = vrot.slane %v1763_v27, 1  ;;  %v1137_v21 = vpop.permute.xlu0 %1136 }
 0x184   : > { %1148 = vrot.lane.b32.xlu0 %v6109_v38, %s6290_s18  ;;  %v6111_v38 = vld [vmem:[#allocation2 + $0x78] sm:$0xff] }
 0x186   : > { %v1765_v43 = vpop.f32.mrf.mxu2  ;;  %v6892_v44 = vpop.f32.mrf.mxu3 }
 0x187   : > { %v1842_v53 = vrot.slane %v1765_v43, 1  ;;  %v342_v43 = vsel %vm290_vm2, %v308_v37, %v268_v41  ;;  %v6072_v41 = vld [vmem:[#allocation2 + $0x30] sm:$0xff] }
 0x189   : > { %v1866_v60 = vsel %vm1856_vm8, %v1841_v51, %v1842_v53  ;;  %v6141_v51 = vld [vmem:[#allocation2 + $0x78] sm:$0xff] }
 0x18a   : > { %v6903_v12 = vadd.f32 %v1994_v30, %v1866_v60  ;;  %5463 = vmatmul.msk.bf16.gmra.mxu0 %vm1586_vm7, %v6928_v23  ;;  %5499 = vmatmul.msk.bf16.gmra.mxu1 %vm1586_vm7, %v6928_v23 }
 0x18b   : > { %5491 = vmatmul.msk.bf16.gmra.mxu2 %vm1586_vm7, %v6896_v58  ;;  %5527 = vmatmul.msk.bf16.gmra.mxu3 %vm1586_vm7, %v6896_v58 }
 0x18c   : > { %1372 = vrot.lane.b32.xlu1 %v6141_v51, %s6291_s19  ;;  %1374 = vrot.lane.b32.xlu0 %v6142_v22, %s6291_s19  ;;  %v1141_v22 = vpop.permute.xlu1 %1140 }
 0x18d   : > { %v1359_v7 = vpop.permute.xlu2 %1358 }
 0x18e   : > { %v1768_v17 = vpop.f32.mrf.mxu2  ;;  %v1999_v57 = vpop.f32.mrf.mxu3 }
 0x18f   : > { %v1843_v62 = vrot.slane %v1768_v17, 1 }
 0x191   : > { %v6915_v0 = vsel %vm1856_vm8, %v1842_v53, %v1843_v62  ;;  %v6070_v53 = vld [vmem:[#allocation2 + $0x20] sm:$0xff] }
 0x192   : > { %v1429_v57 = vsel %vm1414_vm5, %v6070_v53, %v1135_v54 }
 0x193   : > { %v6952_v9 = vsel %vm1511_vm6, %v1429_v57, %v1359_v7 }
 0x194   : > { %1152 = vrot.lane.b32.xlu1 %v6111_v38, %s6290_s18  ;;  %v6074_v38 = vld [vmem:[#allocation2 + $0x40] sm:$0xff] }
 0x196   : > { %v1770_v14 = vpop.f32.mrf.mxu2  ;;  %v2000_v15 = vpop.f32.mrf.mxu3 }
 0x197   : > { %v1139_v51 = vpop.permute.xlu2 %1138 }
 0x198   : > { %v1435_v54 = vsel %vm1414_vm5, %v6072_v41, %v1139_v51 }
 0x19a   : > { %5464 = vmatmul.msk.bf16.gmra.mxu0 %vm1586_vm7, %v6952_v9  ;;  %5500 = vmatmul.msk.bf16.gmra.mxu1 %vm1586_vm7, %v6952_v9 }
 0x19b   : > { %5534 = vmatmul.msk.bf16.vlgmr.msrb.gmra.mxu2 %vm1586_vm7, %v6835_v50  ;;  %v498_v50 = vpack.c.bf16 %v342_v43, %v342_v43 }
 0x19d   : > { %564 = vst.msk [vmem:[#allocation2 + $0x70] sm:$0xf] %vm539_vm0, %v498_v50 }
 0x19e   : > { %v1772_v27 = vpop.f32.mrf.mxu2  ;;  %v2002_v30 = vpop.f32.mrf.mxu3 }
 0x19f   : > { %v1844_v62 = vrot.slane %v1772_v27, 1 }
 0x1a4   : > { %v6140_v15 = vld [vmem:[#allocation2 + $0x70] sm:$0xff] }
 0x1a5   : > { %1370 = vrot.lane.b32.xlu2 %v6140_v15, %s6291_s19  ;;  %v6110_v57 = vld [vmem:[#allocation2 + $0x70] sm:$0xff] }
 0x1a6   : > { %v1774_v60 = vpop.f32.mrf.mxu2  ;;  %v6948_v17 = vpop.f32.mrf.mxu3 }
 0x1a7   : > { %v1845_v4 = vrot.slane %v1774_v60, 1 }
 0x1a9   : > { %v1864_v10 = vsel %vm1856_vm8, %v1844_v62, %v1845_v4 }
 0x1aa   : > { %v6956_v14 = vadd.f32 %v2002_v30, %v1864_v10 }
 0x1ab   : > { %5535 = vmatmul.msk.bf16.gmra.mxu2 %vm1586_vm7, %v6874_v33  ;;  %v1432_v33 = vsel %vm1414_vm5, %v6071_v24, %v1137_v21 }
 0x1ac   : > { %v6974_v27 = vsel %vm1511_vm6, %v1432_v33, %v1361_v16 }
 0x1ad   : > { %5465 = vmatmul.msk.bf16.gmra.mxu0 %vm1586_vm7, %v6974_v27  ;;  %5501 = vmatmul.msk.bf16.gmra.mxu1 %vm1586_vm7, %v6974_v27 }
 0x1ae   : > { %v1777_v31 = vpop.f32.mrf.mxu2  ;;  %v2007_v36 = vpop.f32.mrf.mxu3  ;;  %1150 = vrot.lane.b32.xlu2 %v6110_v57, %s6290_s18 }
 0x1af   : > { %v1846_v18 = vrot.slane %v1777_v31, 1  ;;  %v6112_v31 = vld [vmem:[#allocation2 + $0x80] sm:$0xff]  ;;  %v6144_v36 = vld [vmem:[#allocation2 + $0x90] sm:$0xff] }
 0x1b0   : > { %v1363_v53 = vpop.permute.xlu0 %1362  ;;  %1154 = vrot.lane.b32.xlu0 %v6112_v31, %s6290_s18  ;;  %1378 = vrot.lane.b32.xlu1 %v6144_v36, %s6291_s19 }
 0x1b1   : > { %v6967_v19 = vsel %vm1856_vm8, %v1845_v4, %v1846_v18  ;;  %v6073_v18 = vld [vmem:[#allocation2 + $0x38] sm:$0xff] }
 0x1b2   : > { %2908 = vst.msk [vmem:[#allocation2 + $0x3c] sm:$0xf] %vm539_vm0, %v8951_v1 }
 0x1b6   : > { %v1779_v25 = vpop.f32.mrf.mxu2  ;;  %v2008_v35 = vpop.f32.mrf.mxu3 }
 0x1b7   : > { %v1365_v33 = vpop.permute.xlu2 %1364  ;;  %v6143_v35 = vld [vmem:[#allocation2 + $0x88] sm:$0xff] }
 0x1b8   : > { %1376 = vrot.lane.b32.xlu2 %v6143_v35, %s6291_s19  ;;  %v1143_v41 = vpop.permute.xlu0 %1142 }
 0x1bb   : > { %5536 = vmatmul.msk.bf16.gmra.mxu2 %vm1586_vm7, %v6899_v59  ;;  %v6989_v59 = vsel %vm1511_vm6, %v1435_v54, %v1363_v53 }
 0x1bd   : > { %5466 = vmatmul.msk.bf16.gmra.mxu0 %vm1586_vm7, %v6989_v59  ;;  %5502 = vmatmul.msk.bf16.gmra.mxu1 %vm1586_vm7, %v6989_v59 }
 0x1be   : > { %v1781_v30 = vpop.f32.mrf.mxu2  ;;  %v2010_v37 = vpop.f32.mrf.mxu3 }
 0x1bf   : > { %v1847_v50 = vrot.slane %v1781_v30, 1  ;;  %v1145_v35 = vpop.permute.xlu2 %1144 }
 0x1c6   : > { %v1783_v40 = vpop.f32.mrf.mxu2  ;;  %v6983_v43 = vpop.f32.mrf.mxu3 }
 0x1c7   : > { %8993 = vst [vmem:[#allocation4_spill] sm:$0xff] %v6983_v43  ;;  %v1848_v48 = vrot.slane %v1783_v40, 1 }
 0x1c9   : > { %v1862_v60 = vsel %vm1856_vm8, %v1847_v50, %v1848_v48 }
 0x1ca   : > { %v6991_v62 = vadd.f32 %v2010_v37, %v1862_v60  ;;  %v6145_v37 = vld [vmem:[#allocation2 + $0x98] sm:$0xff] }
 0x1cb   : > { %5537 = vmatmul.msk.bf16.gmra.mxu2 %vm1586_vm7, %v6928_v23  ;;  %v1438_v23 = vsel %vm1414_vm5, %v6073_v18, %v1141_v22  ;;  %2932 = vst.msk [vmem:[#allocation2 + $0x9c] sm:$0xf] %vm539_vm0, %v8951_v1  ;;  %1380 = vrot.lane.b32.xlu0 %v6145_v37, %s6291_s19 }
 0x1cc   : > { %v7010_v25 = vsel %vm1511_vm6, %v1438_v23, %v1365_v33  ;;  %v1906_v23 = vpop.f32.mrf.mxu1  ;;  %v6075_v33 = vld [vmem:[#allocation2 + $0x48] sm:$0xff] }
 0x1cd   : > { %5467 = vmatmul.msk.bf16.gmra.mxu0 %vm1586_vm7, %v7010_v25  ;;  %5503 = vmatmul.msk.bf16.gmra.mxu1 %vm1586_vm7, %v7010_v25  ;;  %2912 = vst.msk [vmem:[#allocation2 + $0x4c] sm:$0xf] %vm539_vm0, %v8951_v1 }
 0x1ce   : > { %v1786_v4 = vpop.f32.mrf.mxu2  ;;  %v2015_v7 = vpop.f32.mrf.mxu3 }
 0x1cf   : > { %v1849_v10 = vrot.slane %v1786_v4, 1 }
 0x1d1   : > { %v7002_v15 = vsel %vm1856_vm8, %v1848_v48, %v1849_v10  ;;  %v1441_v48 = vsel %vm1414_vm5, %v6074_v38, %v1143_v41  ;;  %v6113_v38 = vld [vmem:[#allocation2 + $0x88] sm:$0xff] }
 0x1d2   : > { %2928 = vst.msk [vmem:[#allocation2 + $0x8c] sm:$0xf] %vm539_vm0, %v8951_v1  ;;  %1156 = vrot.lane.b32.xlu2 %v6113_v38, %s6290_s18 }
 0x1d6   : > { %v1788_v24 = vpop.f32.mrf.mxu2  ;;  %v2016_v21 = vpop.f32.mrf.mxu3 }
 0x1db   : > { %5538 = vmatmul.msk.bf16.gmra.mxu2 %vm1586_vm7, %v6952_v9  ;;  %v1664_v9 = vpop.f32.mrf.mxu0 }
 0x1dc   : > { %v1808_v31 = vrot.slane %v1664_v9, 1 }
 0x1de   : > { %v1790_v16 = vpop.f32.mrf.mxu2  ;;  %v2018_v30 = vpop.f32.mrf.mxu3 }
 0x1df   : > { %v1850_v51 = vrot.slane %v1790_v16, 1  ;;  %v1367_v54 = vpop.permute.xlu1 %1366 }
 0x1e0   : > { %v7026_v60 = vsel %vm1511_vm6, %v1441_v48, %v1367_v54 }
 0x1e1   : > { %5468 = vmatmul.msk.bf16.gmra.mxu0 %vm1586_vm7, %v7026_v60  ;;  %5504 = vmatmul.msk.bf16.gmra.mxu1 %vm1586_vm7, %v7026_v60 }
 0x1e3   : > { %v1666_v18 = vpop.f32.mrf.mxu0 }
 0x1e4   : > { %v1809_v22 = vrot.slane %v1666_v18, 1 }
 0x1e6   : > { %v1792_v40 = vpop.f32.mrf.mxu2  ;;  %v7022_v50 = vpop.f32.mrf.mxu3  ;;  %v1888_v21 = vsel %vm1856_vm8, %v1808_v31, %v1809_v22 }
 0x1e7   : > { %8994 = vst [vmem:[#allocation5_spill] sm:$0xff] %v7022_v50  ;;  %v1851_v53 = vrot.slane %v1792_v40, 1  ;;  %v7044_v16 = vadd.f32 %v1906_v23, %v1888_v21  ;;  %v1147_v18 = vpop.permute.xlu1 %1146 }
 0x1e9   : > { %v1860_v57 = vsel %vm1856_vm8, %v1850_v51, %v1851_v53 }
 0x1ea   : > { %v7030_v4 = vadd.f32 %v2018_v30, %v1860_v57 }
 0x1eb   : > { %5539 = vmatmul.msk.bf16.gmra.mxu2 %vm1586_vm7, %v6974_v27  ;;  %v1444_v27 = vsel %vm1414_vm5, %v6075_v33, %v1145_v35  ;;  %v1669_v41 = vpop.f32.mrf.mxu0 }
 0x1ec   : > { %8995 = vst [vmem:[#allocation6_spill] sm:$0xff] %v7030_v4  ;;  %v1810_v48 = vrot.slane %v1669_v41, 1 }
 0x1ee   : > { %v1795_v7 = vpop.f32.mrf.mxu2  ;;  %v2023_v10 = vpop.f32.mrf.mxu3  ;;  %v1887_v9 = vsel %vm1856_vm8, %v1809_v22, %v1810_v48 }
 0x1ef   : > { %v1852_v36 = vrot.slane %v1795_v7, 1  ;;  %v1369_v40 = vpop.permute.xlu0 %1368 }
 0x1f0   : > { %v7052_v51 = vsel %vm1511_vm6, %v1444_v27, %v1369_v40 }
 0x1f1   : > { %v7040_v24 = vsel %vm1856_vm8, %v1851_v53, %v1852_v36  ;;  %v1908_v53 = vpop.f32.mrf.mxu1  ;;  %5469 = vmatmul.msk.bf16.gmra.mxu0 %vm1586_vm7, %v7052_v51  ;;  %5505 = vmatmul.msk.bf16.gmra.mxu1 %vm1586_vm7, %v7052_v51  ;;  %v6076_v36 = vld [vmem:[#allocation2 + $0x50] sm:$0xff] }
 0x1f2   : > { %8996 = vst [vmem:[#allocation7_spill] sm:$0xff] %v7040_v24  ;;  %v7063_v54 = vadd.f32 %v1908_v53, %v1887_v9  ;;  %v1447_v33 = vsel %vm1414_vm5, %v6076_v36, %v1147_v18  ;;  %v6077_v36 = vld [vmem:[#allocation2 + $0x58] sm:$0xff] }
 0x1f3   : > { %v1671_v10 = vpop.f32.mrf.mxu0  ;;  %2916 = vst.msk [vmem:[#allocation2 + $0x5c] sm:$0xf] %vm539_vm0, %v8951_v1 }
 0x1f6   : > { %v1797_v30 = vpop.f32.mrf.mxu2  ;;  %v2024_v37 = vpop.f32.mrf.mxu3 }
 0x1f7   : > { %v1149_v18 = vpop.permute.xlu0 %1148 }
 0x1f9   : > { %v1911_v31 = vpop.f32.mrf.mxu1 }
 0x1fb   : > { %5540 = vmatmul.msk.bf16.gmra.mxu2 %vm1586_vm7, %v6989_v59  ;;  %v1673_v27 = vpop.f32.mrf.mxu0 }
 0x1fe   : > { %v1799_v57 = vpop.f32.mrf.mxu2  ;;  %v2026_v7 = vpop.f32.mrf.mxu3 }
 0x1ff   : > { %v1853_v22 = vrot.slane %v1799_v57, 1  ;;  %v1371_v30 = vpop.permute.xlu2 %1370 }
 0x200   : > { %v7069_v37 = vsel %vm1511_vm6, %v1447_v33, %v1371_v30 }
 0x201   : > { %v1912_v59 = vpop.f32.mrf.mxu1  ;;  %5470 = vmatmul.msk.bf16.gmra.mxu0 %vm1586_vm7, %v7069_v37  ;;  %5506 = vmatmul.msk.bf16.gmra.mxu1 %vm1586_vm7, %v7069_v37 }
 0x202   : > { %v1373_v59 = vpop.permute.xlu1 %1372 }
 0x203   : > { %v1675_v9 = vpop.f32.mrf.mxu0 }
 0x204   : > { %v1812_v31 = vrot.slane %v1675_v9, 1 }
 0x206   : > { %v1801_v23 = vpop.f32.mrf.mxu2  ;;  %v7065_v21 = vpop.f32.mrf.mxu3 }
 0x207   : > { %8997 = vst [vmem:[#allocation8_spill] sm:$0xff] %v7065_v21  ;;  %v1854_v35 = vrot.slane %v1801_v23, 1 }
 0x209   : > { %v1858_v38 = vsel %vm1856_vm8, %v1853_v22, %v1854_v35  ;;  %v1914_v57 = vpop.f32.mrf.mxu1 }
 0x20a   : > { %v7073_v41 = vadd.f32 %v2026_v7, %v1858_v38  ;;  %v1811_v7 = vrot.slane %v1673_v27, 1 }
 0x20b   : > { %5541 = vmatmul.msk.bf16.gmra.mxu2 %vm1586_vm7, %v7010_v25  ;;  %v1450_v25 = vsel %vm1414_vm5, %v6077_v36, %v1149_v18  ;;  %v1678_v30 = vpop.f32.mrf.mxu0  ;;  %v6078_v36 = vld [vmem:[#allocation2 + $0x60] sm:$0xff]  ;;  %v1151_v18 = vpop.permute.xlu2 %1150 }
 0x20c   : > { %8998 = vst [vmem:[#allocation9_spill] sm:$0xff] %v7073_v41  ;;  %v1886_v22 = vsel %vm1856_vm8, %v1811_v7, %v1812_v31  ;;  %v7093_v27 = vsel %vm1511_vm6, %v1450_v25, %v1373_v59  ;;  %v1375_v25 = vpop.permute.xlu0 %1374 }
 0x20d   : > { %v7090_v38 = vadd.f32 %v1914_v57, %v1886_v22 }
 0x20e   : > { %v1804_v40 = vpop.f32.mrf.mxu2  ;;  %v2031_v48 = vpop.f32.mrf.mxu3 }
 0x20f   : > { %v1855_v53 = vrot.slane %v1804_v40, 1 }
 0x211   : > { %v7083_v10 = vsel %vm1856_vm8, %v1854_v35, %v1855_v53  ;;  %v1813_v35 = vrot.slane %v1678_v30, 1  ;;  %v1916_v40 = vpop.f32.mrf.mxu1  ;;  %5471 = vmatmul.msk.bf16.gmra.mxu0 %vm1586_vm7, %v7093_v27  ;;  %5507 = vmatmul.msk.bf16.gmra.mxu1 %vm1586_vm7, %v7093_v27 }
 0x212   : > { %8999 = vst [vmem:[#allocation10_spill] sm:$0xff] %v7083_v10 }
 0x213   : > { %v1885_v48 = vsel %vm1856_vm8, %v1812_v31, %v1813_v35  ;;  %v1680_v57 = vpop.f32.mrf.mxu0 }
 0x214   : > { %v7103_v53 = vadd.f32 %v1916_v40, %v1885_v48 }
 0x216   : > { %v1806_v23 = vpop.f32.mrf.mxu2  ;;  %v2032_v33 = vpop.f32.mrf.mxu3 }
 0x217   : > { %v1453_v33 = vsel %vm1414_vm5, %v6078_v36, %v1151_v18 }
 0x218   : > { %v7108_v59 = vsel %vm1511_vm6, %v1453_v33, %v1375_v25  ;;  %v6079_v33 = vld [vmem:[#allocation2 + $0x68] sm:$0xff]  ;;  %v1153_v25 = vpop.permute.xlu1 %1152 }
 0x219   : > { %v1919_v7 = vpop.f32.mrf.mxu1  ;;  %2920 = vst.msk [vmem:[#allocation2 + $0x6c] sm:$0xf] %vm539_vm0, %v8951_v1 }
 0x21b   : > { %5542 = vmatmul.msk.bf16.gmra.mxu2 %vm1586_vm7, %v7026_v60  ;;  %v1682_v30 = vpop.f32.mrf.mxu0 }
 0x21c   : > { %v1814_v18 = vrot.slane %v1682_v30, 1 }
 0x21e   : > { %v2054_v9 = vpop.f32.mrf.mxu2 }
 0x21f   : > { %v2198_v31 = vrot.slane %v2054_v9, 2 }
 0x221   : > { %v1920_v60 = vpop.f32.mrf.mxu1  ;;  %5472 = vmatmul.msk.bf16.gmra.mxu0 %vm1586_vm7, %v7108_v59  ;;  %5508 = vmatmul.msk.bf16.gmra.mxu1 %vm1586_vm7, %v7108_v59 }
 0x222   : > { %v1377_v60 = vpop.permute.xlu2 %1376 }
 0x223   : > { %v7121_v57 = vpop.f32.mrf.mxu0 }
 0x226   : > { %v2056_v23 = vpop.f32.mrf.mxu2 }
 0x227   : > { %v2199_v22 = vrot.slane %v2056_v23, 2  ;;  %v8952_v23 = vrot.slane %v7121_v57, 1 }
 0x229   : > { %v2278_v35 = vsel %vm2246_vm9, %v2198_v31, %v2199_v22  ;;  %v1922_v7 = vpop.f32.mrf.mxu1  ;;  %v1456_v31 = vsel %vm1414_vm5, %v6079_v33, %v1153_v25  ;;  %v6080_v25 = vld [vmem:[#allocation2 + $0x70] sm:$0xff] }
 0x22a   : > { %v7113_v40 = vadd.f32 %v2278_v35, %v7044_v16 }
 0x22b   : > { %5543 = vmatmul.msk.bf16.gmra.mxu2 %vm1586_vm7, %v7052_v51  ;;  %v1687_v35 = vpop.f32.mrf.mxu0 }
 0x22c   : > { %v1816_v4 = vrot.slane %v1687_v35, 1 }
 0x22e   : > { %v2059_v48 = vpop.f32.mrf.mxu2 }
 0x22f   : > { %v2200_v9 = vrot.slane %v2059_v48, 2 }
 0x231   : > { %v2277_v36 = vsel %vm2246_vm9, %v2199_v22, %v2200_v9  ;;  %v1884_v22 = vsel %vm1856_vm8, %v1814_v18, %v8952_v23  ;;  %v1924_v48 = vpop.f32.mrf.mxu1  ;;  %v1379_v23 = vpop.permute.xlu1 %1378 }
 0x232   : > { %v7126_v16 = vadd.f32 %v2277_v36, %v7063_v54  ;;  %v1539_v54 = vsel %vm1511_vm6, %v1456_v31, %v1377_v60  ;;  %v1923_v30 = vadd.f32 %v1922_v7, %v1884_v22 }
 0x233   : > { %5473 = vmatmul.msk.bf16.gmra.mxu0 %vm1586_vm7, %v1539_v54  ;;  %5509 = vmatmul.msk.bf16.gmra.mxu1 %vm1586_vm7, %v1539_v54  ;;  %v1689_v36 = vpop.f32.mrf.mxu0 }
 0x236   : > { %v2061_v51 = vpop.f32.mrf.mxu2 }
 0x237   : > { %v1155_v51 = vpop.permute.xlu0 %1154 }
 0x238   : > { %v1459_v18 = vsel %vm1414_vm5, %v6080_v25, %v1155_v51  ;;  %v9000_v51 = vmov 0.0|0.0  }
 0x239   : > { %v1927_v33 = vpop.f32.mrf.mxu1  ;;  %v1541_v60 = vsel %vm1511_vm6, %v1459_v18, %v1379_v23  ;;  %v1157_v18 = vpop.permute.xlu2 %1156 }
 0x23b   : > { %5544 = vmatmul.msk.bf16.gmra.mxu2 %vm1586_vm7, %v7069_v37  ;;  %v1691_v7 = vpop.f32.mrf.mxu0 }
 0x23e   : > { %v2063_v9 = vpop.f32.mrf.mxu2 }
 0x23f   : > { %v2201_v3 = vrot.slane %v2063_v9, 2  ;;  %v1381_v10 = vpop.permute.xlu0 %1380 }
 0x241   : > { %v1928_v22 = vpop.f32.mrf.mxu1 }
 0x243   : > { %5474 = vmatmul.msk.bf16.gmra.mxu0 %vm1586_vm7, %v1541_v60  ;;  %5510 = vmatmul.msk.bf16.gmra.mxu1 %vm1586_vm7, %v1541_v60 }
 0x246   : > { %v2065_v1 = vpop.f32.mrf.mxu2 }
 0x247   : > { %v2202_v31 = vrot.slane %v2065_v1, 2  ;;  %v1693_v1 = vpop.f32.mrf.mxu0 }
 0x249   : > { %v2276_v21 = vsel %vm2246_vm9, %v2201_v3, %v2202_v31  ;;  %v1930_v33 = vpop.f32.mrf.mxu1  ;;  %v1817_v3 = vrot.slane %v1691_v7, 1 }
 0x24a   : > { %v7146_v37 = vadd.f32 %v2276_v21, %v7090_v38  ;;  %v1818_v21 = vrot.slane %v1693_v1, 1  ;;  %v6081_v38 = vld [vmem:[#allocation2 + $0x78] sm:$0xff] }
 0x24b   : > { %5545 = vmatmul.msk.bf16.gmra.mxu2 %vm1586_vm7, %v7093_v27  ;;  %2924 = vst.msk [vmem:[#allocation2 + $0x7c] sm:$0xf] %vm539_vm0, %v9000_v51  ;;  %v1462_v27 = vsel %vm1414_vm5, %v6081_v38, %v1157_v18 }
 0x24e   : > { %v2068_v36 = vpop.f32.mrf.mxu2 }
 0x24f   : > { %v2203_v9 = vrot.slane %v2068_v36, 2  ;;  %v1882_v36 = vsel %vm1856_vm8, %v1817_v3, %v1818_v21  ;;  %v1696_v41 = vpop.f32.mrf.mxu0 }
 0x251   : > { %v2275_v23 = vsel %vm2246_vm9, %v2202_v31, %v2203_v9  ;;  %v1543_v31 = vsel %vm1511_vm6, %v1462_v27, %v1381_v10  ;;  %v1931_v9 = vadd.f32 %v1930_v33, %v1882_v36  ;;  %v9001_v27 = vrot.slane %v7121_v57, 1 }
 0x252   : > { %v7155_v25 = vadd.f32 %v2275_v23, %v7103_v53  ;;  %v1932_v53 = vpop.f32.mrf.mxu1 }
 0x253   : > { %5475 = vmatmul.msk.bf16.gmra.mxu0 %vm1586_vm7, %v1543_v31  ;;  %5511 = vmatmul.msk.bf16.gmra.mxu1 %vm1586_vm7, %v1543_v31 }
 0x256   : > { %v2070_v22 = vpop.f32.mrf.mxu2 }
 0x257   : > { %v1698_v1 = vpop.f32.mrf.mxu0 }
 0x25a   : > { %v1935_v23 = vpop.f32.mrf.mxu1 }
 0x25b   : > { %5546 = vmatmul.msk.bf16.gmra.mxu2 %vm1586_vm7, %v7108_v59  ;;  %v1883_v59 = vsel %vm1856_vm8, %v9001_v27, %v1816_v4 }
 0x25e   : > { %v2072_v7 = vpop.f32.mrf.mxu2 }
 0x25f   : > { %v2204_v51 = vrot.slane %v2072_v7, 2  ;;  %v1700_v22 = vpop.f32.mrf.mxu0  ;;  %v1925_v7 = vadd.f32 %v1924_v48, %v1883_v59 }
 0x262   : > { %v1936_v3 = vpop.f32.mrf.mxu1 }
 0x266   : > { %v2074_v38 = vpop.f32.mrf.mxu2 }
 0x267   : > { %v2205_v18 = vrot.slane %v2074_v38, 2  ;;  %v1702_v23 = vpop.f32.mrf.mxu0 }
 0x269   : > { %v2274_v10 = vsel %vm2246_vm9, %v2204_v51, %v2205_v18  ;;  %v1820_v51 = vrot.slane %v1700_v22, 1 }
 0x26a   : > { %v7169_v33 = vadd.f32 %v2274_v10, %v1923_v30  ;;  %v1938_v38 = vpop.f32.mrf.mxu1  ;;  %v1821_v30 = vrot.slane %v1702_v23, 1 }
 0x26b   : > { %5547 = vmatmul.msk.bf16.gmra.mxu2 %vm1586_vm7, %v1539_v54 }
 0x26c   : > { %v1880_v54 = vsel %vm1856_vm8, %v1820_v51, %v1821_v30 }
 0x26d   : > { %v1939_v50 = vadd.f32 %v1938_v38, %v1880_v54 }
 0x26e   : > { %v2077_v36 = vpop.f32.mrf.mxu2 }
 0x26f   : > { %v2206_v1 = vrot.slane %v2077_v36, 2  ;;  %v1705_v57 = vpop.f32.mrf.mxu0 }
 0x271   : > { %v2273_v35 = vsel %vm2246_vm9, %v2205_v18, %v2206_v1 }
 0x272   : > { %v7178_v3 = vadd.f32 %v2273_v35, %v1925_v7  ;;  %v1940_v24 = vpop.f32.mrf.mxu1  ;;  %v1819_v7 = vrot.slane %v1696_v41, 1 }
 0x274   : > { %v1881_v38 = vsel %vm1856_vm8, %v1818_v21, %v1819_v7 }
 0x276   : > { %v2079_v10 = vpop.f32.mrf.mxu2 }
 0x277   : > { %v1707_v27 = vpop.f32.mrf.mxu0  ;;  %v1933_v10 = vadd.f32 %v1932_v53, %v1881_v38 }
 0x27a   : > { %v1943_v48 = vpop.f32.mrf.mxu1 }
 0x27b   : > { %5548 = vmatmul.msk.bf16.gmra.mxu2 %vm1586_vm7, %v1541_v60 }
 0x27e   : > { %v2081_v4 = vpop.f32.mrf.mxu2 }
 0x27f   : > { %v2207_v36 = vrot.slane %v2081_v4, 2  ;;  %v1709_v18 = vpop.f32.mrf.mxu0 }
 0x280   : > { %v1823_v41 = vrot.slane %v1709_v18, 1  ;;  %v1822_v18 = vrot.slane %v1705_v57, 1 }
 0x282   : > { %v1944_v1 = vpop.f32.mrf.mxu1 }
 0x286   : > { %v2083_v59 = vpop.f32.mrf.mxu2 }
 0x287   : > { %v2208_v43 = vrot.slane %v2083_v59, 2  ;;  %v1711_v51 = vpop.f32.mrf.mxu0 }
 0x288   : > { %v1824_v48 = vrot.slane %v1711_v51, 1 }
 0x289   : > { %v2272_v22 = vsel %vm2246_vm9, %v2207_v36, %v2208_v43 }
 0x28a   : > { %v7185_v23 = vadd.f32 %v2272_v22, %v1931_v9  ;;  %v1946_v54 = vpop.f32.mrf.mxu1  ;;  %v1878_v9 = vsel %vm1856_vm8, %v1823_v41, %v1824_v48 }
 0x28b   : > { %5549 = vmatmul.msk.bf16.gmra.mxu2 %vm1586_vm7, %v1543_v31  ;;  %v1947_v36 = vadd.f32 %v1946_v54, %v1878_v9 }
 0x28e   : > { %v2086_v60 = vpop.f32.mrf.mxu2 }
 0x28f   : > { %v2209_v35 = vrot.slane %v2086_v60, 2  ;;  %v1714_v31 = vpop.f32.mrf.mxu0 }
 0x291   : > { %v2271_v4 = vsel %vm2246_vm9, %v2208_v43, %v2209_v35 }
 0x292   : > { %v7192_v27 = vadd.f32 %v2271_v4, %v1933_v10  ;;  %v1948_v1 = vpop.f32.mrf.mxu1 }
 0x296   : > { %v2088_v59 = vpop.f32.mrf.mxu2 }
 0x297   : > { %v1716_v53 = vpop.f32.mrf.mxu0 }
 0x29a   : > { %v1951_v7 = vpop.f32.mrf.mxu1 }
 0x29b   : > { %5550 = vmatmul.msk.bf16.gmra.mxu2 %vm1586_vm7, %v6530_v20  ;;  %v1879_v20 = vsel %vm1856_vm8, %v1821_v30, %v1822_v18 }
 0x29c   : > { %v1941_v59 = vadd.f32 %v1940_v24, %v1879_v20 }
 0x29e   : > { %v2090_v21 = vpop.f32.mrf.mxu2 }
 0x29f   : > { %v2210_v38 = vrot.slane %v2090_v21, 2  ;;  %v1718_v60 = vpop.f32.mrf.mxu0 }
 0x2a0   : > { %v1826_v53 = vrot.slane %v1718_v60, 1  ;;  %v1825_v60 = vrot.slane %v1714_v31, 1 }
 0x2a2   : > { %v1952_v35 = vpop.f32.mrf.mxu1 }
 0x2a6   : > { %v2092_v22 = vpop.f32.mrf.mxu2 }
 0x2a7   : > { %v2211_v43 = vrot.slane %v2092_v22, 2  ;;  %v1720_v41 = vpop.f32.mrf.mxu0 }
 0x2a8   : > { %v1827_v7 = vrot.slane %v1720_v41, 1 }
 0x2a9   : > { %v2270_v51 = vsel %vm2246_vm9, %v2210_v38, %v2211_v43 }
 0x2aa   : > { %v7200_v10 = vadd.f32 %v2270_v51, %v1939_v50  ;;  %v1954_v9 = vpop.f32.mrf.mxu1  ;;  %v1876_v22 = vsel %vm1856_vm8, %v1826_v53, %v1827_v7 }
 0x2ab   : > { %5551 = vmatmul.msk.bf16.gmra.mxu2 %vm1586_vm7, %v6550_v34  ;;  %v1955_v38 = vadd.f32 %v1954_v9, %v1876_v22 }
 0x2ae   : > { %v2095_v54 = vpop.f32.mrf.mxu2 }
 0x2af   : > { %v2212_v4 = vrot.slane %v2095_v54, 2 }
 0x2b0   : > { %v1723_v34 = vpop.f32.mrf.mxu0 }
 0x2b1   : > { %v2269_v21 = vsel %vm2246_vm9, %v2211_v43, %v2212_v4 }
 0x2b2   : > { %v7208_v57 = vadd.f32 %v2269_v21, %v1941_v59  ;;  %v1956_v35 = vpop.f32.mrf.mxu1 }
 0x2b6   : > { %v2097_v50 = vpop.f32.mrf.mxu2 }
 0x2b8   : > { %v1725_v24 = vpop.f32.mrf.mxu0 }
 0x2ba   : > { %v1959_v18 = vpop.f32.mrf.mxu1 }
 0x2bb   : > { %5552 = vmatmul.msk.bf16.gmra.mxu2 %vm1586_vm7, %v6561_v45  ;;  %v1877_v45 = vsel %vm1856_vm8, %v1824_v48, %v1825_v60 }
 0x2bc   : > { %v1949_v50 = vadd.f32 %v1948_v1, %v1877_v45 }
 0x2be   : > { %v2099_v30 = vpop.f32.mrf.mxu2 }
 0x2bf   : > { %v2213_v20 = vrot.slane %v2099_v30, 2 }
 0x2c0   : > { %v1727_v54 = vpop.f32.mrf.mxu0 }
 0x2c1   : > { %v1829_v24 = vrot.slane %v1727_v54, 1 }
 0x2c2   : > { %v1960_v4 = vpop.f32.mrf.mxu1 }
 0x2c6   : > { %v2101_v51 = vpop.f32.mrf.mxu2 }
 0x2c7   : > { %v2214_v43 = vrot.slane %v2101_v51, 2 }
 0x2c8   : > { %v1729_v53 = vpop.f32.mrf.mxu0 }
 0x2c9   : > { %v2268_v41 = vsel %vm2246_vm9, %v2213_v20, %v2214_v43  ;;  %v1830_v18 = vrot.slane %v1729_v53, 1 }
 0x2ca   : > { %v7216_v59 = vadd.f32 %v2268_v41, %v1947_v36  ;;  %v1962_v22 = vpop.f32.mrf.mxu1 }
 0x2cb   : > { %5553 = vmatmul.msk.bf16.gmra.mxu2 %vm1586_vm7, %v6588_v63  ;;  %v1874_v51 = vsel %vm1856_vm8, %v1829_v24, %v1830_v18 }
 0x2cc   : > { %v1963_v20 = vadd.f32 %v1962_v22, %v1874_v51 }
 0x2ce   : > { %v2104_v9 = vpop.f32.mrf.mxu2 }
 0x2cf   : > { %v2215_v21 = vrot.slane %v2104_v9, 2 }
 0x2d0   : > { %v1732_v63 = vpop.f32.mrf.mxu0 }
 0x2d1   : > { %v2267_v30 = vsel %vm2246_vm9, %v2214_v43, %v2215_v21  ;;  %v1828_v21 = vrot.slane %v1723_v34, 1 }
 0x2d2   : > { %v7224_v31 = vadd.f32 %v2267_v30, %v1949_v50  ;;  %v1964_v4 = vpop.f32.mrf.mxu1 }
 0x2d3   : > { %v1875_v50 = vsel %vm1856_vm8, %v1827_v7, %v1828_v21 }
 0x2d4   : > { %v1957_v30 = vadd.f32 %v1956_v35, %v1875_v50 }
 0x2d6   : > { %v2106_v36 = vpop.f32.mrf.mxu2 }
 0x2d8   : > { %v1734_v1 = vpop.f32.mrf.mxu0 }
 0x2da   : > { %v1967_v60 = vpop.f32.mrf.mxu1 }
 0x2db   : > { %5554 = vmatmul.msk.bf16.gmra.mxu2 %vm1586_vm7, %v6604_v13 }
 0x2de   : > { %v2108_v48 = vpop.f32.mrf.mxu2 }
 0x2df   : > { %v2216_v45 = vrot.slane %v2108_v48, 2 }
 0x2e2   : > { %v1968_v9 = vpop.f32.mrf.mxu1 }
 0x2e6   : > { %v2110_v41 = vpop.f32.mrf.mxu2 }
 0x2e7   : > { %v2217_v43 = vrot.slane %v2110_v41, 2 }
 0x2e9   : > { %v2266_v54 = vsel %vm2246_vm9, %v2216_v45, %v2217_v43 }
 0x2ea   : > { %v7232_v53 = vadd.f32 %v2266_v54, %v1955_v38 }
 0x2eb   : > { %5555 = vmatmul.msk.bf16.gmra.mxu2 %vm1586_vm7, %v6624_v26  ;;  %v1831_v26 = vrot.slane %v1732_v63, 1 }
 0x2ed   : > { %v1873_v35 = vsel %vm1856_vm8, %v1830_v18, %v1831_v26 }
 0x2ee   : > { %v2113_v13 = vpop.f32.mrf.mxu2 }
 0x2ef   : > { %v2218_v22 = vrot.slane %v2113_v13, 2 }
 0x2f1   : > { %v2265_v24 = vsel %vm2246_vm9, %v2217_v43, %v2218_v22  ;;  %v1965_v43 = vadd.f32 %v1964_v4, %v1873_v35 }
 0x2f2   : > { %v7240_v36 = vadd.f32 %v2265_v24, %v1957_v30 }
 0x2f6   : > { %v2115_v34 = vpop.f32.mrf.mxu2 }
 0x2fb   : > { %5556 = vmatmul.msk.bf16.gmra.mxu2 %vm1586_vm7, %v6655_v46 }
 0x2fe   : > { %v2117_v38 = vpop.f32.mrf.mxu2 }
 0x2ff   : > { %v2219_v48 = vrot.slane %v2117_v38, 2 }
 0x306   : > { %v2119_v51 = vpop.f32.mrf.mxu2 }
 0x307   : > { %v2220_v1 = vrot.slane %v2119_v51, 2 }
 0x309   : > { %v2264_v7 = vsel %vm2246_vm9, %v2219_v48, %v2220_v1 }
 0x30a   : > { %v7246_v60 = vadd.f32 %v2264_v7, %v1963_v20 }
 0x30b   : > { %5557 = vmatmul.msk.bf16.gmra.mxu2 %vm1586_vm7, %v6680_v8 }
 0x30e   : > { %v2122_v41 = vpop.f32.mrf.mxu2 }
 0x30f   : > { %v2221_v45 = vrot.slane %v2122_v41, 2 }
 0x311   : > { %v2263_v46 = vsel %vm2246_vm9, %v2220_v1, %v2221_v45 }
 0x312   : > { %v7254_v9 = vadd.f32 %v2263_v46, %v1965_v43  ;;  %v1989_v46 = vadd.f32 %v6820_v28, %v6859_v5 }
 0x316   : > { %v2124_v63 = vpop.f32.mrf.mxu2 }
 0x31b   : > { %5558 = vmatmul.msk.bf16.gmra.mxu2 %vm1586_vm7, %v6710_v29 }
 0x31e   : > { %v2126_v20 = vpop.f32.mrf.mxu2 }
 0x31f   : > { %v2222_v54 = vrot.slane %v2126_v20, 2 }
 0x326   : > { %v2128_v21 = vpop.f32.mrf.mxu2 }
 0x327   : > { %v2223_v50 = vrot.slane %v2128_v21, 2 }
 0x329   : > { %v2262_v8 = vsel %vm2246_vm9, %v2222_v54, %v2223_v50 }
 0x32a   : > { %v7261_v18 = vadd.f32 %v2262_v8, %v6730_v49 }
 0x32b   : > { %5559 = vmatmul.msk.bf16.gmra.mxu2 %vm1586_vm7, %v6724_v47 }
 0x32e   : > { %v2131_v4 = vpop.f32.mrf.mxu2 }
 0x32f   : > { %v2224_v13 = vrot.slane %v2131_v4, 2  ;;  %v1997_v4 = vadd.f32 %v6892_v44, %v6915_v0  ;;  %v5954_v44 = vld [vmem:[%s8949_s2 + $0x8] sm:$0xf]  ;;  %v6262_v0 = vld [vmem:[%s8949_s2 + $0x8] sm:$0x30] }
 0x331   : > { %v2261_v22 = vsel %vm2246_vm9, %v2223_v50, %v2224_v13 }
 0x332   : > { %v7268_v29 = vadd.f32 %v2261_v22, %v6738_v56 }
 0x336   : > { %v2133_v30 = vpop.f32.mrf.mxu2 }
 0x33b   : > { %5560 = vmatmul.msk.bf16.gmra.mxu2 %vm1586_vm7, %v6746_v6 }
 0x33e   : > { %v2135_v24 = vpop.f32.mrf.mxu2 }
 0x33f   : > { %v2225_v38 = vrot.slane %v2135_v24, 2 }
 0x346   : > { %v2137_v34 = vpop.f32.mrf.mxu2 }
 0x347   : > { %v2226_v49 = vrot.slane %v2137_v34, 2 }
 0x349   : > { %v2260_v51 = vsel %vm2246_vm9, %v2225_v38, %v2226_v49 }
 0x34a   : > { %v7275_v47 = vadd.f32 %v2260_v51, %v6788_v52 }
 0x34b   : > { %5561 = vmatmul.msk.bf16.gmra.mxu2 %vm1586_vm7, %v6776_v42 }
 0x34e   : > { %v2140_v48 = vpop.f32.mrf.mxu2 }
 0x34f   : > { %v2227_v56 = vrot.slane %v2140_v48, 2  ;;  %v2005_v48 = vadd.f32 %v6948_v17, %v6967_v19  ;;  %v5990_v17 = vld [vmem:[%s8949_s2] sm:$0xf] }
 0x351   : > { %v2259_v1 = vsel %vm2246_vm9, %v2226_v49, %v2227_v56  ;;  %v5955_v56 = vor.u32 %v6262_v0, %v5954_v44 }
 0x352   : > { %v7282_v6 = vadd.f32 %v2259_v1, %v6799_v61 }
 0x356   : > { %v2142_v26 = vpop.f32.mrf.mxu2 }
 0x35b   : > { %5562 = vmatmul.msk.bf16.gmra.mxu2 %vm1586_vm7, %v6804_v11 }
 0x35e   : > { %v2144_v7 = vpop.f32.mrf.mxu2 }
 0x35f   : > { %v2228_v41 = vrot.slane %v2144_v7, 2 }
 0x366   : > { %v2146_v35 = vpop.f32.mrf.mxu2 }
 0x367   : > { %v2229_v52 = vrot.slane %v2146_v35, 2  ;;  %v6028_v35 = vld [vmem:[%s8949_s2 + $0x10] sm:$0xf] }
 0x369   : > { %v2258_v45 = vsel %vm2246_vm9, %v2228_v41, %v2229_v52  ;;  %v6263_v41 = vld [vmem:[%s8949_s2 + $0x10] sm:$0x30] }
 0x36a   : > { %v7289_v42 = vadd.f32 %v2258_v45, %v6837_v55  ;;  %v6029_v19 = vor.u32 %v6263_v41, %v6028_v35  ;;  %v2387_v41 = vmul.f32 %v7185_v23, %v7185_v23 }
 0x36b   : > { %5563 = vmatmul.msk.bf16.gmra.mxu2 %vm1586_vm7, %v6825_v39 }
 0x36e   : > { %v2149_v43 = vpop.f32.mrf.mxu2 }
 0x36f   : > { %v2230_v61 = vrot.slane %v2149_v43, 2  ;;  %v4393_v43 = vsel %vm1651_vm4, %v6029_v19, 0  ;;  %v2320_v19 = vsel %vm1414_vm5, %v7178_v3, 0.0 }
 0x370   : > { %4402 = vmatpush.bf16.msrb.mxu1 %v4393_v43  ;;  %v2388_v43 = vmul.f32 %v7192_v27, %v7192_v27 }
 0x371   : > { %v2257_v11 = vsel %vm2246_vm9, %v2229_v52, %v2230_v61  ;;  %v6261_v52 = vld [vmem:[%s8949_s2] sm:$0x30] }
 0x372   : > { %v7297_v63 = vadd.f32 %v2257_v11, %v1989_v46  ;;  %v5991_v45 = vor.u32 %v6261_v52, %v5990_v17 }
 0x374   : > { %v4245_v61 = vsel %vm1651_vm4, %v5991_v45, 0 }
 0x375   : > { %4254 = vmatpush.bf16.msrb.mxu0 %v4245_v61 }
 0x376   : > { %v2151_v20 = vpop.f32.mrf.mxu2 }
 0x37b   : > { %5564 = vmatmul.msk.bf16.gmra.mxu2 %vm1586_vm7, %v6871_v32 }
 0x37e   : > { %v2153_v21 = vpop.f32.mrf.mxu2 }
 0x37f   : > { %v2231_v54 = vrot.slane %v2153_v21, 2 }
 0x386   : > { %v2155_v55 = vpop.f32.mrf.mxu2 }
 0x387   : > { %v2232_v50 = vrot.slane %v2155_v55, 2 }
 0x389   : > { %v2256_v39 = vsel %vm2246_vm9, %v2231_v54, %v2232_v50 }
 0x38a   : > { %v7304_v8 = vadd.f32 %v2256_v39, %v6903_v12 }
 0x38b   : > { %5565 = vmatmul.msk.bf16.gmra.mxu2 %vm1586_vm7, %v6896_v58 }
 0x38e   : > { %v2158_v28 = vpop.f32.mrf.mxu2 }
 0x38f   : > { %v2233_v5 = vrot.slane %v2158_v28, 2  ;;  %v2381_v28 = vmul.f32 %v7113_v40, %v7113_v40 }
 0x391   : > { %v2255_v32 = vsel %vm2246_vm9, %v2232_v50, %v2233_v5  ;;  %v2382_v50 = vmul.f32 %v7126_v16, %v7126_v16  ;;  %v2383_v5 = vmul.f32 %v7146_v37, %v7146_v37 }
 0x392   : > { %v7312_v13 = vadd.f32 %v2255_v32, %v1997_v4  ;;  %v2312_v4 = vsel %vm1414_vm5, %v7126_v16, 0.0 }
 0x393   : > { %v2414_v32 = vsel %vm1414_vm5, %v2382_v50, 0.0  ;;  %v2389_v50 = vmul.f32 %v7200_v10, %v7200_v10 }
 0x396   : > { %v2160_v22 = vpop.f32.mrf.mxu2 }
 0x397   : > { %v2311_v22 = vsel %vm1414_vm5, %v7113_v40, 0.0 }
 0x39e   : > { %v2162_v30 = vpop.f32.mrf.mxu2 }
 0x39f   : > { %v2234_v34 = vrot.slane %v2162_v30, 2  ;;  %v2314_v30 = vsel %vm1414_vm5, %v7146_v37, 0.0 }
 0x3a6   : > { %v2164_v24 = vpop.f32.mrf.mxu2 }
 0x3a7   : > { %v2235_v38 = vrot.slane %v2164_v24, 2  ;;  %v2413_v24 = vsel %vm1414_vm5, %v2381_v28, 0.0 }
 0x3a9   : > { %v2254_v12 = vsel %vm2246_vm9, %v2234_v34, %v2235_v38  ;;  %v2313_v34 = vadd.f32 %v2312_v4, %v2311_v22 }
 0x3aa   : > { %v7317_v58 = vadd.f32 %v2254_v12, %v6956_v14  ;;  %v4004_v14 = vsel %vm1651_vm4, %v5955_v56, 0  ;;  %v2385_v12 = vmul.f32 %v7169_v33, %v7169_v33 }
 0x3ab   : > { %4013 = vmatpush.bf16.msrb.mxu3 %v4004_v14  ;;  %v2315_v44 = vadd.f32 %v2314_v30, %v2313_v34  ;;  %v2326_v30 = vsel %vm1414_vm5, %v7200_v10, 0.0 }
 0x3ac   : > { %v2420_v35 = vsel %vm1414_vm5, %v2385_v12, 0.0  ;;  %v2391_v12 = vmul.f32 %v7216_v59, %v7216_v59 }
 0x3ae   : > { %v2167_v49 = vpop.f32.mrf.mxu2 }
 0x3af   : > { %v2236_v51 = vrot.slane %v2167_v49, 2  ;;  %v2415_v49 = vadd.f32 %v2414_v32, %v2413_v24  ;;  %v2426_v32 = vsel %vm1414_vm5, %v2388_v43, 0.0 }
 0x3b1   : > { %v2253_v1 = vsel %vm2246_vm9, %v2235_v38, %v2236_v51  ;;  %v2416_v38 = vsel %vm1414_vm5, %v2383_v5, 0.0  ;;  %v2316_v51 = vsel %vm1414_vm5, %v7155_v25, 0.0  ;;  %v2324_v5 = vsel %vm1414_vm5, %v7192_v27, 0.0 }
 0x3b2   : > { %v7329_v26 = vadd.f32 %v2253_v1, %v2005_v48  ;;  %v2386_v48 = vmul.f32 %v7178_v3, %v7178_v3  ;;  %v2417_v56 = vadd.f32 %v2416_v38, %v2415_v49  ;;  %v2318_v1 = vsel %vm1414_vm5, %v7169_v33, 0.0 }
 0x3b3   : > { %v2428_v38 = vsel %vm1414_vm5, %v2389_v50, 0.0  ;;  %v2395_v50 = vmul.f32 %v7246_v60, %v7246_v60 }
 0x3b4   : > { %v2422_v45 = vsel %vm1414_vm5, %v2386_v48, 0.0  ;;  %v2392_v48 = vmul.f32 %v7224_v31, %v7224_v31 }
 0x3b6   : > { %v2169_v7 = vpop.f32.mrf.mxu2 }
 0x3b7   : > { %v2317_v7 = vadd.f32 %v2316_v51, %v2315_v44  ;;  %v2328_v51 = vsel %vm1414_vm5, %v7208_v57, 0.0 }
 0x3b9   : > { %v2319_v52 = vadd.f32 %v2318_v1, %v2317_v7  ;;  %v2330_v1 = vsel %vm1414_vm5, %v7216_v59, 0.0  ;;  %v2432_v7 = vsel %vm1414_vm5, %v2391_v12, 0.0  ;;  %v2397_v12 = vmul.f32 %v7261_v18, %v7261_v18 }
 0x3be   : > { %v2171_v46 = vpop.f32.mrf.mxu2 }
 0x3bf   : > { %v2237_v20 = vrot.slane %v2171_v46, 2  ;;  %v2322_v46 = vsel %vm1414_vm5, %v7185_v23, 0.0 }
 0x3c6   : > { %v7346_v11 = vpop.f32.mrf.mxu2 }
 0x3c7   : > { %v2238_v21 = vrot.slane %v7346_v11, 2 }
 0x3c9   : > { %v2252_v55 = vsel %vm2246_vm9, %v2237_v20, %v2238_v21  ;;  %v2321_v20 = vadd.f32 %v2320_v19, %v2319_v52  ;;  %v2434_v52 = vsel %vm1414_vm5, %v2392_v48, 0.0  ;;  %v2398_v48 = vmul.f32 %v7268_v29, %v7268_v29 }
 0x3ca   : > { %v7354_v54 = vadd.f32 %v2252_v55, %v6991_v62  ;;  %v2384_v62 = vmul.f32 %v7155_v25, %v7155_v25  ;;  %v2424_v55 = vsel %vm1414_vm5, %v2387_v41, 0.0 }
 0x3cb   : > { %v2323_v4 = vadd.f32 %v2322_v46, %v2321_v20 }
 0x3cc   : > { %v2418_v0 = vsel %vm1414_vm5, %v2384_v62, 0.0  ;;  %v2390_v62 = vmul.f32 %v7208_v57, %v7208_v57 }
 0x3cd   : > { %v2419_v17 = vadd.f32 %v2418_v0, %v2417_v56  ;;  %v2325_v34 = vadd.f32 %v2324_v5, %v2323_v4  ;;  %v2336_v5 = vsel %vm1414_vm5, %v7240_v36, 0.0 }
 0x3ce   : > { %v7358_v39 = vpop.f32.mrf.mxu2  ;;  %v2430_v0 = vsel %vm1414_vm5, %v2390_v62, 0.0  ;;  %v2396_v62 = vmul.f32 %v7254_v9, %v7254_v9 }
 0x3cf   : > { %v2421_v61 = vadd.f32 %v2420_v35, %v2419_v17  ;;  %v2327_v44 = vadd.f32 %v2326_v30, %v2325_v34  ;;  %v2393_v35 = vmul.f32 %v7232_v53, %v7232_v53  ;;  %v2332_v17 = vsel %vm1414_vm5, %v7224_v31, 0.0 }
 0x3d0   : > { %v2338_v30 = vsel %vm1414_vm5, %v7246_v60, 0.0 }
 0x3d1   : > { %v2423_v28 = vadd.f32 %v2422_v45, %v2421_v61  ;;  %v2394_v45 = vmul.f32 %v7240_v36, %v7240_v36  ;;  %v2334_v61 = vsel %vm1414_vm5, %v7232_v53, 0.0 }
 0x3d3   : > { %v2425_v22 = vadd.f32 %v2424_v55, %v2423_v28  ;;  %v2436_v55 = vsel %vm1414_vm5, %v2393_v35, 0.0  ;;  %v2444_v35 = vsel %vm1414_vm5, %v2397_v12, 0.0 }
 0x3d5   : > { %v2427_v49 = vadd.f32 %v2426_v32, %v2425_v22  ;;  %v2438_v32 = vsel %vm1414_vm5, %v2394_v45, 0.0  ;;  %v2446_v45 = vsel %vm1414_vm5, %v2398_v48, 0.0  ;;  %v2403_v48 = vmul.f32 %v7304_v8, %v7304_v8 }
 0x3d6   : > { %v2178_v14 = vpop.f32.mrf.mxu2 }
 0x3d7   : > { %v2429_v56 = vadd.f32 %v2428_v38, %v2427_v49  ;;  %v2329_v14 = vadd.f32 %v2328_v51, %v2327_v44  ;;  %v2440_v38 = vsel %vm1414_vm5, %v2395_v50, 0.0  ;;  %v2340_v51 = vsel %vm1414_vm5, %v7254_v9, 0.0 }
 0x3d9   : > { %v2431_v41 = vadd.f32 %v2430_v0, %v2429_v56  ;;  %v2331_v19 = vadd.f32 %v2330_v1, %v2329_v14  ;;  %v2442_v0 = vsel %vm1414_vm5, %v2396_v62, 0.0  ;;  %v2342_v1 = vsel %vm1414_vm5, %v7261_v18, 0.0 }
 0x3db   : > { %v2433_v43 = vadd.f32 %v2432_v7, %v2431_v41  ;;  %v2333_v20 = vadd.f32 %v2332_v17, %v2331_v19  ;;  %v2399_v41 = vmul.f32 %v7275_v47, %v7275_v47  ;;  %v2344_v19 = vsel %vm1414_vm5, %v7268_v29, 0.0 }
 0x3dd   : > { %v2435_v28 = vadd.f32 %v2434_v52, %v2433_v43  ;;  %v2335_v4 = vadd.f32 %v2334_v61, %v2333_v20  ;;  %v2400_v43 = vmul.f32 %v7282_v6, %v7282_v6  ;;  %v2346_v20 = vsel %vm1414_vm5, %v7275_v47, 0.0 }
 0x3de   : > { %v7404_v24 = vpop.f32.mrf.mxu2  ;;  %v2448_v50 = vsel %vm1414_vm5, %v2399_v41, 0.0  ;;  %v2354_v41 = vsel %vm1414_vm5, %v7304_v8, 0.0 }
 0x3df   : > { %v2437_v22 = vadd.f32 %v2436_v55, %v2435_v28  ;;  %v2337_v34 = vadd.f32 %v2336_v5, %v2335_v4  ;;  %v2401_v28 = vmul.f32 %v7289_v42, %v7289_v42  ;;  %v2348_v4 = vsel %vm1414_vm5, %v7282_v6, 0.0 }
 0x3e0   : > { %v2450_v62 = vsel %vm1414_vm5, %v2400_v43, 0.0 }
 0x3e1   : > { %v2439_v49 = vadd.f32 %v2438_v32, %v2437_v22  ;;  %v2339_v44 = vadd.f32 %v2338_v30, %v2337_v34  ;;  %v2350_v30 = vsel %vm1414_vm5, %v7289_v42, 0.0  ;;  %v2402_v34 = vmul.f32 %v7297_v63, %v7297_v63 }
 0x3e3   : > { %v2441_v56 = vadd.f32 %v2440_v38, %v2439_v49  ;;  %v2341_v7 = vadd.f32 %v2340_v51, %v2339_v44  ;;  %v2452_v49 = vsel %vm1414_vm5, %v2401_v28, 0.0  ;;  %v2239_v51 = vrot.slane %v7358_v39, 2 }
 0x3e5   : > { %v2443_v17 = vadd.f32 %v2442_v0, %v2441_v56  ;;  %v2343_v52 = vadd.f32 %v2342_v1, %v2341_v7  ;;  %v2352_v0 = vsel %vm1414_vm5, %v7297_v63, 0.0 }
 0x3e6   : > { %v7426_v46 = vpop.f32.mrf.mxu2 }
 0x3e7   : > { %v2445_v61 = vadd.f32 %v2444_v35, %v2443_v17  ;;  %v2345_v55 = vadd.f32 %v2344_v19, %v2343_v52  ;;  %v2241_v1 = vrot.slane %v7426_v46, 2  ;;  %v2454_v35 = vsel %vm1414_vm5, %v2402_v34, 0.0  ;;  %v9002_v46 = vld [vmem:[#allocation4_spill] sm:$0xff] }
 0x3e8   : > { %v2404_v17 = vmul.f32 %v7312_v13, %v7312_v13  ;;  %v2251_v19 = vsel %vm2246_vm9, %v2238_v21, %v2239_v51  ;;  %v2240_v52 = vrot.slane %v7404_v24, 2  ;;  %v2013_v43 = vadd.f32 %v9002_v46, %v7002_v15  ;;  %v9005_v51 = vld [vmem:[#allocation6_spill] sm:$0xff] }
 0x3e9   : > { %v2447_v5 = vadd.f32 %v2446_v45, %v2445_v61  ;;  %v2347_v32 = vadd.f32 %v2346_v20, %v2345_v55  ;;  %v2456_v61 = vsel %vm1414_vm5, %v2403_v48, 0.0  ;;  %v2356_v20 = vsel %vm1414_vm5, %v7312_v13, 0.0 }
 0x3ea   : > { %v2405_v55 = vmul.f32 %v7317_v58, %v7317_v58  ;;  %v2250_v11 = vsel %vm2246_vm9, %v2240_v52, %v2241_v1  ;;  %v2458_v21 = vsel %vm1414_vm5, %v2404_v17, 0.0  ;;  %v2358_v24 = vsel %vm1414_vm5, %v7317_v58, 0.0 }
 0x3eb   : > { %v2449_v22 = vadd.f32 %v2448_v50, %v2447_v5  ;;  %v2349_v12 = vadd.f32 %v2348_v4, %v2347_v32  ;;  %v2406_v15 = vmul.f32 %v7329_v26, %v7329_v26  ;;  %v9003_v4 = vld [vmem:[#allocation7_spill] sm:$0xff]  ;;  %v9004_v32 = vld [vmem:[#allocation5_spill] sm:$0xff] }
 0x3ed   : > { %v2451_v44 = vadd.f32 %v2450_v62, %v2449_v22  ;;  %v2351_v56 = vadd.f32 %v2350_v30, %v2349_v12  ;;  %v2021_v62 = vadd.f32 %v9004_v32, %v9003_v4  ;;  %v2360_v12 = vsel %vm1414_vm5, %v7329_v26, 0.0 }
 0x3ee   : > { %v2185_v14 = vpop.f32.mrf.mxu2 }
 0x3ef   : > { %v2453_v7 = vadd.f32 %v2452_v49, %v2451_v44  ;;  %v2353_v39 = vadd.f32 %v2352_v0, %v2351_v56  ;;  %v2242_v45 = vrot.slane %v2185_v14, 2  ;;  %v7499_v14 = vadd.f32 %v2251_v19, %v2013_v43 }
 0x3f0   : > { %v2407_v49 = vmul.f32 %v7354_v54, %v7354_v54  ;;  %v7511_v44 = vadd.f32 %v2250_v11, %v9005_v51  ;;  %v2462_v56 = vsel %vm1414_vm5, %v2406_v15, 0.0 }
 0x3f1   : > { %v2455_v50 = vadd.f32 %v2454_v35, %v2453_v7  ;;  %v2355_v28 = vadd.f32 %v2354_v41, %v2353_v39  ;;  %v2249_v34 = vsel %vm2246_vm9, %v2241_v1, %v2242_v45  ;;  %v2362_v7 = vsel %vm1414_vm5, %v7354_v54, 0.0 }
 0x3f2   : > { %v2408_v1 = vmul.f32 %v7499_v14, %v7499_v14  ;;  %v7518_v35 = vadd.f32 %v2249_v34, %v2021_v62  ;;  %v2464_v39 = vsel %vm1414_vm5, %v2407_v49, 0.0  ;;  %v2364_v19 = vsel %vm1414_vm5, %v7499_v14, 0.0 }
 0x3f3   : > { %v2457_v22 = vadd.f32 %v2456_v61, %v2455_v50  ;;  %v2357_v30 = vadd.f32 %v2356_v20, %v2355_v28  ;;  %v2409_v52 = vmul.f32 %v7511_v44, %v7511_v44  ;;  %v2366_v61 = vsel %vm1414_vm5, %v7511_v44, 0.0 }
 0x3f4   : > { %v2466_v43 = vsel %vm1414_vm5, %v2408_v1, 0.0  ;;  %v2410_v20 = vmul.f32 %v7518_v35, %v7518_v35  ;;  %v2368_v15 = vsel %vm1414_vm5, %v7518_v35, 0.0 }
 0x3f5   : > { %v2459_v0 = vadd.f32 %v2458_v21, %v2457_v22  ;;  %v2359_v48 = vadd.f32 %v2358_v24, %v2357_v30  ;;  %v2468_v24 = vsel %vm1414_vm5, %v2409_v52, 0.0  ;;  %v9006_v30 = vld [vmem:[#allocation9_spill] sm:$0xff] }
 0x3f6   : > { %v2187_v38 = vpop.f32.mrf.mxu2  ;;  %v2470_v22 = vsel %vm1414_vm5, %v2410_v20, 0.0 }
 0x3f7   : > { %v2460_v38 = vsel %vm1414_vm5, %v2405_v55, 0.0  ;;  %v2361_v17 = vadd.f32 %v2360_v12, %v2359_v48 }
 0x3f8   : > { %v2461_v41 = vadd.f32 %v2460_v38, %v2459_v0 }
 0x3f9   : > { %v2363_v46 = vadd.f32 %v2362_v7, %v2361_v17  ;;  %v9008_v17 = vld [vmem:[#allocation8_spill] sm:$0xff] }
 0x3fa   : > { %v2463_v45 = vadd.f32 %v2462_v56, %v2461_v41  ;;  %v9007_v41 = vld [vmem:[#allocation10_spill] sm:$0xff] }
 0x3fb   : > { %v2365_v28 = vadd.f32 %v2364_v19, %v2363_v46 }
 0x3fc   : > { %v2465_v50 = vadd.f32 %v2464_v39, %v2463_v45  ;;  %v2029_v39 = vadd.f32 %v9008_v17, %v9007_v41 }
 0x3fd   : > { %v2367_v32 = vadd.f32 %v2366_v61, %v2365_v28 }
 0x3fe   : > { %v2189_v5 = vpop.f32.mrf.mxu2  ;;  %v2467_v4 = vadd.f32 %v2466_v43, %v2465_v50 }
 0x3ff   : > { %v2243_v11 = vrot.slane %v2189_v5, 2  ;;  %v2369_v12 = vadd.f32 %v2368_v15, %v2367_v32 }
 0x400   : > { %v2469_v38 = vadd.f32 %v2468_v24, %v2467_v4 }
 0x402   : > { %v2471_v51 = vadd.f32 %v2470_v22, %v2469_v38 }
 0x406   : > { %v2191_v55 = vpop.f32.mrf.mxu2 }
 0x407   : > { %v2244_v21 = vrot.slane %v2191_v55, 2 }
 0x409   : > { %v2248_v62 = vsel %vm2246_vm9, %v2243_v11, %v2244_v21 }
 0x40a   : > { %v7537_v34 = vadd.f32 %v2248_v62, %v9006_v30 }
 0x40c   : > { %v2370_v5 = vsel %vm1414_vm5, %v7537_v34, 0.0  ;;  %v2411_v49 = vmul.f32 %v7537_v34, %v7537_v34 }
 0x40d   : > { %v2371_v0 = vadd.f32 %v2370_v5, %v2369_v12 }
 0x40e   : > { %v2472_v48 = vsel %vm1414_vm5, %v2411_v49, 0.0  ;;  %v2194_v56 = vpop.f32.mrf.mxu2 }
 0x40f   : > { %v2473_v7 = vadd.f32 %v2472_v48, %v2471_v51  ;;  %v2245_v1 = vrot.slane %v2194_v56, 2 }
 0x411   : > { %v2247_v19 = vsel %vm2246_vm9, %v2244_v21, %v2245_v1 }
 0x412   : > { %v7548_v52 = vadd.f32 %v2247_v19, %v2029_v39 }
 0x414   : > { %v2372_v45 = vsel %vm1414_vm5, %v7548_v52, 0.0  ;;  %v2412_v46 = vmul.f32 %v7548_v52, %v7548_v52 }
 0x415   : > { %v2373_v43 = vadd.f32 %v2372_v45, %v2371_v0 }
 0x416   : > { %v2474_v61 = vsel %vm1414_vm5, %v2412_v46, 0.0  ;;  %v2196_v20 = vpop.f32.mrf.mxu2 }
 0x417   : > { %v2374_v55 = vrot.slane %v2373_v43, 4  ;;  %v2475_v50 = vadd.f32 %v2474_v61, %v2473_v7 }
 0x419   : > { %v2375_v28 = vadd.f32 %v2374_v55, %v2373_v43  ;;  %v2476_v11 = vrot.slane %v2475_v50, 4 }
 0x41b   : > { %v2376_v24 = vrot.slane %v2375_v28, 2  ;;  %v2477_v15 = vadd.f32 %v2476_v11, %v2475_v50 }
 0x41d   : > { %v2377_v4 = vadd.f32 %v2376_v24, %v2375_v28  ;;  %v2478_v21 = vrot.slane %v2477_v15, 2 }
 0x41f   : > { %v2378_v32 = vrot.slane %v2377_v4, 1  ;;  %v2479_v62 = vadd.f32 %v2478_v21, %v2477_v15 }
 0x421   : > { %v2379_v22 = vadd.f32 %v2378_v32, %v2377_v4  ;;  %v2480_v30 = vrot.slane %v2479_v62, 1 }
 0x423   : > { %v7555_v38 = vmul.f32 0.00390625, %v2379_v22  ;;  %v2481_v12 = vadd.f32 %v2480_v30, %v2479_v62 }
 0x425   : > { %v2482_v5 = vmul.f32 0.00390625, %v2481_v12  ;;  %v2483_v49 = vmul.f32 %v7555_v38, %v7555_v38  ;;  %v2527_v51 = vsub.f32 %v7537_v34, %v7555_v38  ;;  %v2528_v0 = vsub.f32 %v7548_v52, %v7555_v38 }
 0x426   : > { %v2526_v1 = vsub.f32 %v7518_v35, %v7555_v38  ;;  %v2497_v19 = vsub.f32 %v7113_v40, %v7555_v38  ;;  %v2498_v45 = vsub.f32 %v7126_v16, %v7555_v38  ;;  %v2499_v34 = vsub.f32 %v7146_v37, %v7555_v38 }
 0x427   : > { %v2484_v48 = vsub.f32 %v2482_v5, %v2483_v49  ;;  %v2500_v52 = vsub.f32 %v7155_v25, %v7555_v38  ;;  %v2501_v46 = vsub.f32 %v7169_v33, %v7555_v38  ;;  %v2502_v61 = vsub.f32 %v7178_v3, %v7555_v38 }
 0x428   : > { %v2503_v20 = vsub.f32 %v7185_v23, %v7555_v38  ;;  %v2504_v40 = vsub.f32 %v7192_v27, %v7555_v38  ;;  %v2505_v16 = vsub.f32 %v7200_v10, %v7555_v38  ;;  %v2506_v37 = vsub.f32 %v7208_v57, %v7555_v38 }
 0x429   : > { %v2485_v56 = vmax.f32 %v2484_v48, 0.0  ;;  %v2507_v25 = vsub.f32 %v7216_v59, %v7555_v38  ;;  %v2508_v33 = vsub.f32 %v7224_v31, %v7555_v38  ;;  %v2509_v3 = vsub.f32 %v7232_v53, %v7555_v38 }
 0x42a   : > { %v2510_v23 = vsub.f32 %v7240_v36, %v7555_v38  ;;  %v2511_v27 = vsub.f32 %v7246_v60, %v7555_v38  ;;  %v2512_v10 = vsub.f32 %v7254_v9, %v7555_v38  ;;  %v2513_v57 = vsub.f32 %v7261_v18, %v7555_v38 }
 0x42b   : > { %v2486_v7 = vadd.f32 1e-05, %v2485_v56  ;;  %v2514_v59 = vsub.f32 %v7268_v29, %v7555_v38  ;;  %v2515_v53 = vsub.f32 %v7275_v47, %v7555_v38  ;;  %v2516_v36 = vsub.f32 %v7282_v6, %v7555_v38 }
 0x42c   : > { %v2517_v60 = vsub.f32 %v7289_v42, %v7555_v38  ;;  %v2518_v9 = vsub.f32 %v7297_v63, %v7555_v38  ;;  %v2519_v18 = vsub.f32 %v7304_v8, %v7555_v38  ;;  %v2520_v29 = vsub.f32 %v7312_v13, %v7555_v38 }
 0x42d   : > { %6277 = vrsqrt.f32 %v2486_v7  ;;  %vm2493_vm11 = vweird.f32 %v2486_v7  ;;  %v2521_v47 = vsub.f32 %v7317_v58, %v7555_v38  ;;  %v2522_v6 = vsub.f32 %v7329_v26, %v7555_v38 }
 0x42e   : > { %v2523_v28 = vsub.f32 %v7354_v54, %v7555_v38 }
 0x433   : > { %v6278_v41 = vpop.eup %6277 }
 0x434   : > { %v2488_v17 = vmul.f32 %v6278_v41, %v2486_v7  ;;  %vm2494_vm10 = vweird.f32 %v6278_v41 }
 0x435   : > { %vm2495_vm12 = vmor %vm2493_vm11, %vm2494_vm10 }
 0x436   : > { %v2489_v39 = vmul.f32 %v6278_v41, %v2488_v17 }
 0x438   : > { %v2490_v43 = vmul.f32 0.5, %v2489_v39  ;;  %v2525_v39 = vsub.f32 %v7511_v44, %v7555_v38 }
 0x43a   : > { %v2491_v55 = vsub.f32 1.5, %v2490_v43 }
 0x43c   : > { %v2492_v31 = vmul.f32 %v6278_v41, %v2491_v55 }
 0x43e   : > { %v2496_v50 = vsel %vm2495_vm12, %v6278_v41, %v2492_v31 }
 0x43f   : > { %v2559_v42 = vmul.f32 %v2527_v51, %v2496_v50  ;;  %v2560_v11 = vmul.f32 %v2528_v0, %v2496_v50  ;;  %v7619_v24 = vmul.f32 %v2497_v19, %v2496_v50  ;;  %v7621_v63 = vmul.f32 %v2498_v45, %v2496_v50 }
 0x440   : > { %v2531_v8 = vmul.f32 %v2499_v34, %v2496_v50  ;;  %v7623_v15 = vmul.f32 %v2500_v52, %v2496_v50  ;;  %v7625_v13 = vmul.f32 %v2501_v46, %v2496_v50  ;;  %v7627_v4 = vmul.f32 %v2502_v61, %v2496_v50 }
 0x441   : > { %v2591_v58 = vmax.f32 %v2559_v42, 0.0  ;;  %v2592_v21 = vmax.f32 %v2560_v11, 0.0  ;;  %v7629_v32 = vmul.f32 %v2503_v20, %v2496_v50  ;;  %v7631_v26 = vmul.f32 %v2504_v40, %v2496_v50 }
 0x442   : > { %v7633_v54 = vmul.f32 %v2505_v16, %v2496_v50  ;;  %v7635_v62 = vmul.f32 %v2506_v37, %v2496_v50  ;;  %v7637_v22 = vmul.f32 %v2507_v25, %v2496_v50  ;;  %v7639_v30 = vmul.f32 %v2508_v33, %v2496_v50 }
 0x443   : > { %v2623_v12 = vrot.slane %v2591_v58, 7  ;;  %v2624_v5 = vrot.slane %v2592_v21, 7  ;;  %v2768_v49 = vperm.slane %v2592_v21, 6  ;;  %v2524_v51 = vsub.f32 %v7499_v14, %v7555_v38 }
 0x444   : > { %v7643_v0 = vmul.f32 %v2509_v3, %v2496_v50  ;;  %v7645_v48 = vmul.f32 %v2510_v23, %v2496_v50  ;;  %v7647_v56 = vmul.f32 %v2511_v27, %v2496_v50  ;;  %v7649_v7 = vmul.f32 %v2512_v10, %v2496_v50 }
 0x445   : > { %v2625_v41 = vsel %vm238_vm1, %v2624_v5, 0.0  ;;  %v2626_v17 = vsel %vm238_vm1, %v2623_v12, %v2624_v5  ;;  %v7657_v19 = vmul.f32 %v2513_v57, %v2496_v50  ;;  %v7661_v52 = vmul.f32 %v2514_v59, %v2496_v50 }
 0x446   : > { %v2831_v45 = vsel %vm384_vm3, %v2768_v49, %v2625_v41  ;;  %v2894_v34 = vpack.c.bf16 %v2626_v17, %v2626_v17  ;;  %v7663_v46 = vmul.f32 %v2515_v53, %v2496_v50  ;;  %v7665_v61 = vmul.f32 %v2516_v36, %v2496_v50 }
 0x447   : > { %v2895_v43 = vpack.c.bf16 %v2831_v45, %v2831_v45  ;;  %v7667_v20 = vmul.f32 %v2517_v60, %v2496_v50  ;;  %v7669_v40 = vmul.f32 %v2518_v9, %v2496_v50  ;;  %v7672_v44 = vmul.f32 %v2519_v18, %v2496_v50 }
 0x448   : > { %2958 = vst.msk [vmem:[#allocation2 + $0x104] sm:$0xf] %vm539_vm0, %v2894_v34  ;;  %v7674_v16 = vmul.f32 %v2520_v29, %v2496_v50  ;;  %v7676_v37 = vmul.f32 %v2521_v47, %v2496_v50  ;;  %v7678_v25 = vmul.f32 %v2522_v6, %v2496_v50  ;;  %v7681_v33 = vmul.f32 %v2523_v28, %v2496_v50 }
 0x449   : > { %2959 = vst.msk [vmem:[#allocation2 + $0x108] sm:$0xf] %vm539_vm0, %v2895_v43  ;;  %v7683_v55 = vmul.f32 %v2524_v51, %v2496_v50  ;;  %v7685_v3 = vmul.f32 %v2525_v39, %v2496_v50  ;;  %v7690_v23 = vmul.f32 %v2526_v1, %v2496_v50  ;;  %v2563_v27 = vmax.f32 %v2531_v8, 0.0 }
 0x44a   : > { %9010 = vst [vmem:[#allocation4_spill] sm:$0xff] %v7676_v37  ;;  %v2564_v10 = vmax.f32 %v7623_v15, 0.0  ;;  %v2688_v53 = vperm.slane %v2591_v58, 1  ;;  %v2627_v36 = vsel %vm238_vm1, 0.0, %v2623_v12  ;;  %v2562_v18 = vmax.f32 %v7621_v63, 0.0 }
 0x44b   : > { %9011 = vst [vmem:[#allocation7_spill] sm:$0xff] %v7678_v25  ;;  %v2595_v57 = vrot.slane %v2563_v27, 7  ;;  %v2674_v31 = vperm.slane %v2563_v27, 1  ;;  %v2561_v8 = vmax.f32 %v7619_v24, 0.0  ;;  %v8981_v21 = vmax.f32 %v7629_v32, 0.0 }
 0x44c   : > { %9012 = vst [vmem:[#allocation5_spill] sm:$0xff] %v7681_v33  ;;  %v2596_v59 = vrot.slane %v2564_v10, 7  ;;  %v2749_v29 = vsel %vm290_vm2, %v2688_v53, %v2627_v36  ;;  %v2594_v47 = vrot.slane %v2562_v18, 7  ;;  %v2753_v6 = vperm.slane %v2562_v18, 6 }
 0x44d   : > { %9013 = vst [vmem:[#allocation6_spill] sm:$0xff] %v7683_v55  ;;  %v2669_v9 = vsel %vm238_vm1, 0.0, %v2595_v57  ;;  %v2893_v50 = vpack.c.bf16 %v2749_v29, %v2749_v29  ;;  %v8976_v5 = vmax.f32 %v7633_v54, 0.0  ;;  %v8975_v49 = vmax.f32 %v7635_v62, 0.0 }
 0x44e   : > { %9014 = vst [vmem:[#allocation9_spill] sm:$0xff] %v7685_v3  ;;  %v2668_v60 = vsel %vm238_vm1, %v2595_v57, %v2596_v59  ;;  %v2693_v35 = vsel %vm290_vm2, %v2674_v31, %v2669_v9  ;;  %v2670_v28 = vsel %vm238_vm1, %v2594_v47, 0.0  ;;  %v8974_v51 = vmax.f32 %v7637_v22, 0.0 }
 0x44f   : > { %9015 = vst [vmem:[#allocation10_spill] sm:$0xff] %v7690_v23  ;;  %v2838_v38 = vpack.c.bf16 %v2668_v60, %v2668_v60  ;;  %v2837_v1 = vpack.c.bf16 %v2693_v35, %v2693_v35  ;;  %v2771_v42 = vsel %vm384_vm3, %v2753_v6, %v2670_v28  ;;  %v8973_v24 = vmax.f32 %v7639_v30, 0.0 }
 0x450   : > { %2957 = vst.msk [vmem:[#allocation2 + $0x100] sm:$0xf] %vm539_vm0, %v2893_v50  ;;  %v2835_v11 = vpack.c.bf16 %v2771_v42, %v2771_v42  ;;  %v8972_v41 = vmax.f32 %v7643_v0, 0.0  ;;  %v8971_v17 = vmax.f32 %v7645_v48, 0.0  ;;  %v8970_v39 = vmax.f32 %v7647_v56, 0.0 }
 0x451   : > { %2902 = vst.msk [vmem:[#allocation2 + $0x24] sm:$0xf] %vm539_vm0, %v2838_v38  ;;  %v8969_v45 = vmax.f32 %v7649_v7, 0.0  ;;  %v8968_v34 = vmax.f32 %v7657_v19, 0.0  ;;  %v8955_v43 = vmax.f32 %v7685_v3, 0.0  ;;  %v8956_v27 = vmax.f32 %v7690_v23, 0.0 }
 0x452   : > { %2901 = vst.msk [vmem:[#allocation2 + $0x20] sm:$0xf] %vm539_vm0, %v2837_v1  ;;  %v8967_v57 = vmax.f32 %v7661_v52, 0.0  ;;  %v8966_v31 = vmax.f32 %v7663_v46, 0.0  ;;  %v8957_v53 = vmax.f32 %v7681_v33, 0.0  ;;  %v8958_v36 = vmax.f32 %v7683_v55, 0.0 }
 0x453   : > { %2961 = vst.msk [vmem:[#allocation2] sm:$0xf] %vm539_vm0, %v2837_v1  ;;  %v8959_v60 = vmax.f32 %v7665_v61, 0.0  ;;  %v8960_v9 = vmax.f32 %v7667_v20, 0.0  ;;  %v8961_v35 = vmax.f32 %v7676_v37, 0.0  ;;  %v8965_v1 = vmax.f32 %v7669_v40, 0.0 }
 0x454   : > { %2962 = vst.msk [vmem:[#allocation2 + $0x4] sm:$0xf] %vm539_vm0, %v2838_v38  ;;  %v8962_v38 = vmax.f32 %v7678_v25, 0.0  ;;  %v8963_v18 = vmax.f32 %v7672_v44, 0.0  ;;  %v8964_v29 = vmax.f32 %v7674_v16, 0.0  ;;  %v2593_v50 = vrot.slane %v2561_v8, 7 }
 0x455   : > { %2899 = vst.msk [vmem:[#allocation2 + $0x18] sm:$0xf] %vm539_vm0, %v2835_v11  ;;  %v2667_v6 = vsel %vm238_vm1, %v2596_v59, 0.0  ;;  %v7746_v28 = vrot.slane %v8955_v43, 7  ;;  %v7750_v42 = vrot.slane %v8956_v27, 7  ;;  %v2673_v11 = vperm.slane %v2561_v8, 1 }
 0x456   : > { %v7754_v15 = vrot.slane %v8966_v31, 7  ;;  %v7758_v12 = vrot.slane %v8957_v53, 7  ;;  %v7762_v59 = vrot.slane %v8958_v36, 7  ;;  %v7766_v27 = vrot.slane %v8959_v60, 7 }
 0x457   : > { %9016 = vst [vmem:[#allocation8_spill] sm:$0xff] %v7746_v28  ;;  %v7774_v8 = vrot.slane %v8961_v35, 7  ;;  %v7778_v53 = vrot.slane %v8962_v38, 7  ;;  %v7783_v36 = vrot.slane %v8963_v18, 7  ;;  %v7787_v60 = vrot.slane %v8964_v29, 7 }
 0x458   : > { %9017 = vst [vmem:[#allocation3_spill] sm:$0xff] %v7750_v42  ;;  %v2672_v35 = vsel %vm238_vm1, 0.0, %v2593_v50  ;;  %v7796_v38 = vrot.slane %v8965_v1, 7  ;;  %v7804_v29 = vsel %vm238_vm1, %v7746_v28, %v7750_v42  ;;  %v7830_v1 = vrot.slane %v8969_v45, 7 }
 0x459   : > { %v6229_v63 = vld [vmem:[#allocation2 + $0x20] sm:$0xff]  ;;  %9018 = vst [vmem:[#allocation11_spill] sm:$0xff] %v7758_v12  ;;  %v7841_v31 = vrot.slane %v8973_v24, 7  ;;  %v2601_v45 = vrot.slane %v8976_v5, 7  ;;  %v9024_v24 = vmax.f32 %v7631_v26, 0.0  ;;  %v9025_v5 = vmax.f32 %v7625_v13, 0.0 }
 0x45a   : > { %3705 = vrot.lane.b32.xlu2 %v6229_v63, %s6291_s19  ;;  %v2754_v63 = vperm.slane %v2564_v10, 6  ;;  %9019 = vst [vmem:[#allocation12_spill] sm:$0xff] %v7762_v59  ;;  %v6199_v43 = vld [vmem:[#allocation2 + $0x20] sm:$0xff]  ;;  %v7770_v10 = vrot.slane %v8960_v9, 7  ;;  %v2671_v9 = vsel %vm238_vm1, %v2593_v50, %v2594_v47  ;;  %v7808_v47 = vrot.slane %v8968_v34, 7 }
 0x45b   : > { %9020 = vst [vmem:[#allocation13_spill] sm:$0xff] %v7774_v8  ;;  %v2834_v18 = vpack.c.bf16 %v2671_v9, %v2671_v9  ;;  %v7818_v9 = vsel %vm238_vm1, %v7758_v12, %v7762_v59  ;;  %v7849_v34 = vrot.slane %v8971_v17, 7  ;;  %v2597_v42 = vrot.slane %v9025_v5, 7 }
 0x45c   : > { %v6198_v58 = vld [vmem:[#allocation2 + $0x18] sm:$0xff]  ;;  %9021 = vst [vmem:[#allocation14_spill] sm:$0xff] %v7778_v53  ;;  %v2641_v17 = vsel %vm238_vm1, %v7770_v10, %v7796_v38  ;;  %v9026_v28 = vmax.f32 %v7627_v4, 0.0  ;;  %v9027_v55 = vmax.f32 %v7625_v13, 0.0 }
 0x45d   : > { %3483 = vrot.lane.b32.xlu0 %v6198_v58, %s6290_s18  ;;  %9022 = vst [vmem:[#allocation15_spill] sm:$0xff] %v7783_v36  ;;  %v2689_v58 = vsel %vm290_vm2, %v2673_v11, %v2672_v35  ;;  %v7822_v35 = vrot.slane %v8974_v51, 7  ;;  %v7826_v11 = vrot.slane %v8970_v39, 7  ;;  %v2602_v39 = vrot.slane %v8975_v49, 7 }
 0x45e   : > { %9023 = vst [vmem:[#allocation16_spill] sm:$0xff] %v7787_v60  ;;  %v2833_v50 = vpack.c.bf16 %v2689_v58, %v2689_v58  ;;  %v7837_v58 = vsel %vm238_vm1, %v7774_v8, %v7778_v53  ;;  %v2600_v51 = vrot.slane %v9024_v24, 7  ;;  %v2598_v23 = vrot.slane %v9026_v28, 7 }
 0x45f   : > { %2898 = vst.msk [vmem:[#allocation2 + $0x14] sm:$0xf] %vm539_vm0, %v2834_v18  ;;  %v7856_v18 = vsel %vm238_vm1, %v7783_v36, %v7787_v60  ;;  %v2650_v59 = vsel %vm238_vm1, %v7826_v11, %v7830_v1  ;;  %v2656_v5 = vsel %vm238_vm1, %v7822_v35, %v7841_v31  ;;  %v2659_v28 = vsel %vm238_vm1, %v2601_v45, %v2602_v39 }
 0x460   : > { %2897 = vst.msk [vmem:[#allocation2 + $0x10] sm:$0xf] %vm539_vm0, %v2833_v50  ;;  %v2644_v50 = vsel %vm238_vm1, %v7754_v15, %v7766_v27  ;;  %v2675_v53 = vperm.slane %v9027_v55, 1  ;;  %v2666_v33 = vsel %vm238_vm1, 0.0, %v2597_v42  ;;  %v2850_v37 = vpack.c.bf16 %v2659_v28, %v2659_v28 }
 0x461   : > { %v2854_v36 = vpack.c.bf16 %v2656_v5, %v2656_v5  ;;  %v2862_v13 = vpack.c.bf16 %v2650_v59, %v2650_v59  ;;  %v2657_v28 = vsel %vm238_vm1, 0.0, %v7822_v35  ;;  %v9036_v35 = vmax.f32 %v7645_v48, 0.0 }
 0x462   : > { %3485 = vrot.lane.b32.xlu2 %v6199_v43, %s6290_s18  ;;  %v7812_v43 = vrot.slane %v8967_v57, 7  ;;  %v7845_v57 = vrot.slane %v8972_v41, 7  ;;  %v2599_v41 = vrot.slane %v8981_v21, 7  ;;  %v2775_v21 = vsel %vm384_vm3, %v2754_v63, %v2667_v6  ;;  %2914 = vst.msk [vmem:[#allocation2 + $0x54] sm:$0xf] %vm539_vm0, %v2850_v37 }
 0x463   : > { %v2665_v6 = vsel %vm238_vm1, %v2597_v42, %v2598_v23  ;;  %v2839_v63 = vpack.c.bf16 %v2775_v21, %v2775_v21  ;;  %v2697_v8 = vsel %vm290_vm2, %v2675_v53, %v2666_v33  ;;  %v9028_v42 = vmax.f32 %v7627_v4, 0.0  ;;  %2918 = vst.msk [vmem:[#allocation2 + $0x64] sm:$0xf] %vm539_vm0, %v2854_v36 }
 0x464   : > { %v2647_v49 = vsel %vm238_vm1, %v7808_v47, %v7812_v43  ;;  %v2653_v24 = vsel %vm238_vm1, %v7845_v57, %v7849_v34  ;;  %v2662_v3 = vsel %vm238_vm1, %v2599_v41, %v2600_v51  ;;  %v2842_v25 = vpack.c.bf16 %v2665_v6, %v2665_v6  ;;  %2926 = vst.msk [vmem:[#allocation2 + $0x84] sm:$0xf] %vm539_vm0, %v2862_v13 }
 0x465   : > { %2903 = vst.msk [vmem:[#allocation2 + $0x28] sm:$0xf] %vm539_vm0, %v2839_v63  ;;  %v2846_v60 = vpack.c.bf16 %v2662_v3, %v2662_v3  ;;  %v2858_v21 = vpack.c.bf16 %v2653_v24, %v2653_v24  ;;  %v2866_v55 = vpack.c.bf16 %v2647_v49, %v2647_v49  ;;  %v2870_v33 = vpack.c.bf16 %v2644_v50, %v2644_v50 }
 0x466   : > { %2963 = vst.msk [vmem:[#allocation2 + $0x8] sm:$0xf] %vm539_vm0, %v2839_v63  ;;  %v2755_v63 = vperm.slane %v9028_v42, 6  ;;  %v9029_v3 = vmax.f32 %v7629_v32, 0.0  ;;  %v9030_v37 = vmax.f32 %v7631_v26, 0.0  ;;  %v2878_v4 = vpack.c.bf16 %v7856_v18, %v7856_v18 }
 0x467   : > { %v6197_v12 = vld [vmem:[#allocation2 + $0x10] sm:$0xff]  ;;  %2906 = vst.msk [vmem:[#allocation2 + $0x34] sm:$0xf] %vm539_vm0, %v2842_v25  ;;  %v2664_v25 = vsel %vm238_vm1, %v2598_v23, 0.0  ;;  %v9031_v32 = vmax.f32 %v7633_v54, 0.0  ;;  %v2661_v23 = vsel %vm238_vm1, %v2600_v51, 0.0  ;;  %v2886_v54 = vpack.c.bf16 %v7818_v9, %v7818_v9 }
 0x468   : > { %3481 = vrot.lane.b32.xlu1 %v6197_v12, %s6290_s18  ;;  %v2841_v12 = vpack.c.bf16 %v2697_v8, %v2697_v8  ;;  %2910 = vst.msk [vmem:[#allocation2 + $0x44] sm:$0xf] %vm539_vm0, %v2846_v60  ;;  %v2676_v53 = vperm.slane %v9029_v3, 1  ;;  %v2874_v8 = vpack.c.bf16 %v2641_v17, %v2641_v17  ;;  %v2756_v49 = vperm.slane %v9030_v37, 6 }
 0x469   : > { %2922 = vst.msk [vmem:[#allocation2 + $0x74] sm:$0xf] %vm539_vm0, %v2858_v21  ;;  %v2663_v60 = vsel %vm238_vm1, 0.0, %v2599_v41  ;;  %v2677_v59 = vperm.slane %v9031_v32, 1  ;;  %v2882_v17 = vpack.c.bf16 %v7837_v58, %v7837_v58  ;;  %v9032_v26 = vmax.f32 %v7635_v62, 0.0 }
 0x46a   : > { %2905 = vst.msk [vmem:[#allocation2 + $0x30] sm:$0xf] %vm539_vm0, %v2841_v12  ;;  %v2660_v18 = vsel %vm238_vm1, 0.0, %v2601_v45  ;;  %v2779_v50 = vsel %vm384_vm3, %v2755_v63, %v2664_v25  ;;  %v9033_v51 = vmax.f32 %v7637_v22, 0.0  ;;  %v2658_v62 = vsel %vm238_vm1, %v2602_v39, 0.0 }
 0x46b   : > { %2930 = vst.msk [vmem:[#allocation2 + $0x94] sm:$0xf] %vm539_vm0, %v2866_v55  ;;  %v2757_v41 = vperm.slane %v9032_v26, 6  ;;  %v2701_v24 = vsel %vm290_vm2, %v2676_v53, %v2663_v60  ;;  %v2890_v45 = vpack.c.bf16 %v7804_v29, %v7804_v29  ;;  %v9034_v9 = vmax.f32 %v7639_v30, 0.0 }
 0x46c   : > { %v6230_v36 = vld [vmem:[#allocation2 + $0x28] sm:$0xff]  ;;  %2934 = vst.msk [vmem:[#allocation2 + $0xa4] sm:$0xf] %vm539_vm0, %v2870_v33  ;;  %v2678_v58 = vperm.slane %v9033_v51, 1  ;;  %v2783_v22 = vsel %vm384_vm3, %v2756_v49, %v2661_v23  ;;  %v9035_v39 = vmax.f32 %v7643_v0, 0.0  ;;  %v2655_v29 = vsel %vm238_vm1, %v7841_v31, 0.0 }
 0x46d   : > { %2938 = vst.msk [vmem:[#allocation2 + $0xb4] sm:$0xf] %vm539_vm0, %v2874_v8  ;;  %v2758_v5 = vperm.slane %v9034_v9, 6  ;;  %v2705_v30 = vsel %vm290_vm2, %v2677_v59, %v2660_v18  ;;  %v2843_v12 = vpack.c.bf16 %v2779_v50, %v2779_v50  ;;  %v2759_v13 = vperm.slane %v9036_v35, 6 }
 0x46e   : > { %2942 = vst.msk [vmem:[#allocation2 + $0xc4] sm:$0xf] %vm539_vm0, %v2878_v4  ;;  %v2679_v21 = vperm.slane %v9035_v39, 1  ;;  %v2654_v55 = vsel %vm238_vm1, 0.0, %v7845_v57  ;;  %v2787_v0 = vsel %vm384_vm3, %v2757_v41, %v2658_v62  ;;  %v2845_v42 = vpack.c.bf16 %v2701_v24, %v2701_v24  ;;  %v9047_v39 = vld [vmem:[#allocation15_spill] sm:$0xff] }
 0x46f   : > { %2946 = vst.msk [vmem:[#allocation2 + $0xd4] sm:$0xf] %vm539_vm0, %v2882_v17  ;;  %v9037_v31 = vmax.f32 %v7647_v56, 0.0  ;;  %v2652_v48 = vsel %vm238_vm1, %v7849_v34, 0.0  ;;  %v2709_v33 = vsel %vm290_vm2, %v2678_v58, %v2657_v28  ;;  %v2847_v3 = vpack.c.bf16 %v2783_v22, %v2783_v22  ;;  %v6200_v34 = vld [vmem:[#allocation2 + $0x28] sm:$0xff] }
 0x470   : > { %3707 = vrot.lane.b32.xlu1 %v6230_v36, %s6291_s19  ;;  %2950 = vst.msk [vmem:[#allocation2 + $0xe4] sm:$0xf] %vm539_vm0, %v2886_v54  ;;  %v9038_v57 = vmax.f32 %v7649_v7, 0.0  ;;  %v2651_v25 = vsel %vm238_vm1, 0.0, %v7826_v11  ;;  %v2791_v56 = vsel %vm384_vm3, %v2758_v5, %v2655_v29  ;;  %v2849_v8 = vpack.c.bf16 %v2705_v30, %v2705_v30  ;;  %v9048_v30 = vld [vmem:[#allocation4_spill] sm:$0xff] }
 0x471   : > { %v6231_v6 = vld [vmem:[#allocation2 + $0x30] sm:$0xff]  ;;  %v2680_v63 = vperm.slane %v9037_v31, 1  ;;  %2954 = vst.msk [vmem:[#allocation2 + $0xf4] sm:$0xf] %vm539_vm0, %v2890_v45  ;;  %v9039_v37 = vmax.f32 %v7657_v19, 0.0  ;;  %v2649_v60 = vsel %vm238_vm1, %v7830_v1, 0.0  ;;  %v2713_v7 = vsel %vm290_vm2, %v2679_v21, %v2654_v55 }
 0x472   : > { %3709 = vrot.lane.b32.xlu0 %v6231_v6, %s6291_s19  ;;  %v2760_v53 = vperm.slane %v9038_v57, 6  ;;  %2966 = vst.msk [vmem:[#allocation2 + $0x114] sm:$0xf] %vm539_vm0, %v2890_v45  ;;  %v2851_v4 = vpack.c.bf16 %v2787_v0, %v2787_v0  ;;  %v9040_v11 = vmax.f32 %v7661_v52, 0.0  ;;  %v2648_v32 = vsel %vm238_vm1, 0.0, %v7808_v47  ;;  %v9051_v31 = vld [vmem:[#allocation7_spill] sm:$0xff] }
 0x473   : > { %v2681_v49 = vperm.slane %v9039_v37, 1  ;;  %2907 = vst.msk [vmem:[#allocation2 + $0x38] sm:$0xf] %vm539_vm0, %v2843_v12  ;;  %v2795_v19 = vsel %vm384_vm3, %v2759_v13, %v2652_v48  ;;  %v2853_v59 = vpack.c.bf16 %v2709_v33, %v2709_v33  ;;  %v9041_v1 = vmax.f32 %v7663_v46, 0.0  ;;  %v9050_v13 = vld [vmem:[#allocation16_spill] sm:$0xff]  ;;  %v9053_v33 = vld [vmem:[#allocation13_spill] sm:$0xff] }
 0x474   : > { %v2761_v36 = vperm.slane %v9040_v11, 6  ;;  %2909 = vst.msk [vmem:[#allocation2 + $0x40] sm:$0xf] %vm539_vm0, %v2845_v42  ;;  %v2646_v52 = vsel %vm238_vm1, %v7812_v43, 0.0  ;;  %v2717_v17 = vsel %vm290_vm2, %v2680_v63, %v2651_v25  ;;  %v2855_v26 = vpack.c.bf16 %v2791_v56, %v2791_v56  ;;  %v6201_v43 = vld [vmem:[#allocation2 + $0x30] sm:$0xff] }
 0x475   : > { %v2682_v23 = vperm.slane %v9041_v1, 1  ;;  %2911 = vst.msk [vmem:[#allocation2 + $0x48] sm:$0xf] %vm539_vm0, %v2847_v3  ;;  %v9042_v47 = vmax.f32 %v7665_v61, 0.0  ;;  %v2645_v18 = vsel %vm238_vm1, 0.0, %v7754_v15  ;;  %v2799_v46 = vsel %vm384_vm3, %v2760_v53, %v2649_v60  ;;  %v9054_v25 = vld [vmem:[#allocation5_spill] sm:$0xff] }
 0x476   : > { %v2857_v50 = vpack.c.bf16 %v2713_v7, %v2713_v7  ;;  %2913 = vst.msk [vmem:[#allocation2 + $0x50] sm:$0xf] %vm539_vm0, %v2849_v8  ;;  %v9043_v54 = vmax.f32 %v7667_v20, 0.0  ;;  %v2643_v58 = vsel %vm238_vm1, %v7766_v27, 0.0  ;;  %v2721_v61 = vsel %vm290_vm2, %v2681_v49, %v2648_v32  ;;  %v9057_v7 = vld [vmem:[#allocation6_spill] sm:$0xff] }
 0x477   : > { %v2762_v41 = vperm.slane %v9042_v47, 6  ;;  %v2859_v62 = vpack.c.bf16 %v2795_v19, %v2795_v19  ;;  %2915 = vst.msk [vmem:[#allocation2 + $0x58] sm:$0xf] %vm539_vm0, %v2851_v4  ;;  %v9044_v15 = vmax.f32 %v7669_v40, 0.0  ;;  %v2642_v45 = vsel %vm238_vm1, 0.0, %v7770_v10 }
 0x478   : > { %3487 = vrot.lane.b32.xlu1 %v6200_v34, %s6290_s18  ;;  %v2683_v51 = vperm.slane %v9043_v54, 1  ;;  %v2803_v20 = vsel %vm384_vm3, %v2761_v36, %v2646_v52  ;;  %v2861_v9 = vpack.c.bf16 %v2717_v17, %v2717_v17  ;;  %2917 = vst.msk [vmem:[#allocation2 + $0x60] sm:$0xf] %vm539_vm0, %v2853_v59  ;;  %v9045_v27 = vmax.f32 %v7672_v44, 0.0  ;;  %v9056_v34 = vld [vmem:[#allocation14_spill] sm:$0xff]  ;;  %v9059_v36 = vld [vmem:[#allocation11_spill] sm:$0xff] }
 0x479   : > { %v2763_v24 = vperm.slane %v9044_v15, 6  ;;  %v2640_v40 = vsel %vm238_vm1, %v7796_v38, 0.0  ;;  %v2725_v28 = vsel %vm290_vm2, %v2682_v23, %v2645_v18  ;;  %v2863_v22 = vpack.c.bf16 %v2799_v46, %v2799_v46  ;;  %2919 = vst.msk [vmem:[#allocation2 + $0x68] sm:$0xf] %vm539_vm0, %v2855_v26  ;;  %v9060_v23 = vld [vmem:[#allocation9_spill] sm:$0xff]  ;;  %v9062_v26 = vld [vmem:[#allocation12_spill] sm:$0xff] }
 0x47a   : > { %3489 = vrot.lane.b32.xlu0 %v6201_v43, %s6290_s18  ;;  %v2684_v5 = vperm.slane %v9045_v27, 1  ;;  %v9046_v10 = vmax.f32 %v7674_v16, 0.0  ;;  %v2639_v21 = vsel %vm238_vm1, 0.0, %v9047_v39  ;;  %v2807_v44 = vsel %vm384_vm3, %v2762_v41, %v2643_v58  ;;  %2921 = vst.msk [vmem:[#allocation2 + $0x70] sm:$0xf] %vm539_vm0, %v2857_v50  ;;  %v6232_v38 = vld [vmem:[#allocation2 + $0x38] sm:$0xff] }
 0x47b   : > { %v2865_v29 = vpack.c.bf16 %v2721_v61, %v2721_v61  ;;  %v9049_v12 = vmax.f32 %v9048_v30, 0.0  ;;  %v2637_v55 = vsel %vm238_vm1, %v9050_v13, 0.0  ;;  %v2729_v16 = vsel %vm290_vm2, %v2683_v51, %v2642_v45  ;;  %2923 = vst.msk [vmem:[#allocation2 + $0x78] sm:$0xf] %vm539_vm0, %v2859_v62  ;;  %v6233_v42 = vld [vmem:[#allocation2 + $0x40] sm:$0xff]  ;;  %3711 = vrot.lane.b32.xlu2 %v6232_v38, %s6291_s19  ;;  %v9063_v46 = vld [vmem:[#allocation10_spill] sm:$0xff] }
 0x47c   : > { %v2764_v6 = vperm.slane %v9046_v10, 6  ;;  %v2867_v0 = vpack.c.bf16 %v2803_v20, %v2803_v20  ;;  %v9052_v63 = vmax.f32 %v9051_v31, 0.0  ;;  %v2636_v3 = vsel %vm238_vm1, 0.0, %v9053_v33  ;;  %2925 = vst.msk [vmem:[#allocation2 + $0x80] sm:$0xf] %vm539_vm0, %v2861_v9  ;;  %v6234_v1 = vld [vmem:[#allocation2 + $0x48] sm:$0xff] }
 0x47d   : > { %v2685_v35 = vperm.slane %v9049_v12, 1  ;;  %v2811_v57 = vsel %vm384_vm3, %v2763_v24, %v2640_v40  ;;  %v2869_v53 = vpack.c.bf16 %v2725_v28, %v2725_v28  ;;  %v9055_v56 = vmax.f32 %v9054_v25, 0.0  ;;  %2927 = vst.msk [vmem:[#allocation2 + $0x88] sm:$0xf] %vm539_vm0, %v2863_v22  ;;  %v9065_v54 = vld [vmem:[#allocation8_spill] sm:$0xff]  ;;  %v9066_v62 = vld [vmem:[#allocation3_spill] sm:$0xff] }
 0x47e   : > { %v2765_v48 = vperm.slane %v9052_v63, 6  ;;  %v2634_v37 = vsel %vm238_vm1, %v9056_v34, 0.0  ;;  %v2733_v49 = vsel %vm290_vm2, %v2684_v5, %v2639_v21  ;;  %v2871_v60 = vpack.c.bf16 %v2807_v44, %v2807_v44  ;;  %2929 = vst.msk [vmem:[#allocation2 + $0x90] sm:$0xf] %vm539_vm0, %v2865_v29  ;;  %v6202_v27 = vld [vmem:[#allocation2 + $0x38] sm:$0xff]  ;;  %v6203_v28 = vld [vmem:[#allocation2 + $0x40] sm:$0xff] }
 0x47f   : > { %v2686_v8 = vperm.slane %v9055_v56, 1  ;;  %v9058_v4 = vmax.f32 %v9057_v7, 0.0  ;;  %v2633_v32 = vsel %vm238_vm1, 0.0, %v9059_v36  ;;  %v2815_v19 = vsel %vm384_vm3, %v2764_v6, %v2637_v55  ;;  %2931 = vst.msk [vmem:[#allocation2 + $0x98] sm:$0xf] %vm539_vm0, %v2867_v0  ;;  %v6204_v21 = vld [vmem:[#allocation2 + $0x48] sm:$0xff] }
 0x480   : > { %3713 = vrot.lane.b32.xlu1 %v6233_v42, %s6291_s19  ;;  %v2873_v59 = vpack.c.bf16 %v2729_v16, %v2729_v16  ;;  %v9061_v52 = vmax.f32 %v9060_v23, 0.0  ;;  %v2631_v47 = vsel %vm238_vm1, %v9062_v26, 0.0  ;;  %v2737_v41 = vsel %vm290_vm2, %v2685_v35, %v2636_v3  ;;  %2933 = vst.msk [vmem:[#allocation2 + $0xa0] sm:$0xf] %vm539_vm0, %v2869_v53  ;;  %v6235_v14 = vld [vmem:[#allocation2 + $0x50] sm:$0xff]  ;;  %v6236_v29 = vld [vmem:[#allocation2 + $0x58] sm:$0xff] }
 0x481   : > { %v2766_v11 = vperm.slane %v9058_v4, 6  ;;  %v2875_v18 = vpack.c.bf16 %v2811_v57, %v2811_v57  ;;  %v9064_v50 = vmax.f32 %v9063_v46, 0.0  ;;  %v2630_v51 = vsel %vm238_vm1, 0.0, %v9065_v54  ;;  %2935 = vst.msk [vmem:[#allocation2 + $0xa8] sm:$0xf] %vm539_vm0, %v2871_v60  ;;  %v6237_v38 = vld [vmem:[#allocation2 + $0x60] sm:$0xff] }
 0x482   : > { %v2687_v17 = vperm.slane %v9061_v52, 1  ;;  %v2819_v58 = vsel %vm384_vm3, %v2765_v48, %v2634_v37  ;;  %v2877_v61 = vpack.c.bf16 %v2733_v49, %v2733_v49  ;;  %3715 = vrot.lane.b32.xlu0 %v6234_v1, %s6291_s19  ;;  %v2628_v15 = vsel %vm238_vm1, %v9066_v62, 0.0  ;;  %2937 = vst.msk [vmem:[#allocation2 + $0xb0] sm:$0xf] %vm539_vm0, %v2873_v59  ;;  %v6205_v30 = vld [vmem:[#allocation2 + $0x50] sm:$0xff]  ;;  %v6206_v12 = vld [vmem:[#allocation2 + $0x58] sm:$0xff] }
 0x483   : > { %v2767_v43 = vperm.slane %v9064_v50, 6  ;;  %v2741_v24 = vsel %vm290_vm2, %v2686_v8, %v2633_v32  ;;  %v2879_v45 = vpack.c.bf16 %v2815_v19, %v2815_v19  ;;  %v2823_v20 = vsel %vm384_vm3, %v2766_v11, %v2631_v47  ;;  %2939 = vst.msk [vmem:[#allocation2 + $0xb8] sm:$0xf] %vm539_vm0, %v2875_v18  ;;  %3491 = vrot.lane.b32.xlu2 %v6202_v27, %s6290_s18  ;;  %v6207_v35 = vld [vmem:[#allocation2 + $0x60] sm:$0xff]  ;;  %v6238_v13 = vld [vmem:[#allocation2 + $0x68] sm:$0xff]  ;;  %v6239_v55 = vld [vmem:[#allocation2 + $0x70] sm:$0xff] }
 0x484   : > { %v2881_v9 = vpack.c.bf16 %v2737_v41, %v2737_v41  ;;  %v2745_v5 = vsel %vm290_vm2, %v2687_v17, %v2630_v51  ;;  %v2883_v40 = vpack.c.bf16 %v2819_v58, %v2819_v58  ;;  %v2885_v10 = vpack.c.bf16 %v2741_v24, %v2741_v24  ;;  %2941 = vst.msk [vmem:[#allocation2 + $0xc0] sm:$0xf] %vm539_vm0, %v2877_v61  ;;  %v6240_v16 = vld [vmem:[#allocation2 + $0x78] sm:$0xff]  ;;  %v6208_v0 = vld [vmem:[#allocation2 + $0x68] sm:$0xff]  ;;  %v6209_v42 = vld [vmem:[#allocation2 + $0x70] sm:$0xff] }
 0x485   : > { %v2827_v22 = vsel %vm384_vm3, %v2767_v43, %v2628_v15  ;;  %v2887_v6 = vpack.c.bf16 %v2823_v20, %v2823_v20  ;;  %2943 = vst.msk [vmem:[#allocation2 + $0xc8] sm:$0xf] %vm539_vm0, %v2879_v45  ;;  %v2889_v39 = vpack.c.bf16 %v2745_v5, %v2745_v5  ;;  %v6210_v31 = vld [vmem:[#allocation2 + $0x78] sm:$0xff]  ;;  %v6241_v63 = vld [vmem:[#allocation2 + $0x80] sm:$0xff]  ;;  %v6242_v48 = vld [vmem:[#allocation2 + $0x88] sm:$0xff] }
 0x486   : > { %2945 = vst.msk [vmem:[#allocation2 + $0xd0] sm:$0xf] %vm539_vm0, %v2881_v9  ;;  %v2891_v44 = vpack.c.bf16 %v2827_v22, %v2827_v22  ;;  %v6243_v33 = vld [vmem:[#allocation2 + $0x90] sm:$0xff]  ;;  %v6211_v3 = vld [vmem:[#allocation2 + $0x80] sm:$0xff]  ;;  %v6212_v57 = vld [vmem:[#allocation2 + $0x88] sm:$0xff] }
 0x487   : > { %2947 = vst.msk [vmem:[#allocation2 + $0xd8] sm:$0xf] %vm539_vm0, %v2883_v40  ;;  %v6213_v53 = vld [vmem:[#allocation2 + $0x90] sm:$0xff]  ;;  %v6244_v25 = vld [vmem:[#allocation2 + $0x98] sm:$0xff]  ;;  %v6245_v56 = vld [vmem:[#allocation2 + $0xa0] sm:$0xff] }
 0x488   : > { %3493 = vrot.lane.b32.xlu1 %v6203_v28, %s6290_s18  ;;  %2949 = vst.msk [vmem:[#allocation2 + $0xe0] sm:$0xf] %vm539_vm0, %v2885_v10  ;;  %v6246_v8 = vld [vmem:[#allocation2 + $0xa8] sm:$0xff]  ;;  %v6214_v34 = vld [vmem:[#allocation2 + $0x98] sm:$0xff]  ;;  %v6215_v37 = vld [vmem:[#allocation2 + $0xa0] sm:$0xff] }
 0x489   : > { %2951 = vst.msk [vmem:[#allocation2 + $0xe8] sm:$0xf] %vm539_vm0, %v2887_v6  ;;  %v6216_v49 = vld [vmem:[#allocation2 + $0xa8] sm:$0xff]  ;;  %v6247_v60 = vld [vmem:[#allocation2 + $0xb0] sm:$0xff]  ;;  %v6165_v11 = vld [vmem:[#allocation2] sm:$0xff] }
 0x48a   : > { %3495 = vrot.lane.b32.xlu0 %v6204_v21, %s6290_s18  ;;  %2953 = vst.msk [vmem:[#allocation2 + $0xf0] sm:$0xf] %vm539_vm0, %v2889_v39  ;;  %v6248_v7 = vld [vmem:[#allocation2 + $0xb8] sm:$0xff]  ;;  %v6217_v1 = vld [vmem:[#allocation2 + $0xb0] sm:$0xff]  ;;  %v6166_v41 = vld [vmem:[#allocation2 + $0x8] sm:$0xff] }
 0x48b   : > { %2955 = vst.msk [vmem:[#allocation2 + $0xf8] sm:$0xf] %vm539_vm0, %v2891_v44  ;;  %3717 = vrot.lane.b32.xlu2 %v6235_v14, %s6291_s19  ;;  %v6249_v4 = vld [vmem:[#allocation2 + $0xc0] sm:$0xff]  ;;  %v6218_v23 = vld [vmem:[#allocation2 + $0xb8] sm:$0xff]  ;;  %v6167_v24 = vld [vmem:[#allocation2 + $0x10] sm:$0xff] }
 0x48c   : > { %2965 = vst.msk [vmem:[#allocation2 + $0x110] sm:$0xf] %vm539_vm0, %v2889_v39  ;;  %v6219_v52 = vld [vmem:[#allocation2 + $0xc0] sm:$0xff]  ;;  %v6250_v17 = vld [vmem:[#allocation2 + $0xc8] sm:$0xff]  ;;  %v6168_v39 = vld [vmem:[#allocation2 + $0x18] sm:$0xff] }
 0x48d   : > { %2967 = vst.msk [vmem:[#allocation2 + $0x118] sm:$0xf] %vm539_vm0, %v2891_v44  ;;  %v6251_v26 = vld [vmem:[#allocation2 + $0xd0] sm:$0xff]  ;;  %v6220_v54 = vld [vmem:[#allocation2 + $0xc8] sm:$0xff]  ;;  %v6257_v6 = vld [vmem:[#allocation2 + $0x100] sm:$0xff] }
 0x48e   : > { %v6252_v18 = vld [vmem:[#allocation2 + $0xd8] sm:$0xff]  ;;  %v6221_v51 = vld [vmem:[#allocation2 + $0xd0] sm:$0xff]  ;;  %v6258_v44 = vld [vmem:[#allocation2 + $0x108] sm:$0xff] }
 0x48f   : > { %v6222_v58 = vld [vmem:[#allocation2 + $0xd8] sm:$0xff]  ;;  %v6253_v61 = vld [vmem:[#allocation2 + $0xe0] sm:$0xff] }
 0x490   : > { %3719 = vrot.lane.b32.xlu1 %v6236_v29, %s6291_s19  ;;  %v6254_v62 = vld [vmem:[#allocation2 + $0xe8] sm:$0xff]  ;;  %v6223_v5 = vld [vmem:[#allocation2 + $0xe0] sm:$0xff] }
 0x491   : > { %v6255_v20 = vld [vmem:[#allocation2 + $0xf0] sm:$0xff]  ;;  %v6224_v40 = vld [vmem:[#allocation2 + $0xe8] sm:$0xff] }
 0x492   : > { %3721 = vrot.lane.b32.xlu0 %v6237_v38, %s6291_s19  ;;  %v6225_v28 = vld [vmem:[#allocation2 + $0xf0] sm:$0xff]  ;;  %v6256_v22 = vld [vmem:[#allocation2 + $0xf8] sm:$0xff] }
 0x493   : > { %3497 = vrot.lane.b32.xlu2 %v6205_v30, %s6290_s18  ;;  %v6226_v38 = vld [vmem:[#allocation2 + $0xf8] sm:$0xff]  ;;  %v6227_v30 = vld [vmem:[#allocation2 + $0x100] sm:$0xff] }
 0x498   : > { %3499 = vrot.lane.b32.xlu1 %v6206_v12, %s6290_s18  ;;  %v6228_v12 = vld [vmem:[#allocation2 + $0x108] sm:$0xff] }
 0x49a   : > { %3501 = vrot.lane.b32.xlu0 %v6207_v35, %s6290_s18  ;;  %v6259_v35 = vld [vmem:[#allocation2 + $0x110] sm:$0xff] }
 0x49b   : > { %3723 = vrot.lane.b32.xlu2 %v6238_v13, %s6291_s19  ;;  %v6260_v13 = vld [vmem:[#allocation2 + $0x118] sm:$0xff] }
 0x4a0   : > { %3725 = vrot.lane.b32.xlu1 %v6239_v55, %s6291_s19 }
 0x4a2   : > { %3727 = vrot.lane.b32.xlu0 %v6240_v16, %s6291_s19  ;;  %v6169_v16 = vld [vmem:[#allocation2 + $0x20] sm:$0xff] }
 0x4a3   : > { %3503 = vrot.lane.b32.xlu2 %v6208_v0, %s6290_s18 }
 0x4a8   : > { %3505 = vrot.lane.b32.xlu1 %v6209_v42, %s6290_s18 }
 0x4aa   : > { %3507 = vrot.lane.b32.xlu0 %v6210_v31, %s6290_s18 }
 0x4ab   : > { %3729 = vrot.lane.b32.xlu2 %v6241_v63, %s6291_s19 }
 0x4b0   : > { %3731 = vrot.lane.b32.xlu1 %v6242_v48, %s6291_s19  ;;  %v6170_v48 = vld [vmem:[#allocation2 + $0x28] sm:$0xff] }
 0x4b2   : > { %3733 = vrot.lane.b32.xlu0 %v6243_v33, %s6291_s19 }
 0x4b3   : > { %3509 = vrot.lane.b32.xlu2 %v6211_v3, %s6290_s18 }
 0x4b4   : > { %v3706_v32 = vpop.permute.xlu2 %3705 }
 0x4b8   : > { %3511 = vrot.lane.b32.xlu1 %v6212_v57, %s6290_s18 }
 0x4ba   : > { %3513 = vrot.lane.b32.xlu0 %v6213_v53, %s6290_s18 }
 0x4bb   : > { %3735 = vrot.lane.b32.xlu2 %v6244_v25, %s6291_s19  ;;  %v6171_v25 = vld [vmem:[#allocation2 + $0x30] sm:$0xff] }
 0x4bc   : > { %v3486_v15 = vpop.permute.xlu2 %3485 }
 0x4bd   : > { %v3777_v9 = vsel %vm1414_vm5, %v6167_v24, %v3486_v15 }
 0x4c0   : > { %3737 = vrot.lane.b32.xlu1 %v6245_v56, %s6291_s19 }
 0x4c2   : > { %3739 = vrot.lane.b32.xlu0 %v6246_v8, %s6291_s19 }
 0x4c3   : > { %3515 = vrot.lane.b32.xlu2 %v6214_v34, %s6290_s18 }
 0x4c8   : > { %3517 = vrot.lane.b32.xlu1 %v6215_v37, %s6290_s18 }
 0x4ca   : > { %3519 = vrot.lane.b32.xlu0 %v6216_v49, %s6290_s18  ;;  %v6172_v49 = vld [vmem:[#allocation2 + $0x38] sm:$0xff] }
 0x4cb   : > { %3741 = vrot.lane.b32.xlu2 %v6247_v60, %s6291_s19 }
 0x4cf   : > { %v3484_v47 = vpop.permute.xlu0 %3483 }
 0x4d0   : > { %3743 = vrot.lane.b32.xlu1 %v6248_v7, %s6291_s19  ;;  %v3774_v50 = vsel %vm1414_vm5, %v6166_v41, %v3484_v47 }
 0x4d2   : > { %3745 = vrot.lane.b32.xlu0 %v6249_v4, %s6291_s19 }
 0x4d3   : > { %3521 = vrot.lane.b32.xlu2 %v6217_v1, %s6290_s18 }
 0x4d5   : > { %v3712_v14 = vpop.permute.xlu2 %3711 }
 0x4d8   : > { %3523 = vrot.lane.b32.xlu1 %v6218_v23, %s6290_s18 }
 0x4da   : > { %v3482_v36 = vpop.permute.xlu1 %3481  ;;  %3525 = vrot.lane.b32.xlu0 %v6219_v52, %s6290_s18 }
 0x4db   : > { %v3771_v19 = vsel %vm1414_vm5, %v6165_v11, %v3482_v36  ;;  %3747 = vrot.lane.b32.xlu2 %v6250_v17, %s6291_s19  ;;  %v6173_v36 = vld [vmem:[#allocation2 + $0x40] sm:$0xff] }
 0x4dc   : > { %v3866_v59 = vsel %vm1511_vm6, %v3771_v19, %v3706_v32 }
 0x4dd   : > { %5956 = vmatmul.msk.bf16.vlgmr.msrb.gmra.mxu3 %vm1586_vm7, %v3866_v59  ;;  %5992 = vmatmul.msk.bf16.vlgmr.msrb.gmra.mxu0 %vm1586_vm7, %v3866_v59  ;;  %v3492_v63 = vpop.permute.xlu2 %3491 }
 0x4de   : > { %6030 = vmatmul.msk.bf16.vlgmr.msrb.gmra.mxu1 %vm1586_vm7, %v3866_v59  ;;  %v3786_v3 = vsel %vm1414_vm5, %v6170_v48, %v3492_v63 }
 0x4e0   : > { %3749 = vrot.lane.b32.xlu1 %v6251_v26, %s6291_s19 }
 0x4e2   : > { %v3708_v46 = vpop.permute.xlu1 %3707  ;;  %3751 = vrot.lane.b32.xlu0 %v6252_v18, %s6291_s19 }
 0x4e3   : > { %v3868_v43 = vsel %vm1511_vm6, %v3774_v50, %v3708_v46  ;;  %3527 = vrot.lane.b32.xlu2 %v6220_v54, %s6290_s18  ;;  %v6174_v50 = vld [vmem:[#allocation2 + $0x48] sm:$0xff] }
 0x4e4   : > { %v3710_v45 = vpop.permute.xlu0 %3709 }
 0x4e5   : > { %v3870_v27 = vsel %vm1511_vm6, %v3777_v9, %v3710_v45  ;;  %v3718_v8 = vpop.permute.xlu2 %3717 }
 0x4e8   : > { %3529 = vrot.lane.b32.xlu1 %v6221_v51, %s6290_s18 }
 0x4ea   : > { %3531 = vrot.lane.b32.xlu0 %v6222_v58, %s6290_s18  ;;  %v3488_v10 = vpop.permute.xlu1 %3487 }
 0x4eb   : > { %3753 = vrot.lane.b32.xlu2 %v6253_v61, %s6291_s19  ;;  %v3780_v21 = vsel %vm1414_vm5, %v6168_v39, %v3488_v10 }
 0x4ec   : > { %v3872_v29 = vsel %vm1511_vm6, %v3780_v21, %v3712_v14  ;;  %v3490_v55 = vpop.permute.xlu0 %3489 }
 0x4ed   : > { %5957 = vmatmul.msk.bf16.gmra.mxu3 %vm1586_vm7, %v3868_v43  ;;  %5993 = vmatmul.msk.bf16.gmra.mxu0 %vm1586_vm7, %v3868_v43  ;;  %v3783_v42 = vsel %vm1414_vm5, %v6169_v16, %v3490_v55  ;;  %v3498_v11 = vpop.permute.xlu2 %3497 }
 0x4ee   : > { %6031 = vmatmul.msk.bf16.gmra.mxu1 %vm1586_vm7, %v3868_v43  ;;  %v3795_v59 = vsel %vm1414_vm5, %v6173_v36, %v3498_v11 }
 0x4f0   : > { %3755 = vrot.lane.b32.xlu1 %v6254_v62, %s6291_s19 }
 0x4f2   : > { %3757 = vrot.lane.b32.xlu0 %v6255_v20, %s6291_s19  ;;  %v3714_v0 = vpop.permute.xlu1 %3713 }
 0x4f3   : > { %3533 = vrot.lane.b32.xlu2 %v6223_v5, %s6290_s18  ;;  %v3874_v31 = vsel %vm1511_vm6, %v3783_v42, %v3714_v0 }
 0x4f4   : > { %v3716_v33 = vpop.permute.xlu0 %3715 }
 0x4f5   : > { %v3876_v57 = vsel %vm1511_vm6, %v3786_v3, %v3716_v33  ;;  %v3724_v62 = vpop.permute.xlu2 %3723  ;;  %v6176_v3 = vld [vmem:[#allocation2 + $0x58] sm:$0xff] }
 0x4f8   : > { %3535 = vrot.lane.b32.xlu1 %v6224_v40, %s6290_s18 }
 0x4fa   : > { %3537 = vrot.lane.b32.xlu0 %v6225_v28, %s6290_s18  ;;  %v3494_v53 = vpop.permute.xlu1 %3493 }
 0x4fb   : > { %3759 = vrot.lane.b32.xlu2 %v6256_v22, %s6291_s19  ;;  %v3789_v56 = vsel %vm1414_vm5, %v6171_v25, %v3494_v53 }
 0x4fc   : > { %v3878_v34 = vsel %vm1511_vm6, %v3789_v56, %v3718_v8  ;;  %v3496_v37 = vpop.permute.xlu0 %3495 }
 0x4fd   : > { %5958 = vmatmul.msk.bf16.gmra.mxu3 %vm1586_vm7, %v3870_v27  ;;  %5994 = vmatmul.msk.bf16.gmra.mxu0 %vm1586_vm7, %v3870_v27  ;;  %v3792_v7 = vsel %vm1414_vm5, %v6172_v49, %v3496_v37  ;;  %v3504_v48 = vpop.permute.xlu2 %3503 }
 0x4fe   : > { %6032 = vmatmul.msk.bf16.gmra.mxu1 %vm1586_vm7, %v3870_v27  ;;  %v3804_v8 = vsel %vm1414_vm5, %v6176_v3, %v3504_v48 }
 0x500   : > { %3761 = vrot.lane.b32.xlu1 %v6257_v6, %s6291_s19 }
 0x502   : > { %3763 = vrot.lane.b32.xlu0 %v6258_v44, %s6291_s19  ;;  %v3720_v60 = vpop.permute.xlu1 %3719 }
 0x503   : > { %3539 = vrot.lane.b32.xlu2 %v6226_v38, %s6290_s18  ;;  %v3880_v4 = vsel %vm1511_vm6, %v3792_v7, %v3720_v60 }
 0x504   : > { %v3722_v32 = vpop.permute.xlu0 %3721 }
 0x505   : > { %v3882_v23 = vsel %vm1511_vm6, %v3795_v59, %v3722_v32 }
 0x508   : > { %3541 = vrot.lane.b32.xlu1 %v6227_v30, %s6290_s18 }
 0x50a   : > { %3543 = vrot.lane.b32.xlu0 %v6228_v12, %s6290_s18  ;;  %v3500_v18 = vpop.permute.xlu1 %3499 }
 0x50b   : > { %3765 = vrot.lane.b32.xlu2 %v6259_v35, %s6291_s19  ;;  %v3798_v54 = vsel %vm1414_vm5, %v6174_v50, %v3500_v18 }
 0x50c   : > { %v3884_v9 = vsel %vm1511_vm6, %v3798_v54, %v3724_v62  ;;  %v3502_v44 = vpop.permute.xlu0 %3501 }
 0x50d   : > { %5959 = vmatmul.msk.bf16.gmra.mxu3 %vm1586_vm7, %v3872_v29  ;;  %5995 = vmatmul.msk.bf16.gmra.mxu0 %vm1586_vm7, %v3872_v29 }
 0x50e   : > { %6033 = vmatmul.msk.bf16.gmra.mxu1 %vm1586_vm7, %v3872_v29  ;;  %v6175_v29 = vld [vmem:[#allocation2 + $0x50] sm:$0xff] }
 0x50f   : > { %v3801_v12 = vsel %vm1414_vm5, %v6175_v29, %v3502_v44 }
 0x510   : > { %3767 = vrot.lane.b32.xlu1 %v6260_v13, %s6291_s19 }
 0x512   : > { %v3726_v38 = vpop.permute.xlu1 %3725 }
 0x513   : > { %v3886_v13 = vsel %vm1511_vm6, %v3801_v12, %v3726_v38 }
 0x51d   : > { %5960 = vmatmul.msk.bf16.gmra.mxu3 %vm1586_vm7, %v3874_v31  ;;  %5996 = vmatmul.msk.bf16.gmra.mxu0 %vm1586_vm7, %v3874_v31 }
 0x51e   : > { %6034 = vmatmul.msk.bf16.gmra.mxu1 %vm1586_vm7, %v3874_v31 }
 0x52d   : > { %5961 = vmatmul.msk.bf16.gmra.mxu3 %vm1586_vm7, %v3876_v57  ;;  %5997 = vmatmul.msk.bf16.gmra.mxu0 %vm1586_vm7, %v3876_v57 }
 0x52e   : > { %6035 = vmatmul.msk.bf16.gmra.mxu1 %vm1586_vm7, %v3876_v57  ;;  %v3728_v57 = vpop.permute.xlu0 %3727 }
 0x52f   : > { %v3888_v49 = vsel %vm1511_vm6, %v3804_v8, %v3728_v57 }
 0x53d   : > { %5962 = vmatmul.msk.bf16.gmra.mxu3 %vm1586_vm7, %v3878_v34  ;;  %5998 = vmatmul.msk.bf16.gmra.mxu0 %vm1586_vm7, %v3878_v34 }
 0x53e   : > { %6036 = vmatmul.msk.bf16.gmra.mxu1 %vm1586_vm7, %v3878_v34 }
 0x54d   : > { %5963 = vmatmul.msk.bf16.gmra.mxu3 %vm1586_vm7, %v3880_v4  ;;  %5999 = vmatmul.msk.bf16.gmra.mxu0 %vm1586_vm7, %v3880_v4 }
 0x54e   : > { %6037 = vmatmul.msk.bf16.gmra.mxu1 %vm1586_vm7, %v3880_v4 }
 0x55a   : > { %v4256_v19 = vpop.f32.mrf.mxu0 }
 0x55b   : > { %v4404_v1 = vpop.f32.mrf.mxu1 }
 0x55c   : > { %v4548_v47 = vrot.slane %v4404_v1, 2 }
 0x55d   : > { %5964 = vmatmul.msk.bf16.gmra.mxu3 %vm1586_vm7, %v3882_v23  ;;  %6000 = vmatmul.msk.bf16.gmra.mxu0 %vm1586_vm7, %v3882_v23 }
 0x55e   : > { %6038 = vmatmul.msk.bf16.gmra.mxu1 %vm1586_vm7, %v3882_v23 }
 0x560   : > { %v4015_v52 = vpop.f32.mrf.mxu3 }
 0x561   : > { %v4159_v51 = vrot.slane %v4015_v52, 1  ;;  %v3506_v52 = vpop.permute.xlu1 %3505 }
 0x562   : > { %v4258_v17 = vpop.f32.mrf.mxu0 }
 0x563   : > { %v4406_v26 = vpop.f32.mrf.mxu1 }
 0x564   : > { %v4549_v41 = vrot.slane %v4406_v26, 2  ;;  %v6177_v26 = vld [vmem:[#allocation2 + $0x60] sm:$0xff] }
 0x566   : > { %v4627_v46 = vsel %vm2246_vm9, %v4548_v47, %v4549_v41 }
 0x568   : > { %v4017_v43 = vpop.f32.mrf.mxu3 }
 0x569   : > { %v4160_v58 = vrot.slane %v4017_v43, 1 }
 0x56a   : > { %v4261_v61 = vpop.f32.mrf.mxu0 }
 0x56b   : > { %v4238_v15 = vsel %vm1856_vm8, %v4159_v51, %v4160_v58  ;;  %v4409_v24 = vpop.f32.mrf.mxu1 }
 0x56c   : > { %v4257_v45 = vadd.f32 %v4256_v19, %v4238_v15  ;;  %v4550_v20 = vrot.slane %v4409_v24, 2  ;;  %v3508_v24 = vpop.permute.xlu0 %3507 }
 0x56d   : > { %5965 = vmatmul.msk.bf16.gmra.mxu3 %vm1586_vm7, %v3884_v9  ;;  %6001 = vmatmul.msk.bf16.gmra.mxu0 %vm1586_vm7, %v3884_v9 }
 0x56e   : > { %v8244_v27 = vadd.f32 %v4627_v46, %v4257_v45  ;;  %v4626_v5 = vsel %vm2246_vm9, %v4549_v41, %v4550_v20  ;;  %6039 = vmatmul.msk.bf16.gmra.mxu1 %vm1586_vm7, %v3884_v9  ;;  %v3807_v41 = vsel %vm1414_vm5, %v6177_v26, %v3506_v52  ;;  %v3730_v46 = vpop.permute.xlu2 %3729  ;;  %v6178_v20 = vld [vmem:[#allocation2 + $0x68] sm:$0xff]  ;;  %v3732_v9 = vpop.permute.xlu1 %3731 }
 0x56f   : > { %v3890_v43 = vsel %vm1511_vm6, %v3807_v41, %v3730_v46 }
 0x570   : > { %v4020_v40 = vpop.f32.mrf.mxu3 }
 0x571   : > { %v4161_v28 = vrot.slane %v4020_v40, 1 }
 0x572   : > { %v4262_v22 = vpop.f32.mrf.mxu0 }
 0x573   : > { %v4237_v10 = vsel %vm1856_vm8, %v4160_v58, %v4161_v28  ;;  %v4411_v6 = vpop.f32.mrf.mxu1  ;;  %v3810_v22 = vsel %vm1414_vm5, %v6178_v20, %v3508_v24 }
 0x574   : > { %v4259_v39 = vadd.f32 %v4258_v17, %v4237_v10  ;;  %v3734_v48 = vpop.permute.xlu0 %3733 }
 0x576   : > { %v8251_v21 = vadd.f32 %v4626_v5, %v4259_v39  ;;  %v3892_v39 = vsel %vm1511_vm6, %v3810_v22, %v3732_v9 }
 0x578   : > { %v4022_v14 = vpop.f32.mrf.mxu3 }
 0x57a   : > { %v4264_v30 = vpop.f32.mrf.mxu0 }
 0x57b   : > { %v4413_v35 = vpop.f32.mrf.mxu1 }
 0x57c   : > { %v4551_v42 = vrot.slane %v4413_v35, 2 }
 0x57d   : > { %5966 = vmatmul.msk.bf16.gmra.mxu3 %vm1586_vm7, %v3886_v13  ;;  %6002 = vmatmul.msk.bf16.gmra.mxu0 %vm1586_vm7, %v3886_v13 }
 0x57e   : > { %6040 = vmatmul.msk.bf16.gmra.mxu1 %vm1586_vm7, %v3886_v13 }
 0x580   : > { %v4024_v55 = vpop.f32.mrf.mxu3 }
 0x581   : > { %v4162_v53 = vrot.slane %v4024_v55, 1 }
 0x582   : > { %v4266_v16 = vpop.f32.mrf.mxu0 }
 0x583   : > { %v4415_v0 = vpop.f32.mrf.mxu1 }
 0x584   : > { %v4552_v31 = vrot.slane %v4415_v0, 2 }
 0x586   : > { %v4625_v63 = vsel %vm2246_vm9, %v4551_v42, %v4552_v31  ;;  %v3510_v42 = vpop.permute.xlu2 %3509 }
 0x588   : > { %v4026_v33 = vpop.f32.mrf.mxu3 }
 0x589   : > { %v4163_v25 = vrot.slane %v4026_v33, 1 }
 0x58a   : > { %v4269_v56 = vpop.f32.mrf.mxu0 }
 0x58b   : > { %v4236_v34 = vsel %vm1856_vm8, %v4162_v53, %v4163_v25  ;;  %v4418_v37 = vpop.f32.mrf.mxu1 }
 0x58c   : > { %v4265_v60 = vadd.f32 %v4264_v30, %v4236_v34  ;;  %v4553_v7 = vrot.slane %v4418_v37, 2 }
 0x58d   : > { %5967 = vmatmul.msk.bf16.gmra.mxu3 %vm1586_vm7, %v3888_v49  ;;  %6003 = vmatmul.msk.bf16.gmra.mxu0 %vm1586_vm7, %v3888_v49 }
 0x58e   : > { %v8266_v4 = vadd.f32 %v4625_v63, %v4265_v60  ;;  %v4624_v11 = vsel %vm2246_vm9, %v4552_v31, %v4553_v7  ;;  %6041 = vmatmul.msk.bf16.gmra.mxu1 %vm1586_vm7, %v3888_v49  ;;  %v6179_v63 = vld [vmem:[#allocation2 + $0x70] sm:$0xff]  ;;  %v3512_v49 = vpop.permute.xlu1 %3511  ;;  %v6180_v7 = vld [vmem:[#allocation2 + $0x78] sm:$0xff] }
 0x58f   : > { %v3813_v3 = vsel %vm1414_vm5, %v6179_v63, %v3510_v42 }
 0x590   : > { %v4029_v36 = vpop.f32.mrf.mxu3  ;;  %v3894_v53 = vsel %vm1511_vm6, %v3813_v3, %v3734_v48 }
 0x591   : > { %v4164_v32 = vrot.slane %v4029_v36, 1  ;;  %v3816_v36 = vsel %vm1414_vm5, %v6180_v7, %v3512_v49 }
 0x592   : > { %v4270_v19 = vpop.f32.mrf.mxu0 }
 0x593   : > { %v4235_v59 = vsel %vm1856_vm8, %v4163_v25, %v4164_v32  ;;  %v4420_v1 = vpop.f32.mrf.mxu1 }
 0x594   : > { %v4267_v23 = vadd.f32 %v4266_v16, %v4235_v59  ;;  %v3736_v1 = vpop.permute.xlu2 %3735 }
 0x595   : > { %v3896_v41 = vsel %vm1511_vm6, %v3816_v36, %v3736_v1 }
 0x596   : > { %v8273_v17 = vadd.f32 %v4624_v11, %v4267_v23  ;;  %v3738_v20 = vpop.permute.xlu1 %3737 }
 0x598   : > { %v4031_v47 = vpop.f32.mrf.mxu3 }
 0x59a   : > { %v4272_v18 = vpop.f32.mrf.mxu0 }
 0x59b   : > { %v4422_v50 = vpop.f32.mrf.mxu1 }
 0x59c   : > { %v4554_v61 = vrot.slane %v4422_v50, 2 }
 0x59d   : > { %5968 = vmatmul.msk.bf16.gmra.mxu3 %vm1586_vm7, %v3890_v43  ;;  %6004 = vmatmul.msk.bf16.gmra.mxu0 %vm1586_vm7, %v3890_v43 }
 0x59e   : > { %6042 = vmatmul.msk.bf16.gmra.mxu1 %vm1586_vm7, %v3890_v43 }
 0x5a0   : > { %v4033_v54 = vpop.f32.mrf.mxu3 }
 0x5a1   : > { %v4165_v5 = vrot.slane %v4033_v54, 1 }
 0x5a2   : > { %v4274_v51 = vpop.f32.mrf.mxu0 }
 0x5a3   : > { %v4424_v58 = vpop.f32.mrf.mxu1 }
 0x5a4   : > { %v4555_v62 = vrot.slane %v4424_v58, 2 }
 0x5a6   : > { %v4623_v15 = vsel %vm2246_vm9, %v4554_v61, %v4555_v62 }
 0x5a8   : > { %v4035_v45 = vpop.f32.mrf.mxu3 }
 0x5a9   : > { %v4166_v40 = vrot.slane %v4035_v45, 1  ;;  %v6181_v45 = vld [vmem:[#allocation2 + $0x80] sm:$0xff] }
 0x5aa   : > { %v4277_v28 = vpop.f32.mrf.mxu0 }
 0x5ab   : > { %v4234_v10 = vsel %vm1856_vm8, %v4165_v5, %v4166_v40  ;;  %v4427_v6 = vpop.f32.mrf.mxu1 }
 0x5ac   : > { %v4273_v44 = vadd.f32 %v4272_v18, %v4234_v10  ;;  %v4556_v14 = vrot.slane %v4427_v6, 2 }
 0x5ad   : > { %5969 = vmatmul.msk.bf16.gmra.mxu3 %vm1586_vm7, %v3892_v39  ;;  %6005 = vmatmul.msk.bf16.gmra.mxu0 %vm1586_vm7, %v3892_v39 }
 0x5ae   : > { %v8288_v29 = vadd.f32 %v4623_v15, %v4273_v44  ;;  %v4622_v38 = vsel %vm2246_vm9, %v4555_v62, %v4556_v14  ;;  %6043 = vmatmul.msk.bf16.gmra.mxu1 %vm1586_vm7, %v3892_v39  ;;  %v3514_v15 = vpop.permute.xlu0 %3513 }
 0x5af   : > { %v3819_v5 = vsel %vm1414_vm5, %v6181_v45, %v3514_v15 }
 0x5b0   : > { %v4038_v30 = vpop.f32.mrf.mxu3  ;;  %v3898_v28 = vsel %vm1511_vm6, %v3819_v5, %v3738_v20 }
 0x5b1   : > { %v4167_v12 = vrot.slane %v4038_v30, 1 }
 0x5b2   : > { %v4278_v35 = vpop.f32.mrf.mxu0 }
 0x5b3   : > { %v4233_v13 = vsel %vm1856_vm8, %v4166_v40, %v4167_v12  ;;  %v4429_v55 = vpop.f32.mrf.mxu1  ;;  %v6182_v12 = vld [vmem:[#allocation2 + $0x88] sm:$0xff] }
 0x5b4   : > { %v4275_v16 = vadd.f32 %v4274_v51, %v4233_v13 }
 0x5b6   : > { %v8295_v0 = vadd.f32 %v4622_v38, %v4275_v16  ;;  %v3516_v38 = vpop.permute.xlu2 %3515  ;;  %v3740_v35 = vpop.permute.xlu0 %3739 }
 0x5b7   : > { %v3822_v42 = vsel %vm1414_vm5, %v6182_v12, %v3516_v38 }
 0x5b8   : > { %v4040_v31 = vpop.f32.mrf.mxu3  ;;  %v3900_v48 = vsel %vm1511_vm6, %v3822_v42, %v3740_v35 }
 0x5ba   : > { %v4280_v33 = vpop.f32.mrf.mxu0 }
 0x5bb   : > { %v4431_v57 = vpop.f32.mrf.mxu1 }
 0x5bc   : > { %v4557_v34 = vrot.slane %v4431_v57, 2 }
 0x5bd   : > { %5970 = vmatmul.msk.bf16.gmra.mxu3 %vm1586_vm7, %v3894_v53  ;;  %6006 = vmatmul.msk.bf16.gmra.mxu0 %vm1586_vm7, %v3894_v53 }
 0x5be   : > { %6044 = vmatmul.msk.bf16.gmra.mxu1 %vm1586_vm7, %v3894_v53 }
 0x5c0   : > { %v4042_v25 = vpop.f32.mrf.mxu3 }
 0x5c1   : > { %v4168_v32 = vrot.slane %v4042_v25, 1 }
 0x5c2   : > { %v4282_v56 = vpop.f32.mrf.mxu0 }
 0x5c3   : > { %v4433_v8 = vpop.f32.mrf.mxu1 }
 0x5c4   : > { %v4558_v37 = vrot.slane %v4433_v8, 2 }
 0x5c6   : > { %v4621_v60 = vsel %vm2246_vm9, %v4557_v34, %v4558_v37 }
 0x5c8   : > { %v4044_v11 = vpop.f32.mrf.mxu3 }
 0x5c9   : > { %v4169_v19 = vrot.slane %v4044_v11, 1  ;;  %v6183_v11 = vld [vmem:[#allocation2 + $0x90] sm:$0xff] }
 0x5ca   : > { %v4285_v59 = vpop.f32.mrf.mxu0 }
 0x5cb   : > { %v4232_v23 = vsel %vm1856_vm8, %v4168_v32, %v4169_v19  ;;  %v4436_v52 = vpop.f32.mrf.mxu1  ;;  %v3742_v59 = vpop.permute.xlu2 %3741 }
 0x5cc   : > { %v4281_v26 = vadd.f32 %v4280_v33, %v4232_v23  ;;  %v4559_v47 = vrot.slane %v4436_v52, 2 }
 0x5cd   : > { %5971 = vmatmul.msk.bf16.gmra.mxu3 %vm1586_vm7, %v3896_v41  ;;  %6007 = vmatmul.msk.bf16.gmra.mxu0 %vm1586_vm7, %v3896_v41 }
 0x5ce   : > { %v8310_v18 = vadd.f32 %v4621_v60, %v4281_v26  ;;  %v4620_v46 = vsel %vm2246_vm9, %v4558_v37, %v4559_v47  ;;  %6045 = vmatmul.msk.bf16.gmra.mxu1 %vm1586_vm7, %v3896_v41  ;;  %v3518_v60 = vpop.permute.xlu1 %3517 }
 0x5cf   : > { %v3825_v32 = vsel %vm1414_vm5, %v6183_v11, %v3518_v60 }
 0x5d0   : > { %v4047_v50 = vpop.f32.mrf.mxu3  ;;  %v3902_v23 = vsel %vm1511_vm6, %v3825_v32, %v3742_v59 }
 0x5d1   : > { %v4170_v43 = vrot.slane %v4047_v50, 1 }
 0x5d2   : > { %v4286_v54 = vpop.f32.mrf.mxu0 }
 0x5d3   : > { %v4231_v51 = vsel %vm1856_vm8, %v4169_v19, %v4170_v43  ;;  %v4438_v58 = vpop.f32.mrf.mxu1  ;;  %v3520_v43 = vpop.permute.xlu0 %3519 }
 0x5d4   : > { %v4283_v61 = vadd.f32 %v4282_v56, %v4231_v51  ;;  %v6184_v51 = vld [vmem:[#allocation2 + $0x98] sm:$0xff]  ;;  %v3522_v35 = vpop.permute.xlu2 %3521 }
 0x5d5   : > { %v3828_v45 = vsel %vm1414_vm5, %v6184_v51, %v3520_v43 }
 0x5d6   : > { %v8317_v62 = vadd.f32 %v4620_v46, %v4283_v61  ;;  %v3744_v58 = vpop.permute.xlu1 %3743 }
 0x5d7   : > { %v3904_v5 = vsel %vm1511_vm6, %v3828_v45, %v3744_v58  ;;  %v6187_v45 = vld [vmem:[#allocation2 + $0xb0] sm:$0xff] }
 0x5d8   : > { %v4049_v24 = vpop.f32.mrf.mxu3 }
 0x5da   : > { %v4288_v9 = vpop.f32.mrf.mxu0 }
 0x5db   : > { %v4440_v40 = vpop.f32.mrf.mxu1 }
 0x5dc   : > { %v4560_v39 = vrot.slane %v4440_v40, 2 }
 0x5dd   : > { %5972 = vmatmul.msk.bf16.gmra.mxu3 %vm1586_vm7, %v3898_v28  ;;  %6008 = vmatmul.msk.bf16.gmra.mxu0 %vm1586_vm7, %v3898_v28 }
 0x5de   : > { %6046 = vmatmul.msk.bf16.gmra.mxu1 %vm1586_vm7, %v3898_v28 }
 0x5e0   : > { %v4051_v22 = vpop.f32.mrf.mxu3 }
 0x5e1   : > { %v4171_v13 = vrot.slane %v4051_v22, 1 }
 0x5e2   : > { %v4290_v10 = vpop.f32.mrf.mxu0 }
 0x5e3   : > { %v4442_v6 = vpop.f32.mrf.mxu1 }
 0x5e4   : > { %v4561_v44 = vrot.slane %v4442_v6, 2 }
 0x5e6   : > { %v4619_v14 = vsel %vm2246_vm9, %v4560_v39, %v4561_v44 }
 0x5e8   : > { %v4053_v30 = vpop.f32.mrf.mxu3 }
 0x5e9   : > { %v4172_v55 = vrot.slane %v4053_v30, 1 }
 0x5ea   : > { %v4293_v16 = vpop.f32.mrf.mxu0 }
 0x5eb   : > { %v4230_v31 = vsel %vm1856_vm8, %v4171_v13, %v4172_v55  ;;  %v4445_v63 = vpop.f32.mrf.mxu1  ;;  %v3746_v16 = vpop.permute.xlu0 %3745 }
 0x5ec   : > { %v4289_v33 = vadd.f32 %v4288_v9, %v4230_v31  ;;  %v4562_v3 = vrot.slane %v4445_v63, 2 }
 0x5ed   : > { %5973 = vmatmul.msk.bf16.gmra.mxu3 %vm1586_vm7, %v3900_v48  ;;  %6009 = vmatmul.msk.bf16.gmra.mxu0 %vm1586_vm7, %v3900_v48 }
 0x5ee   : > { %v8332_v57 = vadd.f32 %v4619_v14, %v4289_v33  ;;  %v4618_v53 = vsel %vm2246_vm9, %v4561_v44, %v4562_v3  ;;  %6047 = vmatmul.msk.bf16.gmra.mxu1 %vm1586_vm7, %v3900_v48 }
 0x5f0   : > { %v4056_v25 = vpop.f32.mrf.mxu3 }
 0x5f1   : > { %v4173_v56 = vrot.slane %v4056_v25, 1 }
 0x5f2   : > { %v4294_v8 = vpop.f32.mrf.mxu0 }
 0x5f3   : > { %v4229_v34 = vsel %vm1856_vm8, %v4172_v55, %v4173_v56  ;;  %v4447_v37 = vpop.f32.mrf.mxu1  ;;  %v6185_v55 = vld [vmem:[#allocation2 + $0xa0] sm:$0xff]  ;;  %v3524_v8 = vpop.permute.xlu1 %3523 }
 0x5f4   : > { %v4291_v49 = vadd.f32 %v4290_v10, %v4229_v34  ;;  %v3831_v31 = vsel %vm1414_vm5, %v6185_v55, %v3522_v35  ;;  %v6186_v37 = vld [vmem:[#allocation2 + $0xa8] sm:$0xff] }
 0x5f5   : > { %v3906_v48 = vsel %vm1511_vm6, %v3831_v31, %v3746_v16  ;;  %v3834_v60 = vsel %vm1414_vm5, %v6186_v37, %v3524_v8 }
 0x5f6   : > { %v8339_v7 = vadd.f32 %v4618_v53, %v4291_v49 }
 0x5f8   : > { %v4058_v36 = vpop.f32.mrf.mxu3 }
 0x5fa   : > { %v4296_v19 = vpop.f32.mrf.mxu0 }
 0x5fb   : > { %v4449_v1 = vpop.f32.mrf.mxu1 }
 0x5fc   : > { %v4563_v41 = vrot.slane %v4449_v1, 2 }
 0x5fd   : > { %5974 = vmatmul.msk.bf16.gmra.mxu3 %vm1586_vm7, %v3902_v23  ;;  %6010 = vmatmul.msk.bf16.gmra.mxu0 %vm1586_vm7, %v3902_v23 }
 0x5fe   : > { %6048 = vmatmul.msk.bf16.gmra.mxu1 %vm1586_vm7, %v3902_v23 }
 0x600   : > { %v4060_v52 = vpop.f32.mrf.mxu3 }
 0x601   : > { %v4174_v61 = vrot.slane %v4060_v52, 1 }
 0x602   : > { %v4298_v26 = vpop.f32.mrf.mxu0 }
 0x603   : > { %v4451_v47 = vpop.f32.mrf.mxu1 }
 0x604   : > { %v4564_v46 = vrot.slane %v4451_v47, 2 }
 0x606   : > { %v4617_v50 = vsel %vm2246_vm9, %v4563_v41, %v4564_v46 }
 0x608   : > { %v4062_v54 = vpop.f32.mrf.mxu3 }
 0x609   : > { %v4175_v15 = vrot.slane %v4062_v54, 1 }
 0x60a   : > { %v4301_v24 = vpop.f32.mrf.mxu0 }
 0x60b   : > { %v4228_v20 = vsel %vm1856_vm8, %v4174_v61, %v4175_v15  ;;  %v4454_v9 = vpop.f32.mrf.mxu1 }
 0x60c   : > { %v4297_v40 = vadd.f32 %v4296_v19, %v4228_v20  ;;  %v4565_v28 = vrot.slane %v4454_v9, 2  ;;  %v3748_v19 = vpop.permute.xlu2 %3747  ;;  %v3750_v20 = vpop.permute.xlu1 %3749 }
 0x60d   : > { %5975 = vmatmul.msk.bf16.gmra.mxu3 %vm1586_vm7, %v3904_v5  ;;  %6011 = vmatmul.msk.bf16.gmra.mxu0 %vm1586_vm7, %v3904_v5 }
 0x60e   : > { %v8354_v22 = vadd.f32 %v4617_v50, %v4297_v40  ;;  %v4616_v10 = vsel %vm2246_vm9, %v4564_v46, %v4565_v28  ;;  %6049 = vmatmul.msk.bf16.gmra.mxu1 %vm1586_vm7, %v3904_v5 }
 0x610   : > { %v4065_v6 = vpop.f32.mrf.mxu3 }
 0x611   : > { %v4176_v39 = vrot.slane %v4065_v6, 1 }
 0x612   : > { %v4302_v44 = vpop.f32.mrf.mxu0 }
 0x613   : > { %v4227_v14 = vsel %vm1856_vm8, %v4175_v15, %v4176_v39  ;;  %v4456_v38 = vpop.f32.mrf.mxu1  ;;  %v3526_v15 = vpop.permute.xlu0 %3525 }
 0x614   : > { %v4299_v30 = vadd.f32 %v4298_v26, %v4227_v14  ;;  %v3908_v26 = vsel %vm1511_vm6, %v3834_v60, %v3748_v19  ;;  %v3837_v5 = vsel %vm1414_vm5, %v6187_v45, %v3526_v15 }
 0x615   : > { %v3910_v28 = vsel %vm1511_vm6, %v3837_v5, %v3750_v20  ;;  %v6190_v20 = vld [vmem:[#allocation2 + $0xc8] sm:$0xff] }
 0x616   : > { %v8361_v12 = vadd.f32 %v4616_v10, %v4299_v30  ;;  %v3528_v30 = vpop.permute.xlu2 %3527 }
 0x618   : > { %v4067_v13 = vpop.f32.mrf.mxu3 }
 0x619   : > { %v6188_v13 = vld [vmem:[#allocation2 + $0xb8] sm:$0xff] }
 0x61a   : > { %v4304_v42 = vpop.f32.mrf.mxu0 }
 0x61b   : > { %v4458_v63 = vpop.f32.mrf.mxu1  ;;  %v3752_v55 = vpop.permute.xlu0 %3751 }
 0x61c   : > { %v4566_v25 = vrot.slane %v4458_v63, 2  ;;  %v3840_v63 = vsel %vm1414_vm5, %v6188_v13, %v3528_v30 }
 0x61d   : > { %5976 = vmatmul.msk.bf16.gmra.mxu3 %vm1586_vm7, %v3906_v48  ;;  %6012 = vmatmul.msk.bf16.gmra.mxu0 %vm1586_vm7, %v3906_v48 }
 0x61e   : > { %6050 = vmatmul.msk.bf16.gmra.mxu1 %vm1586_vm7, %v3906_v48 }
 0x620   : > { %v4069_v33 = vpop.f32.mrf.mxu3 }
 0x621   : > { %v4177_v11 = vrot.slane %v4069_v33, 1 }
 0x622   : > { %v4306_v3 = vpop.f32.mrf.mxu0 }
 0x623   : > { %v4460_v53 = vpop.f32.mrf.mxu1 }
 0x624   : > { %v4567_v56 = vrot.slane %v4460_v53, 2 }
 0x626   : > { %v4615_v34 = vsel %vm2246_vm9, %v4566_v25, %v4567_v56 }
 0x628   : > { %v4071_v49 = vpop.f32.mrf.mxu3 }
 0x629   : > { %v4178_v36 = vrot.slane %v4071_v49, 1 }
 0x62a   : > { %v4309_v32 = vpop.f32.mrf.mxu0 }
 0x62b   : > { %v4226_v59 = vsel %vm1856_vm8, %v4177_v11, %v4178_v36  ;;  %v4463_v1 = vpop.f32.mrf.mxu1  ;;  %v3530_v32 = vpop.permute.xlu1 %3529 }
 0x62c   : > { %v4305_v23 = vadd.f32 %v4304_v42, %v4226_v59  ;;  %v4568_v52 = vrot.slane %v4463_v1, 2  ;;  %v6189_v59 = vld [vmem:[#allocation2 + $0xc0] sm:$0xff] }
 0x62d   : > { %5977 = vmatmul.msk.bf16.gmra.mxu3 %vm1586_vm7, %v3908_v26  ;;  %6013 = vmatmul.msk.bf16.gmra.mxu0 %vm1586_vm7, %v3908_v26 }
 0x62e   : > { %v8376_v47 = vadd.f32 %v4615_v34, %v4305_v23  ;;  %v4614_v41 = vsel %vm2246_vm9, %v4567_v56, %v4568_v52  ;;  %6051 = vmatmul.msk.bf16.gmra.mxu1 %vm1586_vm7, %v3908_v26  ;;  %v3843_v23 = vsel %vm1414_vm5, %v6189_v59, %v3530_v32  ;;  %v3754_v26 = vpop.permute.xlu2 %3753 }
 0x630   : > { %v4074_v46 = vpop.f32.mrf.mxu3 }
 0x631   : > { %v4179_v50 = vrot.slane %v4074_v46, 1  ;;  %v3914_v46 = vsel %vm1511_vm6, %v3843_v23, %v3754_v26 }
 0x632   : > { %v4310_v43 = vpop.f32.mrf.mxu0 }
 0x633   : > { %v4225_v54 = vsel %vm1856_vm8, %v4178_v36, %v4179_v50  ;;  %v4465_v51 = vpop.f32.mrf.mxu1 }
 0x634   : > { %v4307_v58 = vadd.f32 %v4306_v3, %v4225_v54  ;;  %v3912_v3 = vsel %vm1511_vm6, %v3840_v63, %v3752_v55 }
 0x636   : > { %v8383_v61 = vadd.f32 %v4614_v41, %v4307_v58 }
 0x638   : > { %v4076_v24 = vpop.f32.mrf.mxu3 }
 0x639   : > { %v3532_v24 = vpop.permute.xlu0 %3531 }
 0x63a   : > { %v4312_v9 = vpop.f32.mrf.mxu0 }
 0x63b   : > { %v4467_v40 = vpop.f32.mrf.mxu1 }
 0x63c   : > { %v4569_v44 = vrot.slane %v4467_v40, 2 }
 0x63d   : > { %5978 = vmatmul.msk.bf16.gmra.mxu3 %vm1586_vm7, %v3910_v28  ;;  %6014 = vmatmul.msk.bf16.gmra.mxu0 %vm1586_vm7, %v3910_v28 }
 0x63e   : > { %6052 = vmatmul.msk.bf16.gmra.mxu1 %vm1586_vm7, %v3910_v28 }
 0x640   : > { %v4078_v10 = vpop.f32.mrf.mxu3 }
 0x641   : > { %v4180_v16 = vrot.slane %v4078_v10, 1  ;;  %v3846_v10 = vsel %vm1414_vm5, %v6190_v20, %v3532_v24 }
 0x642   : > { %v4314_v6 = vpop.f32.mrf.mxu0 }
 0x643   : > { %v4469_v39 = vpop.f32.mrf.mxu1 }
 0x644   : > { %v4570_v14 = vrot.slane %v4469_v39, 2 }
 0x646   : > { %v4613_v38 = vsel %vm2246_vm9, %v4569_v44, %v4570_v14 }
 0x648   : > { %v4080_v35 = vpop.f32.mrf.mxu3 }
 0x649   : > { %v4181_v42 = vrot.slane %v4080_v35, 1 }
 0x64a   : > { %v4317_v31 = vpop.f32.mrf.mxu0 }
 0x64b   : > { %v4224_v48 = vsel %vm1856_vm8, %v4180_v16, %v4181_v42  ;;  %v4472_v33 = vpop.f32.mrf.mxu1 }
 0x64c   : > { %v4313_v53 = vadd.f32 %v4312_v9, %v4224_v48  ;;  %v4571_v25 = vrot.slane %v4472_v33, 2  ;;  %v3756_v9 = vpop.permute.xlu1 %3755  ;;  %v3534_v33 = vpop.permute.xlu2 %3533 }
 0x64d   : > { %5979 = vmatmul.msk.bf16.gmra.mxu3 %vm1586_vm7, %v3912_v3  ;;  %6015 = vmatmul.msk.bf16.gmra.mxu0 %vm1586_vm7, %v3912_v3  ;;  %v3916_v44 = vsel %vm1511_vm6, %v3846_v10, %v3756_v9 }
 0x64e   : > { %v8398_v56 = vadd.f32 %v4613_v38, %v4313_v53  ;;  %v4612_v8 = vsel %vm2246_vm9, %v4570_v14, %v4571_v25  ;;  %6053 = vmatmul.msk.bf16.gmra.mxu1 %vm1586_vm7, %v3912_v3  ;;  %v6191_v53 = vld [vmem:[#allocation2 + $0xd0] sm:$0xff]  ;;  %v3758_v25 = vpop.permute.xlu0 %3757 }
 0x650   : > { %v4083_v34 = vpop.f32.mrf.mxu3 }
 0x651   : > { %v4182_v37 = vrot.slane %v4083_v34, 1  ;;  %v3849_v34 = vsel %vm1414_vm5, %v6191_v53, %v3534_v33 }
 0x652   : > { %v4318_v49 = vpop.f32.mrf.mxu0 }
 0x653   : > { %v4223_v60 = vsel %vm1856_vm8, %v4181_v42, %v4182_v37  ;;  %v4474_v11 = vpop.f32.mrf.mxu1  ;;  %v3918_v49 = vsel %vm1511_vm6, %v3849_v34, %v3758_v25 }
 0x654   : > { %v4315_v36 = vadd.f32 %v4314_v6, %v4223_v60 }
 0x656   : > { %v8405_v19 = vadd.f32 %v4612_v8, %v4315_v36 }
 0x658   : > { %v4085_v1 = vpop.f32.mrf.mxu3 }
 0x659   : > { %v3536_v1 = vpop.permute.xlu1 %3535 }
 0x65a   : > { %v4320_v52 = vpop.f32.mrf.mxu0 }
 0x65b   : > { %v4476_v41 = vpop.f32.mrf.mxu1 }
 0x65c   : > { %v4572_v51 = vrot.slane %v4476_v41, 2 }
 0x65d   : > { %5980 = vmatmul.msk.bf16.gmra.mxu3 %vm1586_vm7, %v3914_v46  ;;  %6016 = vmatmul.msk.bf16.gmra.mxu0 %vm1586_vm7, %v3914_v46 }
 0x65e   : > { %6054 = vmatmul.msk.bf16.gmra.mxu1 %vm1586_vm7, %v3914_v46 }
 0x660   : > { %v4087_v50 = vpop.f32.mrf.mxu3 }
 0x661   : > { %v4183_v5 = vrot.slane %v4087_v50, 1 }
 0x662   : > { %v4322_v43 = vpop.f32.mrf.mxu0 }
 0x663   : > { %v4478_v54 = vpop.f32.mrf.mxu1 }
 0x664   : > { %v4573_v58 = vrot.slane %v4478_v54, 2  ;;  %v3760_v54 = vpop.permute.xlu2 %3759 }
 0x666   : > { %v4611_v15 = vsel %vm2246_vm9, %v4572_v51, %v4573_v58 }
 0x668   : > { %v4089_v45 = vpop.f32.mrf.mxu3 }
 0x669   : > { %v4184_v40 = vrot.slane %v4089_v45, 1 }
 0x66a   : > { %v4325_v28 = vpop.f32.mrf.mxu0 }
 0x66b   : > { %v4222_v6 = vsel %vm1856_vm8, %v4183_v5, %v4184_v40  ;;  %v4481_v39 = vpop.f32.mrf.mxu1 }
 0x66c   : > { %v4321_v14 = vadd.f32 %v4320_v52, %v4222_v6  ;;  %v4574_v38 = vrot.slane %v4481_v39, 2  ;;  %v6192_v52 = vld [vmem:[#allocation2 + $0xd8] sm:$0xff]  ;;  %v3540_v34 = vpop.permute.xlu2 %3539 }
 0x66d   : > { %5981 = vmatmul.msk.bf16.gmra.mxu3 %vm1586_vm7, %v3916_v44  ;;  %6017 = vmatmul.msk.bf16.gmra.mxu0 %vm1586_vm7, %v3916_v44  ;;  %v3852_v41 = vsel %vm1414_vm5, %v6192_v52, %v3536_v1 }
 0x66e   : > { %v8420_v30 = vadd.f32 %v4611_v15, %v4321_v14  ;;  %v4610_v35 = vsel %vm2246_vm9, %v4573_v58, %v4574_v38  ;;  %6055 = vmatmul.msk.bf16.gmra.mxu1 %vm1586_vm7, %v3916_v44  ;;  %v3920_v45 = vsel %vm1511_vm6, %v3852_v41, %v3760_v54  ;;  %v3538_v14 = vpop.permute.xlu0 %3537 }
 0x670   : > { %v4092_v13 = vpop.f32.mrf.mxu3 }
 0x671   : > { %v4185_v55 = vrot.slane %v4092_v13, 1  ;;  %v3762_v13 = vpop.permute.xlu1 %3761 }
 0x672   : > { %v4326_v16 = vpop.f32.mrf.mxu0 }
 0x673   : > { %v4221_v42 = vsel %vm1856_vm8, %v4184_v40, %v4185_v55  ;;  %v4483_v31 = vpop.f32.mrf.mxu1 }
 0x674   : > { %v4323_v63 = vadd.f32 %v4322_v43, %v4221_v42 }
 0x676   : > { %v8427_v48 = vadd.f32 %v4610_v35, %v4323_v63  ;;  %v6193_v35 = vld [vmem:[#allocation2 + $0xe0] sm:$0xff] }
 0x677   : > { %v3855_v16 = vsel %vm1414_vm5, %v6193_v35, %v3538_v14 }
 0x678   : > { %v4094_v3 = vpop.f32.mrf.mxu3  ;;  %v3922_v31 = vsel %vm1511_vm6, %v3855_v16, %v3762_v13 }
 0x67a   : > { %v4328_v8 = vpop.f32.mrf.mxu0 }
 0x67b   : > { %v4485_v37 = vpop.f32.mrf.mxu1 }
 0x67c   : > { %v4575_v32 = vrot.slane %v4485_v37, 2 }
 0x67d   : > { %5982 = vmatmul.msk.bf16.gmra.mxu3 %vm1586_vm7, %v3918_v49  ;;  %6018 = vmatmul.msk.bf16.gmra.mxu0 %vm1586_vm7, %v3918_v49 }
 0x67e   : > { %6056 = vmatmul.msk.bf16.gmra.mxu1 %vm1586_vm7, %v3918_v49  ;;  %v6194_v49 = vld [vmem:[#allocation2 + $0xe8] sm:$0xff] }
 0x680   : > { %v4096_v60 = vpop.f32.mrf.mxu3 }
 0x681   : > { %v4186_v46 = vrot.slane %v4096_v60, 1  ;;  %v3764_v60 = vpop.permute.xlu0 %3763 }
 0x682   : > { %v4330_v11 = vpop.f32.mrf.mxu0 }
 0x683   : > { %v4487_v36 = vpop.f32.mrf.mxu1 }
 0x684   : > { %v4576_v59 = vrot.slane %v4487_v36, 2 }
 0x686   : > { %v4609_v23 = vsel %vm2246_vm9, %v4575_v32, %v4576_v59 }
 0x688   : > { %v4098_v26 = vpop.f32.mrf.mxu3 }
 0x689   : > { %v4187_v50 = vrot.slane %v4098_v26, 1 }
 0x68a   : > { %v4333_v43 = vpop.f32.mrf.mxu0 }
 0x68b   : > { %v4220_v51 = vsel %vm1856_vm8, %v4186_v46, %v4187_v50  ;;  %v4490_v58 = vpop.f32.mrf.mxu1 }
 0x68c   : > { %v4329_v15 = vadd.f32 %v4328_v8, %v4220_v51  ;;  %v4577_v24 = vrot.slane %v4490_v58, 2 }
 0x68d   : > { %5983 = vmatmul.msk.bf16.gmra.mxu3 %vm1586_vm7, %v3920_v45  ;;  %6019 = vmatmul.msk.bf16.gmra.mxu0 %vm1586_vm7, %v3920_v45 }
 0x68e   : > { %v8442_v20 = vadd.f32 %v4609_v23, %v4329_v15  ;;  %v4608_v9 = vsel %vm2246_vm9, %v4576_v59, %v4577_v24  ;;  %6057 = vmatmul.msk.bf16.gmra.mxu1 %vm1586_vm7, %v3920_v45  ;;  %v3858_v59 = vsel %vm1414_vm5, %v6194_v49, %v3540_v34  ;;  %v3542_v45 = vpop.permute.xlu1 %3541 }
 0x68f   : > { %v3924_v52 = vsel %vm1511_vm6, %v3858_v59, %v3764_v60 }
 0x690   : > { %v4101_v5 = vpop.f32.mrf.mxu3 }
 0x691   : > { %v4188_v40 = vrot.slane %v4101_v5, 1  ;;  %v6195_v5 = vld [vmem:[#allocation2 + $0xf0] sm:$0xff] }
 0x692   : > { %v4334_v28 = vpop.f32.mrf.mxu0 }
 0x693   : > { %v4219_v10 = vsel %vm1856_vm8, %v4187_v50, %v4188_v40  ;;  %v4492_v6 = vpop.f32.mrf.mxu1  ;;  %v3861_v28 = vsel %vm1414_vm5, %v6195_v5, %v3542_v45 }
 0x694   : > { %v4331_v39 = vadd.f32 %v4330_v11, %v4219_v10  ;;  %v3766_v6 = vpop.permute.xlu2 %3765 }
 0x695   : > { %v3926_v14 = vsel %vm1511_vm6, %v3861_v28, %v3766_v6 }
 0x696   : > { %v8449_v44 = vadd.f32 %v4608_v9, %v4331_v39 }
 0x698   : > { %v4103_v38 = vpop.f32.mrf.mxu3 }
 0x69a   : > { %v4336_v55 = vpop.f32.mrf.mxu0 }
 0x69b   : > { %v4494_v42 = vpop.f32.mrf.mxu1 }
 0x69c   : > { %v4578_v53 = vrot.slane %v4494_v42, 2 }
 0x69d   : > { %5984 = vmatmul.msk.bf16.gmra.mxu3 %vm1586_vm7, %v3922_v31  ;;  %6020 = vmatmul.msk.bf16.gmra.mxu0 %vm1586_vm7, %v3922_v31 }
 0x69e   : > { %6058 = vmatmul.msk.bf16.gmra.mxu1 %vm1586_vm7, %v3922_v31  ;;  %v3544_v31 = vpop.permute.xlu0 %3543 }
 0x6a0   : > { %v4105_v63 = vpop.f32.mrf.mxu3 }
 0x6a1   : > { %v4189_v11 = vrot.slane %v4105_v63, 1 }
 0x6a2   : > { %v4338_v33 = vpop.f32.mrf.mxu0 }
 0x6a3   : > { %v4496_v3 = vpop.f32.mrf.mxu1 }
 0x6a4   : > { %v4579_v25 = vrot.slane %v4496_v3, 2  ;;  %v3768_v3 = vpop.permute.xlu1 %3767 }
 0x6a6   : > { %v4607_v8 = vsel %vm2246_vm9, %v4578_v53, %v4579_v25 }
 0x6a8   : > { %v4107_v37 = vpop.f32.mrf.mxu3 }
 0x6a9   : > { %v4190_v36 = vrot.slane %v4107_v37, 1 }
 0x6aa   : > { %v4341_v32 = vpop.f32.mrf.mxu0 }
 0x6ab   : > { %v4218_v1 = vsel %vm1856_vm8, %v4189_v11, %v4190_v36  ;;  %v4499_v23 = vpop.f32.mrf.mxu1 }
 0x6ac   : > { %v4337_v26 = vadd.f32 %v4336_v55, %v4218_v1  ;;  %v4580_v41 = vrot.slane %v4499_v23, 2 }
 0x6ad   : > { %5985 = vmatmul.msk.bf16.gmra.mxu3 %vm1586_vm7, %v3924_v52  ;;  %6021 = vmatmul.msk.bf16.gmra.mxu0 %vm1586_vm7, %v3924_v52 }
 0x6ae   : > { %v8464_v46 = vadd.f32 %v4607_v8, %v4337_v26  ;;  %v4606_v50 = vsel %vm2246_vm9, %v4579_v25, %v4580_v41  ;;  %6059 = vmatmul.msk.bf16.gmra.mxu1 %vm1586_vm7, %v3924_v52 }
 0x6b0   : > { %v4110_v43 = vpop.f32.mrf.mxu3 }
 0x6b1   : > { %v4191_v54 = vrot.slane %v4110_v43, 1 }
 0x6b2   : > { %v4342_v51 = vpop.f32.mrf.mxu0 }
 0x6b3   : > { %v4217_v58 = vsel %vm1856_vm8, %v4190_v36, %v4191_v54  ;;  %v4501_v15 = vpop.f32.mrf.mxu1 }
 0x6b4   : > { %v4339_v24 = vadd.f32 %v4338_v33, %v4217_v58  ;;  %v6196_v33 = vld [vmem:[#allocation2 + $0xf8] sm:$0xff] }
 0x6b5   : > { %v3864_v34 = vsel %vm1414_vm5, %v6196_v33, %v3544_v31 }
 0x6b6   : > { %v8471_v9 = vadd.f32 %v4606_v50, %v4339_v24  ;;  %v3928_v60 = vsel %vm1511_vm6, %v3864_v34, %v3768_v3 }
 0x6b8   : > { %v4112_v40 = vpop.f32.mrf.mxu3 }
 0x6ba   : > { %v4344_v10 = vpop.f32.mrf.mxu0 }
 0x6bb   : > { %v4503_v39 = vpop.f32.mrf.mxu1 }
 0x6bc   : > { %v4581_v55 = vrot.slane %v4503_v39, 2 }
 0x6bd   : > { %5986 = vmatmul.msk.bf16.gmra.mxu3 %vm1586_vm7, %v3926_v14  ;;  %6022 = vmatmul.msk.bf16.gmra.mxu0 %vm1586_vm7, %v3926_v14 }
 0x6be   : > { %6060 = vmatmul.msk.bf16.gmra.mxu1 %vm1586_vm7, %v3926_v14 }
 0x6c0   : > { %v4114_v38 = vpop.f32.mrf.mxu3 }
 0x6c1   : > { %v4192_v53 = vrot.slane %v4114_v38, 1 }
 0x6c2   : > { %v4346_v35 = vpop.f32.mrf.mxu0 }
 0x6c3   : > { %v4505_v13 = vpop.f32.mrf.mxu1 }
 0x6c4   : > { %v4582_v16 = vrot.slane %v4505_v13, 2 }
 0x6c6   : > { %v4605_v42 = vsel %vm2246_vm9, %v4581_v55, %v4582_v16 }
 0x6c8   : > { %v4116_v63 = vpop.f32.mrf.mxu3 }
 0x6c9   : > { %v4193_v25 = vrot.slane %v4116_v63, 1 }
 0x6ca   : > { %v4349_v8 = vpop.f32.mrf.mxu0 }
 0x6cb   : > { %v4216_v37 = vsel %vm1856_vm8, %v4192_v53, %v4193_v25  ;;  %v4508_v49 = vpop.f32.mrf.mxu1 }
 0x6cc   : > { %v4345_v11 = vadd.f32 %v4344_v10, %v4216_v37  ;;  %v4583_v36 = vrot.slane %v4508_v49, 2 }
 0x6cd   : > { %5987 = vmatmul.msk.bf16.gmra.mxu3 %vm1586_vm7, %v3928_v60  ;;  %6023 = vmatmul.msk.bf16.gmra.mxu0 %vm1586_vm7, %v3928_v60 }
 0x6ce   : > { %v8486_v32 = vadd.f32 %v4605_v42, %v4345_v11  ;;  %v4604_v59 = vsel %vm2246_vm9, %v4582_v16, %v4583_v36  ;;  %6061 = vmatmul.msk.bf16.gmra.mxu1 %vm1586_vm7, %v3928_v60 }
 0x6d0   : > { %v4119_v1 = vpop.f32.mrf.mxu3 }
 0x6d1   : > { %v4194_v23 = vrot.slane %v4119_v1, 1 }
 0x6d2   : > { %v4350_v52 = vpop.f32.mrf.mxu0 }
 0x6d3   : > { %v4215_v26 = vsel %vm1856_vm8, %v4193_v25, %v4194_v23  ;;  %v4510_v41 = vpop.f32.mrf.mxu1 }
 0x6d4   : > { %v4347_v50 = vadd.f32 %v4346_v35, %v4215_v26 }
 0x6d6   : > { %v8493_v43 = vadd.f32 %v4604_v59, %v4347_v50 }
 0x6d8   : > { %v4121_v54 = vpop.f32.mrf.mxu3 }
 0x6da   : > { %v4352_v51 = vpop.f32.mrf.mxu0 }
 0x6db   : > { %v4512_v58 = vpop.f32.mrf.mxu1 }
 0x6dc   : > { %v4584_v5 = vrot.slane %v4512_v58, 2 }
 0x6e0   : > { %v4123_v15 = vpop.f32.mrf.mxu3 }
 0x6e1   : > { %v4195_v6 = vrot.slane %v4123_v15, 1 }
 0x6e2   : > { %v4354_v24 = vpop.f32.mrf.mxu0 }
 0x6e3   : > { %v4514_v45 = vpop.f32.mrf.mxu1 }
 0x6e4   : > { %v4585_v40 = vrot.slane %v4514_v45, 2 }
 0x6e6   : > { %v4603_v28 = vsel %vm2246_vm9, %v4584_v5, %v4585_v40 }
 0x6e8   : > { %v4125_v10 = vpop.f32.mrf.mxu3 }
 0x6e9   : > { %v4196_v39 = vrot.slane %v4125_v10, 1 }
 0x6ea   : > { %v4357_v14 = vpop.f32.mrf.mxu0 }
 0x6eb   : > { %v4214_v38 = vsel %vm1856_vm8, %v4195_v6, %v4196_v39  ;;  %v4517_v35 = vpop.f32.mrf.mxu1  ;;  %v4731_v14 = vmul.f32 %v8251_v21, %v8251_v21 }
 0x6ec   : > { %v4353_v13 = vadd.f32 %v4352_v51, %v4214_v38  ;;  %v4586_v55 = vrot.slane %v4517_v35, 2  ;;  %v4730_v35 = vmul.f32 %v8244_v27, %v8244_v27 }
 0x6ee   : > { %v8499_v16 = vadd.f32 %v4603_v28, %v4353_v13  ;;  %v4602_v42 = vsel %vm2246_vm9, %v4585_v40, %v4586_v55  ;;  %v4661_v13 = vsel %vm1414_vm5, %v8251_v21, 0.0  ;;  %v4732_v55 = vmul.f32 %v8266_v4, %v8266_v4 }
 0x6f0   : > { %v4128_v31 = vpop.f32.mrf.mxu3 }
 0x6f1   : > { %v4197_v63 = vrot.slane %v4128_v31, 1  ;;  %v4660_v31 = vsel %vm1414_vm5, %v8244_v27, 0.0 }
 0x6f2   : > { %v4358_v33 = vpop.f32.mrf.mxu0 }
 0x6f3   : > { %v4213_v3 = vsel %vm1856_vm8, %v4196_v39, %v4197_v63  ;;  %v4519_v53 = vpop.f32.mrf.mxu1  ;;  %v4763_v63 = vsel %vm1414_vm5, %v4731_v14, 0.0  ;;  %v4663_v33 = vsel %vm1414_vm5, %v8266_v4, 0.0 }
 0x6f4   : > { %v4355_v25 = vadd.f32 %v4354_v24, %v4213_v3  ;;  %v4733_v3 = vmul.f32 %v8273_v17, %v8273_v17  ;;  %v4662_v53 = vadd.f32 %v4661_v13, %v4660_v31  ;;  %v4738_v13 = vmul.f32 %v8332_v57, %v8332_v57 }
 0x6f6   : > { %v8505_v8 = vadd.f32 %v4602_v42, %v4355_v25 }
 0x6f8   : > { %v4130_v34 = vpop.f32.mrf.mxu3 }
 0x6f9   : > { %v4762_v34 = vsel %vm1414_vm5, %v4730_v35, 0.0  ;;  %v4673_v35 = vsel %vm1414_vm5, %v8317_v62, 0.0 }
 0x6fa   : > { %v4360_v37 = vpop.f32.mrf.mxu0 }
 0x6fb   : > { %v4521_v49 = vpop.f32.mrf.mxu1 }
 0x6fc   : > { %v4587_v59 = vrot.slane %v4521_v49, 2  ;;  %v4665_v49 = vsel %vm1414_vm5, %v8273_v17, 0.0 }
 0x700   : > { %v4132_v60 = vpop.f32.mrf.mxu3 }
 0x701   : > { %v4198_v26 = vrot.slane %v4132_v60, 1  ;;  %v4734_v60 = vmul.f32 %v8288_v29, %v8288_v29 }
 0x702   : > { %v4362_v11 = vpop.f32.mrf.mxu0 }
 0x703   : > { %v4523_v36 = vpop.f32.mrf.mxu1 }
 0x704   : > { %v4588_v1 = vrot.slane %v4523_v36, 2  ;;  %v4764_v36 = vadd.f32 %v4763_v63, %v4762_v34 }
 0x706   : > { %v4601_v23 = vsel %vm2246_vm9, %v4587_v59, %v4588_v1  ;;  %v4664_v59 = vadd.f32 %v4663_v33, %v4662_v53  ;;  %v4675_v33 = vsel %vm1414_vm5, %v8332_v57, 0.0 }
 0x708   : > { %v4134_v52 = vpop.f32.mrf.mxu3 }
 0x709   : > { %v4199_v41 = vrot.slane %v4134_v52, 1  ;;  %v4735_v52 = vmul.f32 %v8295_v0, %v8295_v0 }
 0x70a   : > { %v4365_v50 = vpop.f32.mrf.mxu0 }
 0x70b   : > { %v4212_v54 = vsel %vm1856_vm8, %v4198_v26, %v4199_v41  ;;  %v4526_v51 = vpop.f32.mrf.mxu1  ;;  %v4769_v50 = vsel %vm1414_vm5, %v4734_v60, 0.0  ;;  %v4740_v60 = vmul.f32 %v8354_v22, %v8354_v22 }
 0x70c   : > { %v4361_v58 = vadd.f32 %v4360_v37, %v4212_v54  ;;  %v4589_v15 = vrot.slane %v4526_v51, 2  ;;  %v4765_v37 = vsel %vm1414_vm5, %v4732_v55, 0.0  ;;  %v4669_v54 = vsel %vm1414_vm5, %v8295_v0, 0.0 }
 0x70d   : > { %v4766_v26 = vadd.f32 %v4765_v37, %v4764_v36  ;;  %v4736_v51 = vmul.f32 %v8310_v18, %v8310_v18  ;;  %v4777_v37 = vsel %vm1414_vm5, %v4738_v13, 0.0 }
 0x70e   : > { %v8511_v24 = vadd.f32 %v4601_v23, %v4361_v58  ;;  %v4600_v45 = vsel %vm2246_vm9, %v4588_v1, %v4589_v15  ;;  %v4767_v1 = vsel %vm1414_vm5, %v4733_v3, 0.0  ;;  %v4667_v23 = vsel %vm1414_vm5, %v8288_v29, 0.0 }
 0x70f   : > { %v4768_v58 = vadd.f32 %v4767_v1, %v4766_v26  ;;  %v4773_v14 = vsel %vm1414_vm5, %v4736_v51, 0.0  ;;  %v4739_v3 = vmul.f32 %v8339_v7, %v8339_v7  ;;  %v4741_v26 = vmul.f32 %v8361_v12, %v8361_v12 }
 0x710   : > { %v4137_v5 = vpop.f32.mrf.mxu3  ;;  %v4781_v51 = vsel %vm1414_vm5, %v4740_v60, 0.0 }
 0x711   : > { %v4200_v40 = vrot.slane %v4137_v5, 1  ;;  %v4771_v5 = vsel %vm1414_vm5, %v4735_v52, 0.0  ;;  %v4679_v52 = vsel %vm1414_vm5, %v8354_v22, 0.0 }
 0x712   : > { %v4366_v28 = vpop.f32.mrf.mxu0 }
 0x713   : > { %v4211_v10 = vsel %vm1856_vm8, %v4199_v41, %v4200_v40  ;;  %v4528_v6 = vpop.f32.mrf.mxu1  ;;  %v4666_v41 = vadd.f32 %v4665_v49, %v4664_v59  ;;  %v4671_v40 = vsel %vm1414_vm5, %v8310_v18, 0.0  ;;  %v4737_v28 = vmul.f32 %v8317_v62, %v8317_v62 }
 0x714   : > { %v4363_v39 = vadd.f32 %v4362_v11, %v4211_v10  ;;  %v4770_v10 = vadd.f32 %v4769_v50, %v4768_v58  ;;  %v4677_v49 = vsel %vm1414_vm5, %v8339_v7, 0.0  ;;  %v4681_v58 = vsel %vm1414_vm5, %v8361_v12, 0.0 }
 0x715   : > { %v4668_v15 = vadd.f32 %v4667_v23, %v4666_v41  ;;  %v4775_v63 = vsel %vm1414_vm5, %v4737_v28, 0.0  ;;  %v4779_v23 = vsel %vm1414_vm5, %v4739_v3, 0.0 }
 0x716   : > { %v8519_v38 = vadd.f32 %v4600_v45, %v4363_v39 }
 0x717   : > { %v4670_v6 = vadd.f32 %v4669_v54, %v4668_v15  ;;  %v4742_v15 = vmul.f32 %v8376_v47, %v8376_v47 }
 0x718   : > { %v4139_v42 = vpop.f32.mrf.mxu3 }
 0x719   : > { %v4772_v42 = vadd.f32 %v4771_v5, %v4770_v10  ;;  %v4672_v31 = vadd.f32 %v4671_v40, %v4670_v6  ;;  %v4783_v10 = vsel %vm1414_vm5, %v4741_v26, 0.0  ;;  %v4683_v6 = vsel %vm1414_vm5, %v8376_v47, 0.0 }
 0x71a   : > { %v8534_v25 = vpop.f32.mrf.mxu0  ;;  %v4746_v26 = vmul.f32 %v8420_v30, %v8420_v30 }
 0x71b   : > { %v8542_v11 = vpop.f32.mrf.mxu1  ;;  %v4774_v53 = vadd.f32 %v4773_v14, %v4772_v42  ;;  %v4674_v34 = vadd.f32 %v4673_v35, %v4672_v31  ;;  %v4743_v14 = vmul.f32 %v8383_v61, %v8383_v61  ;;  %v4785_v42 = vsel %vm1414_vm5, %v4742_v15, 0.0 }
 0x71c   : > { %v4685_v31 = vsel %vm1414_vm5, %v8383_v61, 0.0  ;;  %v4747_v15 = vmul.f32 %v8427_v48, %v8427_v48 }
 0x71d   : > { %v4776_v36 = vadd.f32 %v4775_v63, %v4774_v53  ;;  %v4676_v59 = vadd.f32 %v4675_v33, %v4674_v34  ;;  %v4744_v63 = vmul.f32 %v8398_v56, %v8398_v56  ;;  %v4787_v34 = vsel %vm1414_vm5, %v4743_v14, 0.0 }
 0x71e   : > { %v4748_v14 = vmul.f32 %v8442_v20, %v8442_v20 }
 0x71f   : > { %v4778_v41 = vadd.f32 %v4777_v37, %v4776_v36  ;;  %v4678_v50 = vadd.f32 %v4677_v49, %v4676_v59  ;;  %v4687_v37 = vsel %vm1414_vm5, %v8398_v56, 0.0  ;;  %v4745_v49 = vmul.f32 %v8405_v19, %v8405_v19 }
 0x720   : > { %v8554_v45 = vpop.f32.mrf.mxu3 }
 0x721   : > { %v4780_v40 = vadd.f32 %v4779_v23, %v4778_v41  ;;  %v4680_v28 = vadd.f32 %v4679_v52, %v4678_v50  ;;  %v4789_v23 = vsel %vm1414_vm5, %v4744_v63, 0.0  ;;  %v4689_v52 = vsel %vm1414_vm5, %v8405_v19, 0.0 }
 0x722   : > { %v8561_v39 = vpop.f32.mrf.mxu0  ;;  %v4695_v63 = vsel %vm1414_vm5, %v8442_v20, 0.0 }
 0x723   : > { %v8568_v55 = vpop.f32.mrf.mxu1  ;;  %v4782_v35 = vadd.f32 %v4781_v51, %v4780_v40  ;;  %v4682_v13 = vadd.f32 %v4681_v58, %v4680_v28  ;;  %v4791_v51 = vsel %vm1414_vm5, %v4745_v49, 0.0  ;;  %v4691_v58 = vsel %vm1414_vm5, %v8420_v30, 0.0 }
 0x724   : > { %v4797_v49 = vsel %vm1414_vm5, %v4748_v14, 0.0 }
 0x725   : > { %v4784_v33 = vadd.f32 %v4783_v10, %v4782_v35  ;;  %v4684_v3 = vadd.f32 %v4683_v6, %v4682_v13  ;;  %v4793_v10 = vsel %vm1414_vm5, %v4746_v26, 0.0  ;;  %v4693_v6 = vsel %vm1414_vm5, %v8427_v48, 0.0 }
 0x726   : > { %v4751_v26 = vmul.f32 %v8471_v9, %v8471_v9 }
 0x727   : > { %v4786_v60 = vadd.f32 %v4785_v42, %v4784_v33  ;;  %v4686_v36 = vadd.f32 %v4685_v31, %v4684_v3  ;;  %v4795_v31 = vsel %vm1414_vm5, %v4747_v15, 0.0  ;;  %v4749_v33 = vmul.f32 %v8449_v44, %v8449_v44 }
 0x728   : > { %v8580_v1 = vpop.f32.mrf.mxu3  ;;  %v4701_v15 = vsel %vm1414_vm5, %v8471_v9, 0.0  ;;  %v4803_v14 = vsel %vm1414_vm5, %v4751_v26, 0.0  ;;  %v4591_v26 = vrot.slane %v8568_v55, 2 }
 0x729   : > { %v4788_v50 = vadd.f32 %v4787_v34, %v4786_v60  ;;  %v4697_v60 = vsel %vm1414_vm5, %v8449_v44, 0.0 }
 0x72a   : > { %v4373_v54 = vpop.f32.mrf.mxu0 }
 0x72b   : > { %v8592_v5 = vpop.f32.mrf.mxu1  ;;  %v4688_v54 = vadd.f32 %v4687_v37, %v4686_v36  ;;  %v4790_v40 = vadd.f32 %v4789_v23, %v4788_v50  ;;  %v4750_v36 = vmul.f32 %v8464_v46, %v8464_v46  ;;  %v4699_v50 = vsel %vm1414_vm5, %v8464_v46, 0.0 }
 0x72d   : > { %v4690_v28 = vadd.f32 %v4689_v52, %v4688_v54  ;;  %v4792_v35 = vadd.f32 %v4791_v51, %v4790_v40  ;;  %v4752_v40 = vmul.f32 %v8486_v32, %v8486_v32 }
 0x72f   : > { %v4692_v13 = vadd.f32 %v4691_v58, %v4690_v28  ;;  %v4794_v3 = vadd.f32 %v4793_v10, %v4792_v35  ;;  %v4801_v58 = vsel %vm1414_vm5, %v4750_v36, 0.0  ;;  %v4202_v28 = vrot.slane %v8580_v1, 1 }
 0x730   : > { %v8604_v53 = vpop.f32.mrf.mxu3  ;;  %v4805_v1 = vsel %vm1414_vm5, %v4752_v40, 0.0  ;;  %v4590_v40 = vrot.slane %v8542_v11, 2  ;;  %v4756_v11 = vmul.f32 %v8511_v24, %v8511_v24 }
 0x731   : > { %v4694_v34 = vadd.f32 %v4693_v6, %v4692_v13  ;;  %v4796_v23 = vadd.f32 %v4795_v31, %v4794_v3  ;;  %v4703_v13 = vsel %vm1414_vm5, %v8486_v32, 0.0  ;;  %v4201_v31 = vrot.slane %v8554_v45, 1 }
 0x732   : > { %v4374_v59 = vpop.f32.mrf.mxu0 }
 0x733   : > { %v4537_v41 = vpop.f32.mrf.mxu1  ;;  %v4696_v52 = vadd.f32 %v4695_v63, %v4694_v34  ;;  %v4798_v54 = vadd.f32 %v4797_v49, %v4796_v23  ;;  %v4203_v63 = vrot.slane %v8604_v53, 1  ;;  %v4705_v49 = vsel %vm1414_vm5, %v8493_v43, 0.0 }
 0x734   : > { %v4799_v41 = vsel %vm1414_vm5, %v4749_v33, 0.0  ;;  %v4707_v53 = vsel %vm1414_vm5, %v8499_v16, 0.0 }
 0x735   : > { %v4698_v51 = vadd.f32 %v4697_v60, %v4696_v52  ;;  %v4800_v10 = vadd.f32 %v4799_v41, %v4798_v54  ;;  %v4210_v60 = vsel %vm1856_vm8, %v4201_v31, %v4202_v28  ;;  %v4209_v41 = vsel %vm1856_vm8, %v4202_v28, %v4203_v63 }
 0x736   : > { %v4371_v55 = vadd.f32 %v8561_v39, %v4209_v41  ;;  %v4599_v28 = vsel %vm2246_vm9, %v4590_v40, %v4591_v26 }
 0x737   : > { %v4700_v6 = vadd.f32 %v4699_v50, %v4698_v51  ;;  %v4802_v33 = vadd.f32 %v4801_v58, %v4800_v10  ;;  %v4754_v51 = vmul.f32 %v8499_v16, %v8499_v16  ;;  %v4369_v58 = vadd.f32 %v8534_v25, %v4210_v60 }
 0x738   : > { %v4148_v42 = vpop.f32.mrf.mxu3  ;;  %v4592_v10 = vrot.slane %v8592_v5, 2 }
 0x739   : > { %v4753_v42 = vmul.f32 %v8493_v43, %v8493_v43  ;;  %v4702_v3 = vadd.f32 %v4701_v15, %v4700_v6  ;;  %v4804_v23 = vadd.f32 %v4803_v14, %v4802_v33  ;;  %v4755_v15 = vmul.f32 %v8505_v8, %v8505_v8 }
 0x73a   : > { %v8631_v37 = vpop.f32.mrf.mxu0  ;;  %v4809_v25 = vsel %vm1414_vm5, %v4754_v51, 0.0  ;;  %v4709_v33 = vsel %vm1414_vm5, %v8505_v8, 0.0  ;;  %v8689_v5 = vadd.f32 %v4599_v28, %v4369_v58 }
 0x73b   : > { %v8638_v59 = vpop.f32.mrf.mxu1  ;;  %v4704_v52 = vadd.f32 %v4703_v13, %v4702_v3  ;;  %v4807_v45 = vsel %vm1414_vm5, %v4753_v42, 0.0  ;;  %v4806_v50 = vadd.f32 %v4805_v1, %v4804_v23  ;;  %v4811_v39 = vsel %vm1414_vm5, %v4755_v15, 0.0 }
 0x73c   : > { %v4598_v1 = vsel %vm2246_vm9, %v4591_v26, %v4592_v10  ;;  %v4757_v23 = vmul.f32 %v8519_v38, %v8519_v38 }
 0x73d   : > { %v4706_v54 = vadd.f32 %v4705_v49, %v4704_v52  ;;  %v4808_v6 = vadd.f32 %v4807_v45, %v4806_v50  ;;  %v8701_v52 = vadd.f32 %v4598_v1, %v4371_v55  ;;  %v4713_v50 = vsel %vm1414_vm5, %v8519_v38, 0.0 }
 0x73e   : > { %v4815_v40 = vsel %vm1414_vm5, %v4757_v23, 0.0 }
 0x73f   : > { %v4708_v14 = vadd.f32 %v4707_v53, %v4706_v54  ;;  %v4810_v53 = vadd.f32 %v4809_v25, %v4808_v6  ;;  %v4758_v54 = vmul.f32 %v8689_v5, %v8689_v5  ;;  %v4759_v10 = vmul.f32 %v8701_v52, %v8701_v52 }
 0x740   : > { %v4150_v35 = vpop.f32.mrf.mxu3  ;;  %v4717_v25 = vsel %vm1414_vm5, %v8701_v52, 0.0 }
 0x741   : > { %v4204_v42 = vrot.slane %v4150_v35, 1  ;;  %v4593_v35 = vrot.slane %v8638_v59, 2  ;;  %v4710_v41 = vadd.f32 %v4709_v33, %v4708_v14  ;;  %v4813_v59 = vsel %vm1414_vm5, %v4756_v11, 0.0 }
 0x742   : > { %v8658_v34 = vpop.f32.mrf.mxu0  ;;  %v4812_v58 = vadd.f32 %v4811_v39, %v4810_v53 }
 0x743   : > { %v8665_v36 = vpop.f32.mrf.mxu1 }
 0x744   : > { %v4594_v31 = vrot.slane %v8665_v36, 2  ;;  %v4711_v36 = vsel %vm1414_vm5, %v8511_v24, 0.0  ;;  %v4814_v14 = vadd.f32 %v4813_v59, %v4812_v58 }
 0x745   : > { %v4712_v15 = vadd.f32 %v4711_v36, %v4710_v41 }
 0x746   : > { %v4597_v26 = vsel %vm2246_vm9, %v4593_v35, %v4594_v31 }
 0x747   : > { %v4714_v55 = vadd.f32 %v4713_v50, %v4712_v15 }
 0x748   : > { %v4152_v13 = vpop.f32.mrf.mxu3 }
 0x749   : > { %v4205_v63 = vrot.slane %v4152_v13, 1 }
 0x74a   : > { %v4381_v3 = vpop.f32.mrf.mxu0 }
 0x74b   : > { %v4208_v49 = vsel %vm1856_vm8, %v4204_v42, %v4205_v63  ;;  %v4544_v60 = vpop.f32.mrf.mxu1  ;;  %v4817_v42 = vsel %vm1414_vm5, %v4758_v54, 0.0  ;;  %v4816_v3 = vadd.f32 %v4815_v40, %v4814_v14 }
 0x74c   : > { %v4377_v45 = vadd.f32 %v8631_v37, %v4208_v49  ;;  %v4715_v37 = vsel %vm1414_vm5, %v8689_v5, 0.0  ;;  %v4595_v13 = vrot.slane %v4544_v60, 2  ;;  %v4819_v49 = vsel %vm1414_vm5, %v4759_v10, 0.0 }
 0x74d   : > { %v4716_v39 = vadd.f32 %v4715_v37, %v4714_v55  ;;  %v4818_v23 = vadd.f32 %v4817_v42, %v4816_v3 }
 0x74e   : > { %v8711_v51 = vadd.f32 %v4597_v26, %v4377_v45  ;;  %v4596_v53 = vsel %vm2246_vm9, %v4594_v31, %v4595_v13 }
 0x74f   : > { %v4718_v45 = vadd.f32 %v4717_v25, %v4716_v39  ;;  %v4820_v59 = vadd.f32 %v4819_v49, %v4818_v23 }
 0x750   : > { %v4155_v6 = vpop.f32.mrf.mxu3  ;;  %v4760_v33 = vmul.f32 %v8711_v51, %v8711_v51  ;;  %v4719_v60 = vsel %vm1414_vm5, %v8711_v51, 0.0 }
 0x751   : > { %v4206_v28 = vrot.slane %v4155_v6, 1  ;;  %v4720_v50 = vadd.f32 %v4719_v60, %v4718_v45 }
 0x752   : > { %v4382_v11 = vpop.f32.mrf.mxu0  ;;  %v4821_v41 = vsel %vm1414_vm5, %v4760_v33, 0.0 }
 0x753   : > { %v4207_v1 = vsel %vm1856_vm8, %v4205_v63, %v4206_v28  ;;  %v4546_v35 = vpop.f32.mrf.mxu1  ;;  %v4822_v15 = vadd.f32 %v4821_v41, %v4820_v59 }
 0x754   : > { %v4379_v36 = vadd.f32 %v8658_v34, %v4207_v1 }
 0x756   : > { %v8732_v26 = vadd.f32 %v4596_v53, %v4379_v36 }
 0x758   : > { %v4721_v63 = vsel %vm1414_vm5, %v8732_v26, 0.0  ;;  %v4761_v54 = vmul.f32 %v8732_v26, %v8732_v26  ;;  %v4157_v58 = vpop.f32.mrf.mxu3 }
 0x759   : > { %v4722_v34 = vadd.f32 %v4721_v63, %v4720_v50 }
 0x75a   : > { %v4823_v40 = vsel %vm1414_vm5, %v4761_v54, 0.0 }
 0x75b   : > { %v4723_v37 = vrot.slane %v4722_v34, 4  ;;  %v4824_v2 = vadd.f32 %v4823_v40, %v4822_v15 }
 0x75d   : > { %v4724_v31 = vadd.f32 %v4723_v37, %v4722_v34  ;;  %v4825_v10 = vrot.slane %v4824_v2, 4 }
 0x75f   : > { %v4725_v6 = vrot.slane %v4724_v31, 2  ;;  %v4826_v14 = vadd.f32 %v4825_v10, %v4824_v2  ;;  %v4846_v2 = vld [vmem:[%s6336_s17] sm:$0xff] }
 0x761   : > { %v4726_v55 = vadd.f32 %v4725_v6, %v4724_v31  ;;  %v4827_v13 = vrot.slane %v4826_v14, 2  ;;  %v4847_v31 = vld [vmem:[%s6336_s17 + $0x8] sm:$0xff] }
 0x763   : > { %v4727_v28 = vrot.slane %v4726_v55, 1  ;;  %v4828_v42 = vadd.f32 %v4827_v13, %v4826_v14  ;;  %v4850_v14 = vld [vmem:[%s6336_s17 + $0x20] sm:$0xff]  ;;  %v4851_v13 = vld [vmem:[%s6336_s17 + $0x28] sm:$0xff] }
 0x765   : > { %v4728_v25 = vadd.f32 %v4727_v28, %v4726_v55  ;;  %v4829_v33 = vrot.slane %v4828_v42, 1 }
 0x767   : > { %v8739_v11 = vmul.f32 0.00390625, %v4728_v25  ;;  %v4830_v3 = vadd.f32 %v4829_v33, %v4828_v42 }
 0x769   : > { %v4831_v39 = vmul.f32 0.00390625, %v4830_v3  ;;  %v4832_v1 = vmul.f32 %v8739_v11, %v8739_v11  ;;  %v4878_v63 = vsub.f32 %v8244_v27, %v8739_v11  ;;  %v4879_v54 = vsub.f32 %v8251_v21, %v8739_v11  ;;  %v4848_v21 = vld [vmem:[%s6336_s17 + $0x10] sm:$0xff] }
 0x76a   : > { %v4880_v58 = vsub.f32 %v8266_v4, %v8739_v11  ;;  %v4881_v15 = vsub.f32 %v8273_v17, %v8739_v11  ;;  %v4882_v34 = vsub.f32 %v8288_v29, %v8739_v11  ;;  %v4883_v4 = vsub.f32 %v8295_v0, %v8739_v11  ;;  %v4849_v17 = vld [vmem:[%s6336_s17 + $0x18] sm:$0xff]  ;;  %v4852_v3 = vld [vmem:[%s6336_s17 + $0x30] sm:$0xff] }
 0x76b   : > { %v4833_v35 = vsub.f32 %v4831_v39, %v4832_v1  ;;  %v4884_v29 = vsub.f32 %v8310_v18, %v8739_v11  ;;  %v4885_v55 = vsub.f32 %v8317_v62, %v8739_v11  ;;  %v4886_v0 = vsub.f32 %v8332_v57, %v8739_v11  ;;  %v4853_v57 = vld [vmem:[%s6336_s17 + $0x38] sm:$0xff] }
 0x76c   : > { %v4887_v39 = vsub.f32 %v8339_v7, %v8739_v11  ;;  %v4889_v7 = vsub.f32 %v8361_v12, %v8739_v11  ;;  %v4891_v12 = vsub.f32 %v8383_v61, %v8739_v11  ;;  %v4893_v61 = vsub.f32 %v8405_v19, %v8739_v11 }
 0x76d   : > { %v4834_v49 = vmax.f32 %v4833_v35, 0.0  ;;  %v4888_v35 = vsub.f32 %v8354_v22, %v8739_v11  ;;  %v4890_v22 = vsub.f32 %v8376_v47, %v8739_v11  ;;  %v4892_v47 = vsub.f32 %v8398_v56, %v8739_v11 }
 0x76e   : > { %v4894_v56 = vsub.f32 %v8420_v30, %v8739_v11  ;;  %v4895_v19 = vsub.f32 %v8427_v48, %v8739_v11  ;;  %v4896_v30 = vsub.f32 %v8442_v20, %v8739_v11  ;;  %v4897_v48 = vsub.f32 %v8449_v44, %v8739_v11 }
 0x76f   : > { %v4835_v60 = vadd.f32 1e-05, %v4834_v49  ;;  %v4898_v20 = vsub.f32 %v8464_v46, %v8739_v11  ;;  %v4899_v44 = vsub.f32 %v8471_v9, %v8739_v11  ;;  %v4900_v46 = vsub.f32 %v8486_v32, %v8739_v11 }
 0x770   : > { %v4901_v9 = vsub.f32 %v8493_v43, %v8739_v11  ;;  %v4902_v32 = vsub.f32 %v8499_v16, %v8739_v11  ;;  %v4903_v43 = vsub.f32 %v8505_v8, %v8739_v11  ;;  %v4904_v16 = vsub.f32 %v8511_v24, %v8739_v11 }
 0x771   : > { %6279 = vrsqrt.f32 %v4835_v60  ;;  %vm4842_vm14 = vweird.f32 %v4835_v60  ;;  %v4905_v8 = vsub.f32 %v8519_v38, %v8739_v11  ;;  %v4906_v24 = vsub.f32 %v8689_v5, %v8739_v11 }
 0x772   : > { %v4907_v38 = vsub.f32 %v8701_v52, %v8739_v11  ;;  %v4908_v5 = vsub.f32 %v8711_v51, %v8739_v11  ;;  %v4874_v52 = vld [vmem:[%s6336_s17 + $0xe0] sm:$0xff]  ;;  %v4875_v51 = vld [vmem:[%s6336_s17 + $0xe8] sm:$0xff] }
 0x777   : > { %v6280_v36 = vpop.eup %6279 }
 0x778   : > { %v4837_v23 = vmul.f32 %v6280_v36, %v4835_v60  ;;  %vm4843_vm13 = vweird.f32 %v6280_v36 }
 0x779   : > { %vm4844_vm15 = vmor %vm4842_vm14, %vm4843_vm13 }
 0x77a   : > { %v4838_v45 = vmul.f32 %v6280_v36, %v4837_v23 }
 0x77c   : > { %v4839_v53 = vmul.f32 0.5, %v4838_v45 }
 0x77e   : > { %v4840_v41 = vsub.f32 1.5, %v4839_v53  ;;  %v4855_v53 = vld [vmem:[%s6336_s17 + $0x48] sm:$0xff] }
 0x780   : > { %v4841_v59 = vmul.f32 %v6280_v36, %v4840_v41 }
 0x782   : > { %v8743_v50 = vsel %vm4844_vm15, %v6280_v36, %v4841_v59  ;;  %v4854_v36 = vld [vmem:[%s6336_s17 + $0x40] sm:$0xff] }
 0x783   : > { %v4910_v40 = vmul.f32 %v4878_v63, %v8743_v50  ;;  %v4911_v37 = vmul.f32 %v4879_v54, %v8743_v50  ;;  %v4912_v27 = vmul.f32 %v4880_v58, %v8743_v50  ;;  %v4913_v10 = vmul.f32 %v4881_v15, %v8743_v50  ;;  %v4856_v63 = vld [vmem:[%s6336_s17 + $0x50] sm:$0xff]  ;;  %v4857_v15 = vld [vmem:[%s6336_s17 + $0x58] sm:$0xff] }
 0x784   : > { %v4914_v6 = vmul.f32 %v4882_v34, %v8743_v50  ;;  %v4915_v18 = vmul.f32 %v4883_v4, %v8743_v50  ;;  %v4916_v28 = vmul.f32 %v4884_v29, %v8743_v50  ;;  %v4917_v62 = vmul.f32 %v4885_v55, %v8743_v50 }
 0x785   : > { %v4942_v42 = vadd.f32 %v4910_v40, %v4846_v2  ;;  %v4943_v25 = vadd.f32 %v4911_v37, %v4847_v31  ;;  %v4944_v33 = vadd.f32 %v4912_v27, %v4848_v21  ;;  %v4945_v1 = vadd.f32 %v4913_v10, %v4849_v17  ;;  %v4858_v37 = vld [vmem:[%s6336_s17 + $0x60] sm:$0xff]  ;;  %v4859_v31 = vld [vmem:[%s6336_s17 + $0x68] sm:$0xff]  ;;  %v4860_v10 = vld [vmem:[%s6336_s17 + $0x70] sm:$0xff] }
 0x786   : > { %v4918_v49 = vmul.f32 %v4886_v0, %v8743_v50  ;;  %v4946_v60 = vadd.f32 %v4914_v6, %v4850_v14  ;;  %v4919_v23 = vmul.f32 %v4887_v39, %v8743_v50  ;;  %v4947_v45 = vadd.f32 %v4915_v18, %v4851_v13  ;;  %v4861_v6 = vld [vmem:[%s6336_s17 + $0x78] sm:$0xff]  ;;  %v4862_v0 = vld [vmem:[%s6336_s17 + $0x80] sm:$0xff] }
 0x787   : > { %4974 = vst.msk [vmem:[%s8773_s23] sm:$0xff] %vm1414_vm5, %v4942_v42  ;;  %v4920_v41 = vmul.f32 %v4888_v35, %v8743_v50  ;;  %v4948_v59 = vadd.f32 %v4916_v28, %v4852_v3  ;;  %v4921_v54 = vmul.f32 %v4889_v7, %v8743_v50  ;;  %v4949_v58 = vadd.f32 %v4917_v62, %v4853_v57  ;;  %v4863_v28 = vld [vmem:[%s6336_s17 + $0x88] sm:$0xff]  ;;  %v4865_v62 = vld [vmem:[%s6336_s17 + $0x98] sm:$0xff]  ;;  %v4866_v35 = vld [vmem:[%s6336_s17 + $0xa0] sm:$0xff] }
 0x788   : > { %4975 = vst.msk [vmem:[%s8773_s23 + $0x8] sm:$0xff] %vm1414_vm5, %v4943_v25  ;;  %v4922_v34 = vmul.f32 %v4890_v22, %v8743_v50  ;;  %v4950_v40 = vadd.f32 %v4918_v49, %v4854_v36  ;;  %v4923_v27 = vmul.f32 %v4891_v12, %v8743_v50  ;;  %v4951_v2 = vadd.f32 %v4919_v23, %v4855_v53  ;;  %v4867_v36 = vld [vmem:[%s6336_s17 + $0xa8] sm:$0xff]  ;;  %v4870_v12 = vld [vmem:[%s6336_s17 + $0xc0] sm:$0xff] }
 0x789   : > { %4976 = vst.msk [vmem:[%s8773_s23 + $0x10] sm:$0xff] %vm1414_vm5, %v4944_v33  ;;  %v4924_v21 = vmul.f32 %v4892_v47, %v8743_v50  ;;  %v4952_v4 = vadd.f32 %v4920_v41, %v4856_v63  ;;  %v4925_v17 = vmul.f32 %v4893_v61, %v8743_v50  ;;  %v4953_v29 = vadd.f32 %v4921_v54, %v4857_v15  ;;  %v4864_v33 = vld [vmem:[%s6336_s17 + $0x90] sm:$0xff]  ;;  %v4869_v41 = vld [vmem:[%s6336_s17 + $0xb8] sm:$0xff]  ;;  %v4871_v15 = vld [vmem:[%s6336_s17 + $0xc8] sm:$0xff] }
 0x78a   : > { %4977 = vst.msk [vmem:[%s8773_s23 + $0x18] sm:$0xff] %vm1414_vm5, %v4945_v1  ;;  %v4926_v14 = vmul.f32 %v4894_v56, %v8743_v50  ;;  %v4954_v55 = vadd.f32 %v4922_v34, %v4858_v37  ;;  %v4927_v18 = vmul.f32 %v4895_v19, %v8743_v50  ;;  %v4955_v13 = vadd.f32 %v4923_v27, %v4859_v31  ;;  %v4873_v27 = vld [vmem:[%s6336_s17 + $0xd8] sm:$0xff] }
 0x78b   : > { %4978 = vst.msk [vmem:[%s8773_s23 + $0x20] sm:$0xff] %vm1414_vm5, %v4946_v60  ;;  %v4928_v42 = vmul.f32 %v4896_v30, %v8743_v50  ;;  %v4956_v25 = vadd.f32 %v4924_v21, %v4860_v10  ;;  %v4929_v3 = vmul.f32 %v4897_v48, %v8743_v50  ;;  %v4957_v39 = vadd.f32 %v4925_v17, %v4861_v6  ;;  %v4876_v17 = vld [vmem:[%s6336_s17 + $0xf0] sm:$0xff] }
 0x78c   : > { %4979 = vst.msk [vmem:[%s8773_s23 + $0x28] sm:$0xff] %vm1414_vm5, %v4947_v45  ;;  %v4930_v1 = vmul.f32 %v4898_v20, %v8743_v50  ;;  %v4958_v57 = vadd.f32 %v4926_v14, %v4862_v0  ;;  %v4931_v49 = vmul.f32 %v4899_v44, %v8743_v50  ;;  %v4959_v60 = vadd.f32 %v4927_v18, %v4863_v28  ;;  %v4868_v45 = vld [vmem:[%s6336_s17 + $0xb0] sm:$0xff] }
 0x78d   : > { %4980 = vst.msk [vmem:[%s8773_s23 + $0x30] sm:$0xff] %vm1414_vm5, %v4948_v59  ;;  %v4932_v7 = vmul.f32 %v4900_v46, %v8743_v50  ;;  %v4960_v23 = vadd.f32 %v4928_v42, %v4864_v33  ;;  %v4933_v53 = vmul.f32 %v4901_v9, %v8743_v50  ;;  %v4961_v22 = vadd.f32 %v4929_v3, %v4865_v62 }
 0x78e   : > { %4981 = vst.msk [vmem:[%s8773_s23 + $0x38] sm:$0xff] %vm1414_vm5, %v4949_v58  ;;  %v4934_v59 = vmul.f32 %v4902_v32, %v8743_v50  ;;  %v4962_v63 = vadd.f32 %v4930_v1, %v4866_v35  ;;  %v4935_v54 = vmul.f32 %v4903_v43, %v8743_v50  ;;  %v4963_v58 = vadd.f32 %v4931_v49, %v4867_v36 }
 0x78f   : > { %4982 = vst.msk [vmem:[%s8773_s23 + $0x40] sm:$0xff] %vm1414_vm5, %v4950_v40  ;;  %v4936_v47 = vmul.f32 %v4904_v16, %v8743_v50  ;;  %v4964_v34 = vadd.f32 %v4932_v7, %v4868_v45  ;;  %v4872_v40 = vld [vmem:[%s6336_s17 + $0xd0] sm:$0xff]  ;;  %v4937_v37 = vmul.f32 %v4905_v8, %v8743_v50  ;;  %v4965_v61 = vadd.f32 %v4933_v53, %v4869_v41 }
 0x790   : > { %4983 = vst.msk [vmem:[%s8773_s23 + $0x48] sm:$0xff] %vm1414_vm5, %v4951_v2  ;;  %v4938_v2 = vmul.f32 %v4906_v24, %v8743_v50  ;;  %v4966_v31 = vadd.f32 %v4934_v59, %v4870_v12  ;;  %v4909_v56 = vsub.f32 %v8732_v26, %v8739_v11  ;;  %v4939_v21 = vmul.f32 %v4907_v38, %v8743_v50 }
 0x791   : > { %4984 = vst.msk [vmem:[%s8773_s23 + $0x50] sm:$0xff] %vm1414_vm5, %v4952_v4  ;;  %v4967_v4 = vadd.f32 %v4935_v54, %v4871_v15  ;;  %v4940_v10 = vmul.f32 %v4908_v5, %v8743_v50  ;;  %v4968_v19 = vadd.f32 %v4936_v47, %v4872_v40  ;;  %v4969_v11 = vadd.f32 %v4937_v37, %v4873_v27 }
 0x792   : > { %4985 = vst.msk [vmem:[%s8773_s23 + $0x58] sm:$0xff] %vm1414_vm5, %v4953_v29  ;;  %v4941_v26 = vmul.f32 %v4909_v56, %v8743_v50  ;;  %v4877_v29 = vld [vmem:[%s6336_s17 + $0xf8] sm:$0xff]  ;;  %v4970_v6 = vadd.f32 %v4938_v2, %v4874_v52  ;;  %v4971_v30 = vadd.f32 %v4939_v21, %v4875_v51 }
 0x793   : > { %4986 = vst.msk [vmem:[%s8773_s23 + $0x60] sm:$0xff] %vm1414_vm5, %v4954_v55  ;;  %v4972_v14 = vadd.f32 %v4940_v10, %v4876_v17 }
 0x794   : > { %4987 = vst.msk [vmem:[%s8773_s23 + $0x68] sm:$0xff] %vm1414_vm5, %v4955_v13  ;;  %v4973_v55 = vadd.f32 %v4941_v26, %v4877_v29 }
 0x795   : > { %4988 = vst.msk [vmem:[%s8773_s23 + $0x70] sm:$0xff] %vm1414_vm5, %v4956_v25 }
 0x796   : > { %4989 = vst.msk [vmem:[%s8773_s23 + $0x78] sm:$0xff] %vm1414_vm5, %v4957_v39 }
 0x797   : > { %4990 = vst.msk [vmem:[%s8773_s23 + $0x80] sm:$0xff] %vm1414_vm5, %v4958_v57 }
 0x798   : > { %4991 = vst.msk [vmem:[%s8773_s23 + $0x88] sm:$0xff] %vm1414_vm5, %v4959_v60 }
 0x799   : > { %4992 = vst.msk [vmem:[%s8773_s23 + $0x90] sm:$0xff] %vm1414_vm5, %v4960_v23 }
 0x79a   : > { %4993 = vst.msk [vmem:[%s8773_s23 + $0x98] sm:$0xff] %vm1414_vm5, %v4961_v22 }
 0x79b   : > { %4994 = vst.msk [vmem:[%s8773_s23 + $0xa0] sm:$0xff] %vm1414_vm5, %v4962_v63 }
 0x79c   : > { %4995 = vst.msk [vmem:[%s8773_s23 + $0xa8] sm:$0xff] %vm1414_vm5, %v4963_v58 }
 0x79d   : > { %4996 = vst.msk [vmem:[%s8773_s23 + $0xb0] sm:$0xff] %vm1414_vm5, %v4964_v34 }
 0x79e   : > { %4997 = vst.msk [vmem:[%s8773_s23 + $0xb8] sm:$0xff] %vm1414_vm5, %v4965_v61 }
 0x79f   : > { %4998 = vst.msk [vmem:[%s8773_s23 + $0xc0] sm:$0xff] %vm1414_vm5, %v4966_v31 }
 0x7a0   : > { %4999 = vst.msk [vmem:[%s8773_s23 + $0xc8] sm:$0xff] %vm1414_vm5, %v4967_v4 }
 0x7a1   : > { %5000 = vst.msk [vmem:[%s8773_s23 + $0xd0] sm:$0xff] %vm1414_vm5, %v4968_v19 }
 0x7a2   : > { %5001 = vst.msk [vmem:[%s8773_s23 + $0xd8] sm:$0xff] %vm1414_vm5, %v4969_v11 }
 0x7a3   : > { %5002 = vst.msk [vmem:[%s8773_s23 + $0xe0] sm:$0xff] %vm1414_vm5, %v4970_v6 }
 0x7a4   : > { %5003 = vst.msk [vmem:[%s8773_s23 + $0xe8] sm:$0xff] %vm1414_vm5, %v4971_v30 }
 0x7a5   : > { %5004 = vst.msk [vmem:[%s8773_s23 + $0xf0] sm:$0xff] %vm1414_vm5, %v4972_v14 }
 0x7a6   : > { %5005 = vst.msk [vmem:[%s8773_s23 + $0xf8] sm:$0xff] %vm1414_vm5, %v4973_v55 }
 0x7a7 PF: > { %s13_s12 = sadd.s32 1, %s6287_s12  }
 0x7a8   : > { %p10_p4 = scmp.ge.s32.totalorder %s13_s12, 4  }
 0x7aa   :  { %12 = sbr.rel (!%p10_p4) target bundleno = 1 (0x1), region = 69 }

</bundles_post_ra>
